<compile_context>
chip_gen: v6e
topology: v6e:2x2x1
jax: 0.10.0
libtpu: 0.0.40
codegen_flags: <defaults>
</compile_context>

<pallas_src>
import functools

import numpy as np
import jax
import jax.numpy as jnp
from jax.experimental import pallas as pl
from jax.experimental.pallas import tpu as pltpu


# ----------------------------------------------------------------------------
# Host-side constant builders (numpy, run once when the forward fn is built)
# ----------------------------------------------------------------------------
def _down_gather(n, h_in, h_out):
    """One-hot row-gather matrices (4, N*Hout, N*Hin) for Conv2d(k4,s2,p1)."""
    g = np.zeros((4, n * h_out, n * h_in), np.float32)
    for b in range(n):
        for oh in range(h_out):
            for kh in range(4):
                ih = 2 * oh - 1 + kh
                if 0 <= ih < h_in:
                    g[kh, b * h_out + oh, b * h_in + ih] = 1.0
    return g


def _up_gather(n, h_in, h_out):
    """One-hot row-gather matrices for ConvTranspose2d(k4,s2,p1) (flipped
    stride-1 conv over a virtually zero-inserted, pad-2 input)."""
    g = np.zeros((4, n * h_out, n * h_in), np.float32)
    for b in range(n):
        for oh in range(h_out):
            for kh in range(4):
                uh = oh - 2 + kh                      # zero-inserted grid coord
                if uh % 2 == 0 and 0 <= uh // 2 < h_in:
                    g[kh, b * h_out + oh, b * h_in + uh // 2] = 1.0
    return g


def _down_band(w, w_in, w_out):
    """(4, Win*Cin, Wout*Cout) banded weights for Conv2d, one per kernel row.

    band[kh, iw*Cin+ci, ow*Cout+co] = w[co, ci, kh, kw] with iw = 2*ow - 1 + kw.
    """
    c_out, c_in = w.shape[0], w.shape[1]
    band = np.zeros((4, w_in * c_in, w_out * c_out), np.float32)
    for kh in range(4):
        for ow in range(w_out):
            for kw in range(4):
                iw = 2 * ow - 1 + kw
                if 0 <= iw < w_in:
                    band[kh, iw * c_in:(iw + 1) * c_in,
                         ow * c_out:(ow + 1) * c_out] = w[:, :, kh, kw].T
    return band


def _up_band(wt, w_in, w_out, cin_lo, cin_hi, c_out_pad=None):
    """(4, Win*Cin_sel, Wout*Cout_pad) banded weights for ConvTranspose2d
    (flipped-kernel form). Only input channels [cin_lo, cin_hi) are used — the
    skip concatenation is folded away by concatenating per-source bands."""
    c_out = wt.shape[1]
    c_in = cin_hi - cin_lo
    c_out_p = c_out if c_out_pad is None else c_out_pad
    band = np.zeros((4, w_in * c_in, w_out * c_out_p), np.float32)
    for kh in range(4):
        for ow in range(w_out):
            for iw in range(w_in):
                kw = 2 * iw - ow + 2                  # flipped-kernel tap
                if 0 <= kw < 4:
                    blk = wt[cin_lo:cin_hi, :, 3 - kh, 3 - kw]   # (Cin, Cout)
                    band[kh, iw * c_in:(iw + 1) * c_in,
                         ow * c_out_p:ow * c_out_p + c_out] = blk
    return band


def _kh_cat(band4):
    """(4, K, N) -> (K, 4*N), kh-major along lanes."""
    k, n = band4.shape[1], band4.shape[2]
    return np.ascontiguousarray(band4.transpose(1, 0, 2).reshape(k, 4 * n))


# ----------------------------------------------------------------------------
# The fused Pallas kernel (whole forward pass, single invocation)
# ----------------------------------------------------------------------------
def _fused_kernel(*refs, plan):
    """refs = (x_slab, *per_layer_constants..., out_slab)."""
    x_ref = refs[0]
    out_ref = refs[-1]
    it = iter(refs[1:-1])

    def _act(v, kind):
        if kind == "lrelu":
            return jnp.maximum(v, 0.2 * v)
        if kind == "relu":
            return jnp.maximum(v, 0.0)
        return v

    env = {"x": x_ref[...]}

    for layer in plan:
        gmat = next(it)[...]                    # (4, rows_out, rows_in) f32
        band = next(it)[...]                    # (Ktot, 4*OWC) bf16
        if layer["bn"]:
            gamma_c = next(it)[...]             # (1, C)
            beta_c = next(it)[...]              # (1, C)
            sel = next(it)[...]                 # (OWC, C)
            sel_t = next(it)[...]               # (C, OWC)
        if layer["bias"]:
            bias_b = next(it)[...]              # (1, OWC)

        srcs = [_act(env[name], layer["act"]) for name in layer["srcs"]]
        src = srcs[0] if len(srcs) == 1 else jnp.concatenate(srcs, axis=1)

        # One wide bf16 matmul covers all 4 kernel rows and all sources:
        #   T = src @ [band_kh0 | band_kh1 | band_kh2 | band_kh3]
        t = jnp.dot(src.astype(jnp.bfloat16), band,
                    preferred_element_type=jnp.float32)
        owc = t.shape[1] // 4

        # 4 small one-hot row-gather matmuls (f32), tree-added.
        parts = [
            jnp.dot(gmat[kh], t[:, kh * owc:(kh + 1) * owc],
                    preferred_element_type=jnp.float32)
            for kh in range(4)
        ]
        y = (parts[0] + parts[1]) + (parts[2] + parts[3])

        if layer["bias"]:
            y = y + bias_b

        if layer["bn"]:
            inv_cnt = 1.0 / float(layer["bn_count"])
            s1 = jnp.dot(jnp.sum(y, axis=0, keepdims=True), sel,
                         preferred_element_type=jnp.float32)
            s2 = jnp.dot(jnp.sum(y * y, axis=0, keepdims=True), sel,
                         preferred_element_type=jnp.float32)
            mean_c = s1 * inv_cnt
            var_c = jnp.maximum(s2 * inv_cnt - mean_c * mean_c, 0.0)
            a_c = gamma_c * jax.lax.rsqrt(var_c + 1e-5)       # width-C rsqrt
            b_c = beta_c - mean_c * a_c
            a_b = jnp.dot(a_c, sel_t, preferred_element_type=jnp.float32)
            b_b = jnp.dot(b_c, sel_t, preferred_element_type=jnp.float32)
            y = y * a_b + b_b                                  # single FMA pass

        if layer["post"] == "tanh":
            y = jnp.tanh(y)

        if layer["out"] == "__out__":
            out_ref[...] = y
        else:
            env[layer["out"]] = y


# ----------------------------------------------------------------------------
# Parameters + wrapper
# ----------------------------------------------------------------------------
def init_params(key, input_nc=3, output_nc=3, ngf=8):
    def conv_w(k, shape):
        return jax.random.normal(k, shape, jnp.float32) * 0.02

    keys = jax.random.split(key, 8)
    p = {}
    # outermost (block4): Conv2d(input_nc, ngf), ConvTranspose2d(2ngf, out, bias)
    p["b4_down_w"] = conv_w(keys[0], (ngf, input_nc, 4, 4))
    p["b4_up_w"] = conv_w(keys[1], (2 * ngf, output_nc, 4, 4))
    p["b4_up_b"] = jnp.zeros((output_nc,), jnp.float32)
    # block3
    p["b3_down_w"] = conv_w(keys[2], (2 * ngf, ngf, 4, 4))
    p["b3_dn_g"], p["b3_dn_b"] = jnp.ones((2 * ngf,)), jnp.zeros((2 * ngf,))
    p["b3_up_w"] = conv_w(keys[3], (4 * ngf, ngf, 4, 4))
    p["b3_up_g"], p["b3_up_b"] = jnp.ones((ngf,)), jnp.zeros((ngf,))
    # block2
    p["b2_down_w"] = conv_w(keys[4], (2 * ngf, 2 * ngf, 4, 4))
    p["b2_dn_g"], p["b2_dn_b"] = jnp.ones((2 * ngf,)), jnp.zeros((2 * ngf,))
    p["b2_up_w"] = conv_w(keys[5], (4 * ngf, 2 * ngf, 4, 4))
    p["b2_up_g"], p["b2_up_b"] = jnp.ones((2 * ngf,)), jnp.zeros((2 * ngf,))
    # block1 (innermost)
    p["b1_down_w"] = conv_w(keys[6], (2 * ngf, 2 * ngf, 4, 4))
    p["b1_up_w"] = conv_w(keys[7], (2 * ngf, 2 * ngf, 4, 4))
    p["b1_up_g"], p["b1_up_b"] = jnp.ones((2 * ngf,)), jnp.zeros((2 * ngf,))
    return p


def make_part_unet2_forward(params, batch=2, height=16, width=16,
                            input_nc=3, output_nc=3, ngf=8):
    assert height == width and height % 16 == 0
    n = batch
    s0, s1, s2, s3, s4 = height, height // 2, height // 4, height // 8, height // 16
    c1, c2 = ngf, 2 * ngf

    # Pad final output channels so the store is lane dense (s0*cpad lanes = 128).
    cpad = output_nc
    if 128 % s0 == 0 and 128 // s0 >= output_nc:
        cpad = 128 // s0

    p = {k: np.asarray(v, np.float32) for k, v in params.items()}
    plan, consts = [], []
    stats = dict(flops=0, trans=0)

    def _bn_consts(gamma, beta, c, ow):
        consts.append(jnp.asarray(gamma[None, :].astype(np.float32)))      # (1, C)
        consts.append(jnp.asarray(beta[None, :].astype(np.float32)))       # (1, C)
        sel = np.tile(np.eye(c, dtype=np.float32), (ow, 1))                # (OWC, C)
        consts.append(jnp.asarray(sel))
        consts.append(jnp.asarray(np.ascontiguousarray(sel.T)))            # (C, OWC)

    def _count_flops(rows_in, rows_out, k_tot, owc):
        stats["flops"] += 2 * rows_in * k_tot * 4 * owc          # wide band matmul
        stats["flops"] += 4 * 2 * rows_out * rows_in * owc       # 4 gathers
        stats["flops"] += 8 * rows_out * owc                     # adds / epilogue

    def down_layer(name, w, h_in, act, src, out, bn=None):
        c_out = w.shape[0]
        h_out = h_in // 2
        rows_in, rows_out = n * h_in, n * h_out
        plan.append(dict(name=name, act=act, srcs=[src], bn=bn is not None,
                         bias=False, post="none", out=out,
                         bn_count=n * h_out * h_out))
        consts.append(jnp.asarray(_down_gather(n, h_in, h_out)))            # f32
        band4 = _down_band(w, h_in, h_out)                                  # (4,K,N)
        consts.append(jnp.asarray(_kh_cat(band4), jnp.bfloat16))
        if bn is not None:
            _bn_consts(bn[0], bn[1], c_out, h_out)
            stats["trans"] += c_out
        _count_flops(rows_in, rows_out, band4.shape[1], band4.shape[2])

    def up_layer(name, w, h_in, act, srcs, splits, out, bn=None, bias=None,
                 c_out_pad=None, post="none"):
        c_out = w.shape[1]
        c_out_p = c_out if c_out_pad is None else c_out_pad
        h_out = h_in * 2
        rows_in, rows_out = n * h_in, n * h_out
        plan.append(dict(name=name, act=act, srcs=list(srcs), bn=bn is not None,
                         bias=bias is not None, post=post, out=out,
                         bn_count=n * h_out * h_out))
        consts.append(jnp.asarray(_up_gather(n, h_in, h_out)))               # f32
        per_src = [_up_band(w, h_in, h_out, lo, hi, c_out_p) for lo, hi in splits]
        band4 = np.concatenate(per_src, axis=1)                              # (4,Ktot,N)
        consts.append(jnp.asarray(_kh_cat(band4), jnp.bfloat16))
        if bn is not None:
            _bn_consts(bn[0], bn[1], c_out, h_out)
            stats["trans"] += c_out
        if bias is not None:
            b = np.zeros((c_out_p,), np.float32)
            b[:c_out] = bias
            consts.append(jnp.asarray(np.tile(b, h_out)[None, :]))
        if post == "tanh":
            stats["trans"] += rows_out * h_out * c_out_p
        _count_flops(rows_in, rows_out, band4.shape[1], band4.shape[2])

    # ----- encoder -----------------------------------------------------------
    down_layer("d4", p["b4_down_w"], s0, "none", "x", "y4")
    down_layer("d3", p["b3_down_w"], s1, "lrelu", "y4", "y3",
               bn=(p["b3_dn_g"], p["b3_dn_b"]))
    down_layer("d2", p["b2_down_w"], s2, "lrelu", "y3", "y2",
               bn=(p["b2_dn_g"], p["b2_dn_b"]))
    down_layer("d1", p["b1_down_w"], s3, "lrelu", "y2", "y1")
    # ----- decoder (skip concat = lane concat of slabs + concatenated bands) -
    up_layer("u1", p["b1_up_w"], s4, "relu", ["y1"], [(0, c2)], "u1",
             bn=(p["b1_up_g"], p["b1_up_b"]))
    up_layer("u2", p["b2_up_w"], s3, "relu", ["y2", "u1"],
             [(0, c2), (c2, 2 * c2)], "u2", bn=(p["b2_up_g"], p["b2_up_b"]))
    up_layer("u3", p["b3_up_w"], s2, "relu", ["y3", "u2"],
             [(0, c2), (c2, 2 * c2)], "u3", bn=(p["b3_up_g"], p["b3_up_b"]))
    up_layer("u4", p["b4_up_w"], s1, "relu", ["y4", "u3"],
             [(0, c1), (c1, 2 * c1)], "__out__", bias=p["b4_up_b"],
             c_out_pad=cpad, post="tanh")

    out_rows, out_lanes = n * s0, s0 * cpad
    in_bytes = (n * s0 * s0 * input_nc) * 4 + sum(
        int(np.prod(c.shape)) * int(np.dtype(c.dtype).itemsize) for c in consts)
    cost = pl.CostEstimate(
        flops=int(stats["flops"]),
        transcendentals=int(stats["trans"]),
        bytes_accessed=int(in_bytes + out_rows * out_lanes * 4),
    )

    fused = pl.pallas_call(
        functools.partial(_fused_kernel, plan=plan),
        out_shape=jax.ShapeDtypeStruct((out_rows, out_lanes), jnp.float32),
        in_specs=[pl.BlockSpec(memory_space=pltpu.MemorySpace.VMEM)]
        * (1 + len(consts)),
        out_specs=pl.BlockSpec(memory_space=pltpu.MemorySpace.VMEM),
        compiler_params=pltpu.CompilerParams(vmem_limit_bytes=32 << 20),
        cost_estimate=cost,
    )

    consts = tuple(consts)

    def forward(x):
        # NCHW -> (N*H, W*C) slab; the only per-call host glue besides the
        # final channel slice.
        x_slab = x.transpose(0, 2, 3, 1).reshape(n * s0, s0 * input_nc)
        out_slab = fused(x_slab, *consts)
        out = out_slab.reshape(n, s0, s0, cpad)[..., :output_nc]
        return out.transpose(0, 3, 1, 2)

    return jax.jit(forward)


if __name__ == "__main__":
    key = jax.random.PRNGKey(0)
    k_param, k_in = jax.random.split(key)
    params = init_params(k_param, input_nc=3, output_nc=3, ngf=8)
    x = jax.random.normal(k_in, (2, 3, 16, 16), jnp.float32)

    fwd = make_part_unet2_forward(params, batch=2, height=16, width=16,
                                  input_nc=3, output_nc=3, ngf=8)
    out = fwd(x)
    jax.block_until_ready(out)
    assert out.shape == (2, 3, 16, 16), out.shape
    assert bool(jnp.all(jnp.isfinite(out)))
    print("KERNEL_OK")
</pallas_src>

<mosaic_0001>
module attributes {stable_mosaic.version = 11 : i64} {
  func.func @_fused_kernel(%arg0: memref<32x48xf32, #tpu.memory_space<vmem>>, %arg1: memref<4x16x32xf32, #tpu.memory_space<vmem>>, %arg2: memref<48x256xbf16, #tpu.memory_space<vmem>>, %arg3: memref<4x8x16xf32, #tpu.memory_space<vmem>>, %arg4: memref<64x256xbf16, #tpu.memory_space<vmem>>, %arg5: memref<1x16xf32, #tpu.memory_space<vmem>>, %arg6: memref<1x16xf32, #tpu.memory_space<vmem>>, %arg7: memref<64x16xf32, #tpu.memory_space<vmem>>, %arg8: memref<16x64xf32, #tpu.memory_space<vmem>>, %arg9: memref<4x4x8xf32, #tpu.memory_space<vmem>>, %arg10: memref<64x128xbf16, #tpu.memory_space<vmem>>, %arg11: memref<1x16xf32, #tpu.memory_space<vmem>>, %arg12: memref<1x16xf32, #tpu.memory_space<vmem>>, %arg13: memref<32x16xf32, #tpu.memory_space<vmem>>, %arg14: memref<16x32xf32, #tpu.memory_space<vmem>>, %arg15: memref<4x2x4xf32, #tpu.memory_space<vmem>>, %arg16: memref<32x64xbf16, #tpu.memory_space<vmem>>, %arg17: memref<4x4x2xf32, #tpu.memory_space<vmem>>, %arg18: memref<16x128xbf16, #tpu.memory_space<vmem>>, %arg19: memref<1x16xf32, #tpu.memory_space<vmem>>, %arg20: memref<1x16xf32, #tpu.memory_space<vmem>>, %arg21: memref<32x16xf32, #tpu.memory_space<vmem>>, %arg22: memref<16x32xf32, #tpu.memory_space<vmem>>, %arg23: memref<4x8x4xf32, #tpu.memory_space<vmem>>, %arg24: memref<64x256xbf16, #tpu.memory_space<vmem>>, %arg25: memref<1x16xf32, #tpu.memory_space<vmem>>, %arg26: memref<1x16xf32, #tpu.memory_space<vmem>>, %arg27: memref<64x16xf32, #tpu.memory_space<vmem>>, %arg28: memref<16x64xf32, #tpu.memory_space<vmem>>, %arg29: memref<4x16x8xf32, #tpu.memory_space<vmem>>, %arg30: memref<128x256xbf16, #tpu.memory_space<vmem>>, %arg31: memref<1x8xf32, #tpu.memory_space<vmem>>, %arg32: memref<1x8xf32, #tpu.memory_space<vmem>>, %arg33: memref<64x8xf32, #tpu.memory_space<vmem>>, %arg34: memref<8x64xf32, #tpu.memory_space<vmem>>, %arg35: memref<4x32x16xf32, #tpu.memory_space<vmem>>, %arg36: memref<128x512xbf16, #tpu.memory_space<vmem>>, %arg37: memref<1x128xf32, #tpu.memory_space<vmem>>, %arg38: memref<32x128xf32, #tpu.memory_space<vmem>>) attributes {dimension_semantics = [], scalar_prefetch = 0 : i64, scratch_operands = 0 : i64, tpu.core_type = #tpu.core_type<tc>} {
    %c0 = arith.constant 0 : index
    %c0_0 = arith.constant 0 : index
    %0 = vector.load %arg0[%c0, %c0_0] : memref<32x48xf32, #tpu.memory_space<vmem>>, vector<32x48xf32>
    %c0_1 = arith.constant 0 : index
    %c0_2 = arith.constant 0 : index
    %c0_3 = arith.constant 0 : index
    %1 = vector.load %arg1[%c0_1, %c0_2, %c0_3] : memref<4x16x32xf32, #tpu.memory_space<vmem>>, vector<4x16x32xf32>
    %c0_4 = arith.constant 0 : index
    %c0_5 = arith.constant 0 : index
    %2 = vector.load %arg2[%c0_4, %c0_5] : memref<48x256xbf16, #tpu.memory_space<vmem>>, vector<48x256xbf16>
    %3 = arith.truncf %0 : vector<32x48xf32> to vector<32x48xbf16>
    %cst = arith.constant dense<0.000000e+00> : vector<32x256xf32>
    %4 = tpu.matmul %3, %2, %cst {dimension_numbers = #tpu.dot_dimension_numbers<[1], [0], [0], [1], [0, 0, 1, 1], [], []>} : vector<32x48xbf16>, vector<48x256xbf16>, vector<32x256xf32> -> vector<32x256xf32>
    %5 = vector.extract_strided_slice %1 {offsets = [0, 0, 0], sizes = [1, 16, 32], strides = [1, 1, 1]} : vector<4x16x32xf32> to vector<1x16x32xf32>
    %6 = vector.shape_cast %5 : vector<1x16x32xf32> to vector<16x32xf32>
    %7 = vector.extract_strided_slice %4 {offsets = [0, 0], sizes = [32, 64], strides = [1, 1]} : vector<32x256xf32> to vector<32x64xf32>
    %cst_6 = arith.constant dense<0.000000e+00> : vector<16x64xf32>
    %8 = tpu.matmul %6, %7, %cst_6 {dimension_numbers = #tpu.dot_dimension_numbers<[1], [0], [0], [1], [0, 0, 1, 1], [], []>} : vector<16x32xf32>, vector<32x64xf32>, vector<16x64xf32> -> vector<16x64xf32>
    %9 = vector.extract_strided_slice %1 {offsets = [1, 0, 0], sizes = [1, 16, 32], strides = [1, 1, 1]} : vector<4x16x32xf32> to vector<1x16x32xf32>
    %10 = vector.shape_cast %9 : vector<1x16x32xf32> to vector<16x32xf32>
    %11 = vector.extract_strided_slice %4 {offsets = [0, 64], sizes = [32, 64], strides = [1, 1]} : vector<32x256xf32> to vector<32x64xf32>
    %cst_7 = arith.constant dense<0.000000e+00> : vector<16x64xf32>
    %12 = tpu.matmul %10, %11, %cst_7 {dimension_numbers = #tpu.dot_dimension_numbers<[1], [0], [0], [1], [0, 0, 1, 1], [], []>} : vector<16x32xf32>, vector<32x64xf32>, vector<16x64xf32> -> vector<16x64xf32>
    %13 = vector.extract_strided_slice %1 {offsets = [2, 0, 0], sizes = [1, 16, 32], strides = [1, 1, 1]} : vector<4x16x32xf32> to vector<1x16x32xf32>
    %14 = vector.shape_cast %13 : vector<1x16x32xf32> to vector<16x32xf32>
    %15 = vector.extract_strided_slice %4 {offsets = [0, 128], sizes = [32, 64], strides = [1, 1]} : vector<32x256xf32> to vector<32x64xf32>
    %cst_8 = arith.constant dense<0.000000e+00> : vector<16x64xf32>
    %16 = tpu.matmul %14, %15, %cst_8 {dimension_numbers = #tpu.dot_dimension_numbers<[1], [0], [0], [1], [0, 0, 1, 1], [], []>} : vector<16x32xf32>, vector<32x64xf32>, vector<16x64xf32> -> vector<16x64xf32>
    %17 = vector.extract_strided_slice %1 {offsets = [3, 0, 0], sizes = [1, 16, 32], strides = [1, 1, 1]} : vector<4x16x32xf32> to vector<1x16x32xf32>
    %18 = vector.shape_cast %17 : vector<1x16x32xf32> to vector<16x32xf32>
    %19 = vector.extract_strided_slice %4 {offsets = [0, 192], sizes = [32, 64], strides = [1, 1]} : vector<32x256xf32> to vector<32x64xf32>
    %cst_9 = arith.constant dense<0.000000e+00> : vector<16x64xf32>
    %20 = tpu.matmul %18, %19, %cst_9 {dimension_numbers = #tpu.dot_dimension_numbers<[1], [0], [0], [1], [0, 0, 1, 1], [], []>} : vector<16x32xf32>, vector<32x64xf32>, vector<16x64xf32> -> vector<16x64xf32>
    %21 = arith.addf %8, %12 : vector<16x64xf32>
    %22 = arith.addf %16, %20 : vector<16x64xf32>
    %23 = arith.addf %21, %22 : vector<16x64xf32>
    %c0_10 = arith.constant 0 : index
    %c0_11 = arith.constant 0 : index
    %c0_12 = arith.constant 0 : index
    %24 = vector.load %arg3[%c0_10, %c0_11, %c0_12] : memref<4x8x16xf32, #tpu.memory_space<vmem>>, vector<4x8x16xf32>
    %c0_13 = arith.constant 0 : index
    %c0_14 = arith.constant 0 : index
    %25 = vector.load %arg4[%c0_13, %c0_14] : memref<64x256xbf16, #tpu.memory_space<vmem>>, vector<64x256xbf16>
    %c0_15 = arith.constant 0 : index
    %c0_16 = arith.constant 0 : index
    %26 = vector.load %arg5[%c0_15, %c0_16] : memref<1x16xf32, #tpu.memory_space<vmem>>, vector<1x16xf32>
    %c0_17 = arith.constant 0 : index
    %c0_18 = arith.constant 0 : index
    %27 = vector.load %arg6[%c0_17, %c0_18] : memref<1x16xf32, #tpu.memory_space<vmem>>, vector<1x16xf32>
    %c0_19 = arith.constant 0 : index
    %c0_20 = arith.constant 0 : index
    %28 = vector.load %arg7[%c0_19, %c0_20] : memref<64x16xf32, #tpu.memory_space<vmem>>, vector<64x16xf32>
    %c0_21 = arith.constant 0 : index
    %c0_22 = arith.constant 0 : index
    %29 = vector.load %arg8[%c0_21, %c0_22] : memref<16x64xf32, #tpu.memory_space<vmem>>, vector<16x64xf32>
    %cst_23 = arith.constant 2.000000e-01 : f32
    %30 = vector.broadcast %cst_23 : f32 to vector<16x64xf32>
    %31 = arith.mulf %30, %23 : vector<16x64xf32>
    %32 = arith.maximumf %23, %31 : vector<16x64xf32>
    %33 = arith.truncf %32 : vector<16x64xf32> to vector<16x64xbf16>
    %cst_24 = arith.constant dense<0.000000e+00> : vector<16x256xf32>
    %34 = tpu.matmul %33, %25, %cst_24 {dimension_numbers = #tpu.dot_dimension_numbers<[1], [0], [0], [1], [0, 0, 1, 1], [], []>} : vector<16x64xbf16>, vector<64x256xbf16>, vector<16x256xf32> -> vector<16x256xf32>
    %35 = vector.extract_strided_slice %24 {offsets = [0, 0, 0], sizes = [1, 8, 16], strides = [1, 1, 1]} : vector<4x8x16xf32> to vector<1x8x16xf32>
    %36 = vector.shape_cast %35 : vector<1x8x16xf32> to vector<8x16xf32>
    %37 = vector.extract_strided_slice %34 {offsets = [0, 0], sizes = [16, 64], strides = [1, 1]} : vector<16x256xf32> to vector<16x64xf32>
    %cst_25 = arith.constant dense<0.000000e+00> : vector<8x64xf32>
    %38 = tpu.matmul %36, %37, %cst_25 {dimension_numbers = #tpu.dot_dimension_numbers<[1], [0], [0], [1], [0, 0, 1, 1], [], []>} : vector<8x16xf32>, vector<16x64xf32>, vector<8x64xf32> -> vector<8x64xf32>
    %39 = vector.extract_strided_slice %24 {offsets = [1, 0, 0], sizes = [1, 8, 16], strides = [1, 1, 1]} : vector<4x8x16xf32> to vector<1x8x16xf32>
    %40 = vector.shape_cast %39 : vector<1x8x16xf32> to vector<8x16xf32>
    %41 = vector.extract_strided_slice %34 {offsets = [0, 64], sizes = [16, 64], strides = [1, 1]} : vector<16x256xf32> to vector<16x64xf32>
    %cst_26 = arith.constant dense<0.000000e+00> : vector<8x64xf32>
    %42 = tpu.matmul %40, %41, %cst_26 {dimension_numbers = #tpu.dot_dimension_numbers<[1], [0], [0], [1], [0, 0, 1, 1], [], []>} : vector<8x16xf32>, vector<16x64xf32>, vector<8x64xf32> -> vector<8x64xf32>
    %43 = vector.extract_strided_slice %24 {offsets = [2, 0, 0], sizes = [1, 8, 16], strides = [1, 1, 1]} : vector<4x8x16xf32> to vector<1x8x16xf32>
    %44 = vector.shape_cast %43 : vector<1x8x16xf32> to vector<8x16xf32>
    %45 = vector.extract_strided_slice %34 {offsets = [0, 128], sizes = [16, 64], strides = [1, 1]} : vector<16x256xf32> to vector<16x64xf32>
    %cst_27 = arith.constant dense<0.000000e+00> : vector<8x64xf32>
    %46 = tpu.matmul %44, %45, %cst_27 {dimension_numbers = #tpu.dot_dimension_numbers<[1], [0], [0], [1], [0, 0, 1, 1], [], []>} : vector<8x16xf32>, vector<16x64xf32>, vector<8x64xf32> -> vector<8x64xf32>
    %47 = vector.extract_strided_slice %24 {offsets = [3, 0, 0], sizes = [1, 8, 16], strides = [1, 1, 1]} : vector<4x8x16xf32> to vector<1x8x16xf32>
    %48 = vector.shape_cast %47 : vector<1x8x16xf32> to vector<8x16xf32>
    %49 = vector.extract_strided_slice %34 {offsets = [0, 192], sizes = [16, 64], strides = [1, 1]} : vector<16x256xf32> to vector<16x64xf32>
    %cst_28 = arith.constant dense<0.000000e+00> : vector<8x64xf32>
    %50 = tpu.matmul %48, %49, %cst_28 {dimension_numbers = #tpu.dot_dimension_numbers<[1], [0], [0], [1], [0, 0, 1, 1], [], []>} : vector<8x16xf32>, vector<16x64xf32>, vector<8x64xf32> -> vector<8x64xf32>
    %51 = arith.addf %38, %42 : vector<8x64xf32>
    %52 = arith.addf %46, %50 : vector<8x64xf32>
    %53 = arith.addf %51, %52 : vector<8x64xf32>
    %cst_29 = arith.constant dense<0.000000e+00> : vector<64xf32>
    %54 = vector.multi_reduction <add>, %53, %cst_29 [0] : vector<8x64xf32> to vector<64xf32>
    %55 = vector.shape_cast %54 : vector<64xf32> to vector<1x64xf32>
    %cst_30 = arith.constant dense<0.000000e+00> : vector<1x16xf32>
    %56 = tpu.matmul %55, %28, %cst_30 {dimension_numbers = #tpu.dot_dimension_numbers<[1], [0], [0], [1], [0, 0, 1, 1], [], []>} : vector<1x64xf32>, vector<64x16xf32>, vector<1x16xf32> -> vector<1x16xf32>
    %57 = arith.mulf %53, %53 : vector<8x64xf32>
    %cst_31 = arith.constant dense<0.000000e+00> : vector<64xf32>
    %58 = vector.multi_reduction <add>, %57, %cst_31 [0] : vector<8x64xf32> to vector<64xf32>
    %59 = vector.shape_cast %58 : vector<64xf32> to vector<1x64xf32>
    %cst_32 = arith.constant dense<0.000000e+00> : vector<1x16xf32>
    %60 = tpu.matmul %59, %28, %cst_32 {dimension_numbers = #tpu.dot_dimension_numbers<[1], [0], [0], [1], [0, 0, 1, 1], [], []>} : vector<1x64xf32>, vector<64x16xf32>, vector<1x16xf32> -> vector<1x16xf32>
    %cst_33 = arith.constant 3.125000e-02 : f32
    %61 = vector.broadcast %cst_33 : f32 to vector<1x16xf32>
    %62 = arith.mulf %56, %61 : vector<1x16xf32>
    %cst_34 = arith.constant 3.125000e-02 : f32
    %63 = vector.broadcast %cst_34 : f32 to vector<1x16xf32>
    %64 = arith.mulf %60, %63 : vector<1x16xf32>
    %65 = arith.mulf %62, %62 : vector<1x16xf32>
    %66 = arith.subf %64, %65 : vector<1x16xf32>
    %cst_35 = arith.constant 0.000000e+00 : f32
    %67 = vector.broadcast %cst_35 : f32 to vector<1x16xf32>
    %68 = arith.maximumf %66, %67 : vector<1x16xf32>
    %cst_36 = arith.constant 9.99999974E-6 : f32
    %69 = vector.broadcast %cst_36 : f32 to vector<1x16xf32>
    %70 = arith.addf %68, %69 : vector<1x16xf32>
    %71 = math.rsqrt %70 : vector<1x16xf32>
    %72 = arith.mulf %26, %71 : vector<1x16xf32>
    %73 = arith.mulf %62, %72 : vector<1x16xf32>
    %74 = arith.subf %27, %73 : vector<1x16xf32>
    %cst_37 = arith.constant dense<0.000000e+00> : vector<1x64xf32>
    %75 = tpu.matmul %72, %29, %cst_37 {dimension_numbers = #tpu.dot_dimension_numbers<[1], [0], [0], [1], [0, 0, 1, 1], [], []>} : vector<1x16xf32>, vector<16x64xf32>, vector<1x64xf32> -> vector<1x64xf32>
    %cst_38 = arith.constant dense<0.000000e+00> : vector<1x64xf32>
    %76 = tpu.matmul %74, %29, %cst_38 {dimension_numbers = #tpu.dot_dimension_numbers<[1], [0], [0], [1], [0, 0, 1, 1], [], []>} : vector<1x16xf32>, vector<16x64xf32>, vector<1x64xf32> -> vector<1x64xf32>
    %77 = vector.broadcast %75 : vector<1x64xf32> to vector<8x64xf32>
    %78 = arith.mulf %53, %77 : vector<8x64xf32>
    %79 = vector.broadcast %76 : vector<1x64xf32> to vector<8x64xf32>
    %80 = arith.addf %78, %79 : vector<8x64xf32>
    %c0_39 = arith.constant 0 : index
    %c0_40 = arith.constant 0 : index
    %c0_41 = arith.constant 0 : index
    %81 = vector.load %arg9[%c0_39, %c0_40, %c0_41] : memref<4x4x8xf32, #tpu.memory_space<vmem>>, vector<4x4x8xf32>
    %c0_42 = arith.constant 0 : index
    %c0_43 = arith.constant 0 : index
    %82 = vector.load %arg10[%c0_42, %c0_43] : memref<64x128xbf16, #tpu.memory_space<vmem>>, vector<64x128xbf16>
    %c0_44 = arith.constant 0 : index
    %c0_45 = arith.constant 0 : index
    %83 = vector.load %arg11[%c0_44, %c0_45] : memref<1x16xf32, #tpu.memory_space<vmem>>, vector<1x16xf32>
    %c0_46 = arith.constant 0 : index
    %c0_47 = arith.constant 0 : index
    %84 = vector.load %arg12[%c0_46, %c0_47] : memref<1x16xf32, #tpu.memory_space<vmem>>, vector<1x16xf32>
    %c0_48 = arith.constant 0 : index
    %c0_49 = arith.constant 0 : index
    %85 = vector.load %arg13[%c0_48, %c0_49] : memref<32x16xf32, #tpu.memory_space<vmem>>, vector<32x16xf32>
    %c0_50 = arith.constant 0 : index
    %c0_51 = arith.constant 0 : index
    %86 = vector.load %arg14[%c0_50, %c0_51] : memref<16x32xf32, #tpu.memory_space<vmem>>, vector<16x32xf32>
    %cst_52 = arith.constant 2.000000e-01 : f32
    %87 = vector.broadcast %cst_52 : f32 to vector<8x64xf32>
    %88 = arith.mulf %87, %80 : vector<8x64xf32>
    %89 = arith.maximumf %80, %88 : vector<8x64xf32>
    %90 = arith.truncf %89 : vector<8x64xf32> to vector<8x64xbf16>
    %cst_53 = arith.constant dense<0.000000e+00> : vector<8x128xf32>
    %91 = tpu.matmul %90, %82, %cst_53 {dimension_numbers = #tpu.dot_dimension_numbers<[1], [0], [0], [1], [0, 0, 1, 1], [], []>} : vector<8x64xbf16>, vector<64x128xbf16>, vector<8x128xf32> -> vector<8x128xf32>
    %92 = vector.extract_strided_slice %81 {offsets = [0, 0, 0], sizes = [1, 4, 8], strides = [1, 1, 1]} : vector<4x4x8xf32> to vector<1x4x8xf32>
    %93 = vector.shape_cast %92 : vector<1x4x8xf32> to vector<4x8xf32>
    %94 = vector.extract_strided_slice %91 {offsets = [0, 0], sizes = [8, 32], strides = [1, 1]} : vector<8x128xf32> to vector<8x32xf32>
    %cst_54 = arith.constant dense<0.000000e+00> : vector<4x32xf32>
    %95 = tpu.matmul %93, %94, %cst_54 {dimension_numbers = #tpu.dot_dimension_numbers<[1], [0], [0], [1], [0, 0, 1, 1], [], []>} : vector<4x8xf32>, vector<8x32xf32>, vector<4x32xf32> -> vector<4x32xf32>
    %96 = vector.extract_strided_slice %81 {offsets = [1, 0, 0], sizes = [1, 4, 8], strides = [1, 1, 1]} : vector<4x4x8xf32> to vector<1x4x8xf32>
    %97 = vector.shape_cast %96 : vector<1x4x8xf32> to vector<4x8xf32>
    %98 = vector.extract_strided_slice %91 {offsets = [0, 32], sizes = [8, 32], strides = [1, 1]} : vector<8x128xf32> to vector<8x32xf32>
    %cst_55 = arith.constant dense<0.000000e+00> : vector<4x32xf32>
    %99 = tpu.matmul %97, %98, %cst_55 {dimension_numbers = #tpu.dot_dimension_numbers<[1], [0], [0], [1], [0, 0, 1, 1], [], []>} : vector<4x8xf32>, vector<8x32xf32>, vector<4x32xf32> -> vector<4x32xf32>
    %100 = vector.extract_strided_slice %81 {offsets = [2, 0, 0], sizes = [1, 4, 8], strides = [1, 1, 1]} : vector<4x4x8xf32> to vector<1x4x8xf32>
    %101 = vector.shape_cast %100 : vector<1x4x8xf32> to vector<4x8xf32>
    %102 = vector.extract_strided_slice %91 {offsets = [0, 64], sizes = [8, 32], strides = [1, 1]} : vector<8x128xf32> to vector<8x32xf32>
    %cst_56 = arith.constant dense<0.000000e+00> : vector<4x32xf32>
    %103 = tpu.matmul %101, %102, %cst_56 {dimension_numbers = #tpu.dot_dimension_numbers<[1], [0], [0], [1], [0, 0, 1, 1], [], []>} : vector<4x8xf32>, vector<8x32xf32>, vector<4x32xf32> -> vector<4x32xf32>
    %104 = vector.extract_strided_slice %81 {offsets = [3, 0, 0], sizes = [1, 4, 8], strides = [1, 1, 1]} : vector<4x4x8xf32> to vector<1x4x8xf32>
    %105 = vector.shape_cast %104 : vector<1x4x8xf32> to vector<4x8xf32>
    %106 = vector.extract_strided_slice %91 {offsets = [0, 96], sizes = [8, 32], strides = [1, 1]} : vector<8x128xf32> to vector<8x32xf32>
    %cst_57 = arith.constant dense<0.000000e+00> : vector<4x32xf32>
    %107 = tpu.matmul %105, %106, %cst_57 {dimension_numbers = #tpu.dot_dimension_numbers<[1], [0], [0], [1], [0, 0, 1, 1], [], []>} : vector<4x8xf32>, vector<8x32xf32>, vector<4x32xf32> -> vector<4x32xf32>
    %108 = arith.addf %95, %99 : vector<4x32xf32>
    %109 = arith.addf %103, %107 : vector<4x32xf32>
    %110 = arith.addf %108, %109 : vector<4x32xf32>
    %cst_58 = arith.constant dense<0.000000e+00> : vector<32xf32>
    %111 = vector.multi_reduction <add>, %110, %cst_58 [0] : vector<4x32xf32> to vector<32xf32>
    %112 = vector.shape_cast %111 : vector<32xf32> to vector<1x32xf32>
    %cst_59 = arith.constant dense<0.000000e+00> : vector<1x16xf32>
    %113 = tpu.matmul %112, %85, %cst_59 {dimension_numbers = #tpu.dot_dimension_numbers<[1], [0], [0], [1], [0, 0, 1, 1], [], []>} : vector<1x32xf32>, vector<32x16xf32>, vector<1x16xf32> -> vector<1x16xf32>
    %114 = arith.mulf %110, %110 : vector<4x32xf32>
    %cst_60 = arith.constant dense<0.000000e+00> : vector<32xf32>
    %115 = vector.multi_reduction <add>, %114, %cst_60 [0] : vector<4x32xf32> to vector<32xf32>
    %116 = vector.shape_cast %115 : vector<32xf32> to vector<1x32xf32>
    %cst_61 = arith.constant dense<0.000000e+00> : vector<1x16xf32>
    %117 = tpu.matmul %116, %85, %cst_61 {dimension_numbers = #tpu.dot_dimension_numbers<[1], [0], [0], [1], [0, 0, 1, 1], [], []>} : vector<1x32xf32>, vector<32x16xf32>, vector<1x16xf32> -> vector<1x16xf32>
    %cst_62 = arith.constant 1.250000e-01 : f32
    %118 = vector.broadcast %cst_62 : f32 to vector<1x16xf32>
    %119 = arith.mulf %113, %118 : vector<1x16xf32>
    %cst_63 = arith.constant 1.250000e-01 : f32
    %120 = vector.broadcast %cst_63 : f32 to vector<1x16xf32>
    %121 = arith.mulf %117, %120 : vector<1x16xf32>
    %122 = arith.mulf %119, %119 : vector<1x16xf32>
    %123 = arith.subf %121, %122 : vector<1x16xf32>
    %cst_64 = arith.constant 0.000000e+00 : f32
    %124 = vector.broadcast %cst_64 : f32 to vector<1x16xf32>
    %125 = arith.maximumf %123, %124 : vector<1x16xf32>
    %cst_65 = arith.constant 9.99999974E-6 : f32
    %126 = vector.broadcast %cst_65 : f32 to vector<1x16xf32>
    %127 = arith.addf %125, %126 : vector<1x16xf32>
    %128 = math.rsqrt %127 : vector<1x16xf32>
    %129 = arith.mulf %83, %128 : vector<1x16xf32>
    %130 = arith.mulf %119, %129 : vector<1x16xf32>
    %131 = arith.subf %84, %130 : vector<1x16xf32>
    %cst_66 = arith.constant dense<0.000000e+00> : vector<1x32xf32>
    %132 = tpu.matmul %129, %86, %cst_66 {dimension_numbers = #tpu.dot_dimension_numbers<[1], [0], [0], [1], [0, 0, 1, 1], [], []>} : vector<1x16xf32>, vector<16x32xf32>, vector<1x32xf32> -> vector<1x32xf32>
    %cst_67 = arith.constant dense<0.000000e+00> : vector<1x32xf32>
    %133 = tpu.matmul %131, %86, %cst_67 {dimension_numbers = #tpu.dot_dimension_numbers<[1], [0], [0], [1], [0, 0, 1, 1], [], []>} : vector<1x16xf32>, vector<16x32xf32>, vector<1x32xf32> -> vector<1x32xf32>
    %134 = vector.broadcast %132 : vector<1x32xf32> to vector<4x32xf32>
    %135 = arith.mulf %110, %134 : vector<4x32xf32>
    %136 = vector.broadcast %133 : vector<1x32xf32> to vector<4x32xf32>
    %137 = arith.addf %135, %136 : vector<4x32xf32>
    %c0_68 = arith.constant 0 : index
    %c0_69 = arith.constant 0 : index
    %c0_70 = arith.constant 0 : index
    %138 = vector.load %arg15[%c0_68, %c0_69, %c0_70] : memref<4x2x4xf32, #tpu.memory_space<vmem>>, vector<4x2x4xf32>
    %c0_71 = arith.constant 0 : index
    %c0_72 = arith.constant 0 : index
    %139 = vector.load %arg16[%c0_71, %c0_72] : memref<32x64xbf16, #tpu.memory_space<vmem>>, vector<32x64xbf16>
    %cst_73 = arith.constant 2.000000e-01 : f32
    %140 = vector.broadcast %cst_73 : f32 to vector<4x32xf32>
    %141 = arith.mulf %140, %137 : vector<4x32xf32>
    %142 = arith.maximumf %137, %141 : vector<4x32xf32>
    %143 = arith.truncf %142 : vector<4x32xf32> to vector<4x32xbf16>
    %cst_74 = arith.constant dense<0.000000e+00> : vector<4x64xf32>
    %144 = tpu.matmul %143, %139, %cst_74 {dimension_numbers = #tpu.dot_dimension_numbers<[1], [0], [0], [1], [0, 0, 1, 1], [], []>} : vector<4x32xbf16>, vector<32x64xbf16>, vector<4x64xf32> -> vector<4x64xf32>
    %145 = vector.extract_strided_slice %138 {offsets = [0, 0, 0], sizes = [1, 2, 4], strides = [1, 1, 1]} : vector<4x2x4xf32> to vector<1x2x4xf32>
    %146 = vector.shape_cast %145 : vector<1x2x4xf32> to vector<2x4xf32>
    %147 = vector.extract_strided_slice %144 {offsets = [0, 0], sizes = [4, 16], strides = [1, 1]} : vector<4x64xf32> to vector<4x16xf32>
    %cst_75 = arith.constant dense<0.000000e+00> : vector<2x16xf32>
    %148 = tpu.matmul %146, %147, %cst_75 {dimension_numbers = #tpu.dot_dimension_numbers<[1], [0], [0], [1], [0, 0, 1, 1], [], []>} : vector<2x4xf32>, vector<4x16xf32>, vector<2x16xf32> -> vector<2x16xf32>
    %149 = vector.extract_strided_slice %138 {offsets = [1, 0, 0], sizes = [1, 2, 4], strides = [1, 1, 1]} : vector<4x2x4xf32> to vector<1x2x4xf32>
    %150 = vector.shape_cast %149 : vector<1x2x4xf32> to vector<2x4xf32>
    %151 = vector.extract_strided_slice %144 {offsets = [0, 16], sizes = [4, 16], strides = [1, 1]} : vector<4x64xf32> to vector<4x16xf32>
    %cst_76 = arith.constant dense<0.000000e+00> : vector<2x16xf32>
    %152 = tpu.matmul %150, %151, %cst_76 {dimension_numbers = #tpu.dot_dimension_numbers<[1], [0], [0], [1], [0, 0, 1, 1], [], []>} : vector<2x4xf32>, vector<4x16xf32>, vector<2x16xf32> -> vector<2x16xf32>
    %153 = vector.extract_strided_slice %138 {offsets = [2, 0, 0], sizes = [1, 2, 4], strides = [1, 1, 1]} : vector<4x2x4xf32> to vector<1x2x4xf32>
    %154 = vector.shape_cast %153 : vector<1x2x4xf32> to vector<2x4xf32>
    %155 = vector.extract_strided_slice %144 {offsets = [0, 32], sizes = [4, 16], strides = [1, 1]} : vector<4x64xf32> to vector<4x16xf32>
    %cst_77 = arith.constant dense<0.000000e+00> : vector<2x16xf32>
    %156 = tpu.matmul %154, %155, %cst_77 {dimension_numbers = #tpu.dot_dimension_numbers<[1], [0], [0], [1], [0, 0, 1, 1], [], []>} : vector<2x4xf32>, vector<4x16xf32>, vector<2x16xf32> -> vector<2x16xf32>
    %157 = vector.extract_strided_slice %138 {offsets = [3, 0, 0], sizes = [1, 2, 4], strides = [1, 1, 1]} : vector<4x2x4xf32> to vector<1x2x4xf32>
    %158 = vector.shape_cast %157 : vector<1x2x4xf32> to vector<2x4xf32>
    %159 = vector.extract_strided_slice %144 {offsets = [0, 48], sizes = [4, 16], strides = [1, 1]} : vector<4x64xf32> to vector<4x16xf32>
    %cst_78 = arith.constant dense<0.000000e+00> : vector<2x16xf32>
    %160 = tpu.matmul %158, %159, %cst_78 {dimension_numbers = #tpu.dot_dimension_numbers<[1], [0], [0], [1], [0, 0, 1, 1], [], []>} : vector<2x4xf32>, vector<4x16xf32>, vector<2x16xf32> -> vector<2x16xf32>
    %161 = arith.addf %148, %152 : vector<2x16xf32>
    %162 = arith.addf %156, %160 : vector<2x16xf32>
    %163 = arith.addf %161, %162 : vector<2x16xf32>
    %c0_79 = arith.constant 0 : index
    %c0_80 = arith.constant 0 : index
    %c0_81 = arith.constant 0 : index
    %164 = vector.load %arg17[%c0_79, %c0_80, %c0_81] : memref<4x4x2xf32, #tpu.memory_space<vmem>>, vector<4x4x2xf32>
    %c0_82 = arith.constant 0 : index
    %c0_83 = arith.constant 0 : index
    %165 = vector.load %arg18[%c0_82, %c0_83] : memref<16x128xbf16, #tpu.memory_space<vmem>>, vector<16x128xbf16>
    %c0_84 = arith.constant 0 : index
    %c0_85 = arith.constant 0 : index
    %166 = vector.load %arg19[%c0_84, %c0_85] : memref<1x16xf32, #tpu.memory_space<vmem>>, vector<1x16xf32>
    %c0_86 = arith.constant 0 : index
    %c0_87 = arith.constant 0 : index
    %167 = vector.load %arg20[%c0_86, %c0_87] : memref<1x16xf32, #tpu.memory_space<vmem>>, vector<1x16xf32>
    %c0_88 = arith.constant 0 : index
    %c0_89 = arith.constant 0 : index
    %168 = vector.load %arg21[%c0_88, %c0_89] : memref<32x16xf32, #tpu.memory_space<vmem>>, vector<32x16xf32>
    %c0_90 = arith.constant 0 : index
    %c0_91 = arith.constant 0 : index
    %169 = vector.load %arg22[%c0_90, %c0_91] : memref<16x32xf32, #tpu.memory_space<vmem>>, vector<16x32xf32>
    %cst_92 = arith.constant 0.000000e+00 : f32
    %170 = vector.broadcast %cst_92 : f32 to vector<2x16xf32>
    %171 = arith.maximumf %163, %170 : vector<2x16xf32>
    %172 = arith.truncf %171 : vector<2x16xf32> to vector<2x16xbf16>
    %cst_93 = arith.constant dense<0.000000e+00> : vector<2x128xf32>
    %173 = tpu.matmul %172, %165, %cst_93 {dimension_numbers = #tpu.dot_dimension_numbers<[1], [0], [0], [1], [0, 0, 1, 1], [], []>} : vector<2x16xbf16>, vector<16x128xbf16>, vector<2x128xf32> -> vector<2x128xf32>
    %174 = vector.extract_strided_slice %164 {offsets = [0, 0, 0], sizes = [1, 4, 2], strides = [1, 1, 1]} : vector<4x4x2xf32> to vector<1x4x2xf32>
    %175 = vector.shape_cast %174 : vector<1x4x2xf32> to vector<4x2xf32>
    %176 = vector.extract_strided_slice %173 {offsets = [0, 0], sizes = [2, 32], strides = [1, 1]} : vector<2x128xf32> to vector<2x32xf32>
    %cst_94 = arith.constant dense<0.000000e+00> : vector<4x32xf32>
    %177 = tpu.matmul %175, %176, %cst_94 {dimension_numbers = #tpu.dot_dimension_numbers<[1], [0], [0], [1], [0, 0, 1, 1], [], []>} : vector<4x2xf32>, vector<2x32xf32>, vector<4x32xf32> -> vector<4x32xf32>
    %178 = vector.extract_strided_slice %164 {offsets = [1, 0, 0], sizes = [1, 4, 2], strides = [1, 1, 1]} : vector<4x4x2xf32> to vector<1x4x2xf32>
    %179 = vector.shape_cast %178 : vector<1x4x2xf32> to vector<4x2xf32>
    %180 = vector.extract_strided_slice %173 {offsets = [0, 32], sizes = [2, 32], strides = [1, 1]} : vector<2x128xf32> to vector<2x32xf32>
    %cst_95 = arith.constant dense<0.000000e+00> : vector<4x32xf32>
    %181 = tpu.matmul %179, %180, %cst_95 {dimension_numbers = #tpu.dot_dimension_numbers<[1], [0], [0], [1], [0, 0, 1, 1], [], []>} : vector<4x2xf32>, vector<2x32xf32>, vector<4x32xf32> -> vector<4x32xf32>
    %182 = vector.extract_strided_slice %164 {offsets = [2, 0, 0], sizes = [1, 4, 2], strides = [1, 1, 1]} : vector<4x4x2xf32> to vector<1x4x2xf32>
    %183 = vector.shape_cast %182 : vector<1x4x2xf32> to vector<4x2xf32>
    %184 = vector.extract_strided_slice %173 {offsets = [0, 64], sizes = [2, 32], strides = [1, 1]} : vector<2x128xf32> to vector<2x32xf32>
    %cst_96 = arith.constant dense<0.000000e+00> : vector<4x32xf32>
    %185 = tpu.matmul %183, %184, %cst_96 {dimension_numbers = #tpu.dot_dimension_numbers<[1], [0], [0], [1], [0, 0, 1, 1], [], []>} : vector<4x2xf32>, vector<2x32xf32>, vector<4x32xf32> -> vector<4x32xf32>
    %186 = vector.extract_strided_slice %164 {offsets = [3, 0, 0], sizes = [1, 4, 2], strides = [1, 1, 1]} : vector<4x4x2xf32> to vector<1x4x2xf32>
    %187 = vector.shape_cast %186 : vector<1x4x2xf32> to vector<4x2xf32>
    %188 = vector.extract_strided_slice %173 {offsets = [0, 96], sizes = [2, 32], strides = [1, 1]} : vector<2x128xf32> to vector<2x32xf32>
    %cst_97 = arith.constant dense<0.000000e+00> : vector<4x32xf32>
    %189 = tpu.matmul %187, %188, %cst_97 {dimension_numbers = #tpu.dot_dimension_numbers<[1], [0], [0], [1], [0, 0, 1, 1], [], []>} : vector<4x2xf32>, vector<2x32xf32>, vector<4x32xf32> -> vector<4x32xf32>
    %190 = arith.addf %177, %181 : vector<4x32xf32>
    %191 = arith.addf %185, %189 : vector<4x32xf32>
    %192 = arith.addf %190, %191 : vector<4x32xf32>
    %cst_98 = arith.constant dense<0.000000e+00> : vector<32xf32>
    %193 = vector.multi_reduction <add>, %192, %cst_98 [0] : vector<4x32xf32> to vector<32xf32>
    %194 = vector.shape_cast %193 : vector<32xf32> to vector<1x32xf32>
    %cst_99 = arith.constant dense<0.000000e+00> : vector<1x16xf32>
    %195 = tpu.matmul %194, %168, %cst_99 {dimension_numbers = #tpu.dot_dimension_numbers<[1], [0], [0], [1], [0, 0, 1, 1], [], []>} : vector<1x32xf32>, vector<32x16xf32>, vector<1x16xf32> -> vector<1x16xf32>
    %196 = arith.mulf %192, %192 : vector<4x32xf32>
    %cst_100 = arith.constant dense<0.000000e+00> : vector<32xf32>
    %197 = vector.multi_reduction <add>, %196, %cst_100 [0] : vector<4x32xf32> to vector<32xf32>
    %198 = vector.shape_cast %197 : vector<32xf32> to vector<1x32xf32>
    %cst_101 = arith.constant dense<0.000000e+00> : vector<1x16xf32>
    %199 = tpu.matmul %198, %168, %cst_101 {dimension_numbers = #tpu.dot_dimension_numbers<[1], [0], [0], [1], [0, 0, 1, 1], [], []>} : vector<1x32xf32>, vector<32x16xf32>, vector<1x16xf32> -> vector<1x16xf32>
    %cst_102 = arith.constant 1.250000e-01 : f32
    %200 = vector.broadcast %cst_102 : f32 to vector<1x16xf32>
    %201 = arith.mulf %195, %200 : vector<1x16xf32>
    %cst_103 = arith.constant 1.250000e-01 : f32
    %202 = vector.broadcast %cst_103 : f32 to vector<1x16xf32>
    %203 = arith.mulf %199, %202 : vector<1x16xf32>
    %204 = arith.mulf %201, %201 : vector<1x16xf32>
    %205 = arith.subf %203, %204 : vector<1x16xf32>
    %cst_104 = arith.constant 0.000000e+00 : f32
    %206 = vector.broadcast %cst_104 : f32 to vector<1x16xf32>
    %207 = arith.maximumf %205, %206 : vector<1x16xf32>
    %cst_105 = arith.constant 9.99999974E-6 : f32
    %208 = vector.broadcast %cst_105 : f32 to vector<1x16xf32>
    %209 = arith.addf %207, %208 : vector<1x16xf32>
    %210 = math.rsqrt %209 : vector<1x16xf32>
    %211 = arith.mulf %166, %210 : vector<1x16xf32>
    %212 = arith.mulf %201, %211 : vector<1x16xf32>
    %213 = arith.subf %167, %212 : vector<1x16xf32>
    %cst_106 = arith.constant dense<0.000000e+00> : vector<1x32xf32>
    %214 = tpu.matmul %211, %169, %cst_106 {dimension_numbers = #tpu.dot_dimension_numbers<[1], [0], [0], [1], [0, 0, 1, 1], [], []>} : vector<1x16xf32>, vector<16x32xf32>, vector<1x32xf32> -> vector<1x32xf32>
    %cst_107 = arith.constant dense<0.000000e+00> : vector<1x32xf32>
    %215 = tpu.matmul %213, %169, %cst_107 {dimension_numbers = #tpu.dot_dimension_numbers<[1], [0], [0], [1], [0, 0, 1, 1], [], []>} : vector<1x16xf32>, vector<16x32xf32>, vector<1x32xf32> -> vector<1x32xf32>
    %216 = vector.broadcast %214 : vector<1x32xf32> to vector<4x32xf32>
    %217 = arith.mulf %192, %216 : vector<4x32xf32>
    %218 = vector.broadcast %215 : vector<1x32xf32> to vector<4x32xf32>
    %219 = arith.addf %217, %218 : vector<4x32xf32>
    %c0_108 = arith.constant 0 : index
    %c0_109 = arith.constant 0 : index
    %c0_110 = arith.constant 0 : index
    %220 = vector.load %arg23[%c0_108, %c0_109, %c0_110] : memref<4x8x4xf32, #tpu.memory_space<vmem>>, vector<4x8x4xf32>
    %c0_111 = arith.constant 0 : index
    %c0_112 = arith.constant 0 : index
    %221 = vector.load %arg24[%c0_111, %c0_112] : memref<64x256xbf16, #tpu.memory_space<vmem>>, vector<64x256xbf16>
    %c0_113 = arith.constant 0 : index
    %c0_114 = arith.constant 0 : index
    %222 = vector.load %arg25[%c0_113, %c0_114] : memref<1x16xf32, #tpu.memory_space<vmem>>, vector<1x16xf32>
    %c0_115 = arith.constant 0 : index
    %c0_116 = arith.constant 0 : index
    %223 = vector.load %arg26[%c0_115, %c0_116] : memref<1x16xf32, #tpu.memory_space<vmem>>, vector<1x16xf32>
    %c0_117 = arith.constant 0 : index
    %c0_118 = arith.constant 0 : index
    %224 = vector.load %arg27[%c0_117, %c0_118] : memref<64x16xf32, #tpu.memory_space<vmem>>, vector<64x16xf32>
    %c0_119 = arith.constant 0 : index
    %c0_120 = arith.constant 0 : index
    %225 = vector.load %arg28[%c0_119, %c0_120] : memref<16x64xf32, #tpu.memory_space<vmem>>, vector<16x64xf32>
    %cst_121 = arith.constant 0.000000e+00 : f32
    %226 = vector.broadcast %cst_121 : f32 to vector<4x32xf32>
    %227 = arith.maximumf %137, %226 : vector<4x32xf32>
    %cst_122 = arith.constant 0.000000e+00 : f32
    %228 = vector.broadcast %cst_122 : f32 to vector<4x32xf32>
    %229 = arith.maximumf %219, %228 : vector<4x32xf32>
    %230 = tpu.concatenate %227, %229 in 1 : vector<4x32xf32>, vector<4x32xf32> -> vector<4x64xf32>
    %231 = arith.truncf %230 : vector<4x64xf32> to vector<4x64xbf16>
    %cst_123 = arith.constant dense<0.000000e+00> : vector<4x256xf32>
    %232 = tpu.matmul %231, %221, %cst_123 {dimension_numbers = #tpu.dot_dimension_numbers<[1], [0], [0], [1], [0, 0, 1, 1], [], []>} : vector<4x64xbf16>, vector<64x256xbf16>, vector<4x256xf32> -> vector<4x256xf32>
    %233 = vector.extract_strided_slice %220 {offsets = [0, 0, 0], sizes = [1, 8, 4], strides = [1, 1, 1]} : vector<4x8x4xf32> to vector<1x8x4xf32>
    %234 = vector.shape_cast %233 : vector<1x8x4xf32> to vector<8x4xf32>
    %235 = vector.extract_strided_slice %232 {offsets = [0, 0], sizes = [4, 64], strides = [1, 1]} : vector<4x256xf32> to vector<4x64xf32>
    %cst_124 = arith.constant dense<0.000000e+00> : vector<8x64xf32>
    %236 = tpu.matmul %234, %235, %cst_124 {dimension_numbers = #tpu.dot_dimension_numbers<[1], [0], [0], [1], [0, 0, 1, 1], [], []>} : vector<8x4xf32>, vector<4x64xf32>, vector<8x64xf32> -> vector<8x64xf32>
    %237 = vector.extract_strided_slice %220 {offsets = [1, 0, 0], sizes = [1, 8, 4], strides = [1, 1, 1]} : vector<4x8x4xf32> to vector<1x8x4xf32>
    %238 = vector.shape_cast %237 : vector<1x8x4xf32> to vector<8x4xf32>
    %239 = vector.extract_strided_slice %232 {offsets = [0, 64], sizes = [4, 64], strides = [1, 1]} : vector<4x256xf32> to vector<4x64xf32>
    %cst_125 = arith.constant dense<0.000000e+00> : vector<8x64xf32>
    %240 = tpu.matmul %238, %239, %cst_125 {dimension_numbers = #tpu.dot_dimension_numbers<[1], [0], [0], [1], [0, 0, 1, 1], [], []>} : vector<8x4xf32>, vector<4x64xf32>, vector<8x64xf32> -> vector<8x64xf32>
    %241 = vector.extract_strided_slice %220 {offsets = [2, 0, 0], sizes = [1, 8, 4], strides = [1, 1, 1]} : vector<4x8x4xf32> to vector<1x8x4xf32>
    %242 = vector.shape_cast %241 : vector<1x8x4xf32> to vector<8x4xf32>
    %243 = vector.extract_strided_slice %232 {offsets = [0, 128], sizes = [4, 64], strides = [1, 1]} : vector<4x256xf32> to vector<4x64xf32>
    %cst_126 = arith.constant dense<0.000000e+00> : vector<8x64xf32>
    %244 = tpu.matmul %242, %243, %cst_126 {dimension_numbers = #tpu.dot_dimension_numbers<[1], [0], [0], [1], [0, 0, 1, 1], [], []>} : vector<8x4xf32>, vector<4x64xf32>, vector<8x64xf32> -> vector<8x64xf32>
    %245 = vector.extract_strided_slice %220 {offsets = [3, 0, 0], sizes = [1, 8, 4], strides = [1, 1, 1]} : vector<4x8x4xf32> to vector<1x8x4xf32>
    %246 = vector.shape_cast %245 : vector<1x8x4xf32> to vector<8x4xf32>
    %247 = vector.extract_strided_slice %232 {offsets = [0, 192], sizes = [4, 64], strides = [1, 1]} : vector<4x256xf32> to vector<4x64xf32>
    %cst_127 = arith.constant dense<0.000000e+00> : vector<8x64xf32>
    %248 = tpu.matmul %246, %247, %cst_127 {dimension_numbers = #tpu.dot_dimension_numbers<[1], [0], [0], [1], [0, 0, 1, 1], [], []>} : vector<8x4xf32>, vector<4x64xf32>, vector<8x64xf32> -> vector<8x64xf32>
    %249 = arith.addf %236, %240 : vector<8x64xf32>
    %250 = arith.addf %244, %248 : vector<8x64xf32>
    %251 = arith.addf %249, %250 : vector<8x64xf32>
    %cst_128 = arith.constant dense<0.000000e+00> : vector<64xf32>
    %252 = vector.multi_reduction <add>, %251, %cst_128 [0] : vector<8x64xf32> to vector<64xf32>
    %253 = vector.shape_cast %252 : vector<64xf32> to vector<1x64xf32>
    %cst_129 = arith.constant dense<0.000000e+00> : vector<1x16xf32>
    %254 = tpu.matmul %253, %224, %cst_129 {dimension_numbers = #tpu.dot_dimension_numbers<[1], [0], [0], [1], [0, 0, 1, 1], [], []>} : vector<1x64xf32>, vector<64x16xf32>, vector<1x16xf32> -> vector<1x16xf32>
    %255 = arith.mulf %251, %251 : vector<8x64xf32>
    %cst_130 = arith.constant dense<0.000000e+00> : vector<64xf32>
    %256 = vector.multi_reduction <add>, %255, %cst_130 [0] : vector<8x64xf32> to vector<64xf32>
    %257 = vector.shape_cast %256 : vector<64xf32> to vector<1x64xf32>
    %cst_131 = arith.constant dense<0.000000e+00> : vector<1x16xf32>
    %258 = tpu.matmul %257, %224, %cst_131 {dimension_numbers = #tpu.dot_dimension_numbers<[1], [0], [0], [1], [0, 0, 1, 1], [], []>} : vector<1x64xf32>, vector<64x16xf32>, vector<1x16xf32> -> vector<1x16xf32>
    %cst_132 = arith.constant 3.125000e-02 : f32
    %259 = vector.broadcast %cst_132 : f32 to vector<1x16xf32>
    %260 = arith.mulf %254, %259 : vector<1x16xf32>
    %cst_133 = arith.constant 3.125000e-02 : f32
    %261 = vector.broadcast %cst_133 : f32 to vector<1x16xf32>
    %262 = arith.mulf %258, %261 : vector<1x16xf32>
    %263 = arith.mulf %260, %260 : vector<1x16xf32>
    %264 = arith.subf %262, %263 : vector<1x16xf32>
    %cst_134 = arith.constant 0.000000e+00 : f32
    %265 = vector.broadcast %cst_134 : f32 to vector<1x16xf32>
    %266 = arith.maximumf %264, %265 : vector<1x16xf32>
    %cst_135 = arith.constant 9.99999974E-6 : f32
    %267 = vector.broadcast %cst_135 : f32 to vector<1x16xf32>
    %268 = arith.addf %266, %267 : vector<1x16xf32>
    %269 = math.rsqrt %268 : vector<1x16xf32>
    %270 = arith.mulf %222, %269 : vector<1x16xf32>
    %271 = arith.mulf %260, %270 : vector<1x16xf32>
    %272 = arith.subf %223, %271 : vector<1x16xf32>
    %cst_136 = arith.constant dense<0.000000e+00> : vector<1x64xf32>
    %273 = tpu.matmul %270, %225, %cst_136 {dimension_numbers = #tpu.dot_dimension_numbers<[1], [0], [0], [1], [0, 0, 1, 1], [], []>} : vector<1x16xf32>, vector<16x64xf32>, vector<1x64xf32> -> vector<1x64xf32>
    %cst_137 = arith.constant dense<0.000000e+00> : vector<1x64xf32>
    %274 = tpu.matmul %272, %225, %cst_137 {dimension_numbers = #tpu.dot_dimension_numbers<[1], [0], [0], [1], [0, 0, 1, 1], [], []>} : vector<1x16xf32>, vector<16x64xf32>, vector<1x64xf32> -> vector<1x64xf32>
    %275 = vector.broadcast %273 : vector<1x64xf32> to vector<8x64xf32>
    %276 = arith.mulf %251, %275 : vector<8x64xf32>
    %277 = vector.broadcast %274 : vector<1x64xf32> to vector<8x64xf32>
    %278 = arith.addf %276, %277 : vector<8x64xf32>
    %c0_138 = arith.constant 0 : index
    %c0_139 = arith.constant 0 : index
    %c0_140 = arith.constant 0 : index
    %279 = vector.load %arg29[%c0_138, %c0_139, %c0_140] : memref<4x16x8xf32, #tpu.memory_space<vmem>>, vector<4x16x8xf32>
    %c0_141 = arith.constant 0 : index
    %c0_142 = arith.constant 0 : index
    %280 = vector.load %arg30[%c0_141, %c0_142] : memref<128x256xbf16, #tpu.memory_space<vmem>>, vector<128x256xbf16>
    %c0_143 = arith.constant 0 : index
    %c0_144 = arith.constant 0 : index
    %281 = vector.load %arg31[%c0_143, %c0_144] : memref<1x8xf32, #tpu.memory_space<vmem>>, vector<1x8xf32>
    %c0_145 = arith.constant 0 : index
    %c0_146 = arith.constant 0 : index
    %282 = vector.load %arg32[%c0_145, %c0_146] : memref<1x8xf32, #tpu.memory_space<vmem>>, vector<1x8xf32>
    %c0_147 = arith.constant 0 : index
    %c0_148 = arith.constant 0 : index
    %283 = vector.load %arg33[%c0_147, %c0_148] : memref<64x8xf32, #tpu.memory_space<vmem>>, vector<64x8xf32>
    %c0_149 = arith.constant 0 : index
    %c0_150 = arith.constant 0 : index
    %284 = vector.load %arg34[%c0_149, %c0_150] : memref<8x64xf32, #tpu.memory_space<vmem>>, vector<8x64xf32>
    %cst_151 = arith.constant 0.000000e+00 : f32
    %285 = vector.broadcast %cst_151 : f32 to vector<8x64xf32>
    %286 = arith.maximumf %80, %285 : vector<8x64xf32>
    %cst_152 = arith.constant 0.000000e+00 : f32
    %287 = vector.broadcast %cst_152 : f32 to vector<8x64xf32>
    %288 = arith.maximumf %278, %287 : vector<8x64xf32>
    %289 = tpu.concatenate %286, %288 in 1 : vector<8x64xf32>, vector<8x64xf32> -> vector<8x128xf32>
    %290 = arith.truncf %289 : vector<8x128xf32> to vector<8x128xbf16>
    %cst_153 = arith.constant dense<0.000000e+00> : vector<8x256xf32>
    %291 = tpu.matmul %290, %280, %cst_153 {dimension_numbers = #tpu.dot_dimension_numbers<[1], [0], [0], [1], [0, 0, 1, 1], [], []>} : vector<8x128xbf16>, vector<128x256xbf16>, vector<8x256xf32> -> vector<8x256xf32>
    %292 = vector.extract_strided_slice %279 {offsets = [0, 0, 0], sizes = [1, 16, 8], strides = [1, 1, 1]} : vector<4x16x8xf32> to vector<1x16x8xf32>
    %293 = vector.shape_cast %292 : vector<1x16x8xf32> to vector<16x8xf32>
    %294 = vector.extract_strided_slice %291 {offsets = [0, 0], sizes = [8, 64], strides = [1, 1]} : vector<8x256xf32> to vector<8x64xf32>
    %cst_154 = arith.constant dense<0.000000e+00> : vector<16x64xf32>
    %295 = tpu.matmul %293, %294, %cst_154 {dimension_numbers = #tpu.dot_dimension_numbers<[1], [0], [0], [1], [0, 0, 1, 1], [], []>} : vector<16x8xf32>, vector<8x64xf32>, vector<16x64xf32> -> vector<16x64xf32>
    %296 = vector.extract_strided_slice %279 {offsets = [1, 0, 0], sizes = [1, 16, 8], strides = [1, 1, 1]} : vector<4x16x8xf32> to vector<1x16x8xf32>
    %297 = vector.shape_cast %296 : vector<1x16x8xf32> to vector<16x8xf32>
    %298 = vector.extract_strided_slice %291 {offsets = [0, 64], sizes = [8, 64], strides = [1, 1]} : vector<8x256xf32> to vector<8x64xf32>
    %cst_155 = arith.constant dense<0.000000e+00> : vector<16x64xf32>
    %299 = tpu.matmul %297, %298, %cst_155 {dimension_numbers = #tpu.dot_dimension_numbers<[1], [0], [0], [1], [0, 0, 1, 1], [], []>} : vector<16x8xf32>, vector<8x64xf32>, vector<16x64xf32> -> vector<16x64xf32>
    %300 = vector.extract_strided_slice %279 {offsets = [2, 0, 0], sizes = [1, 16, 8], strides = [1, 1, 1]} : vector<4x16x8xf32> to vector<1x16x8xf32>
    %301 = vector.shape_cast %300 : vector<1x16x8xf32> to vector<16x8xf32>
    %302 = vector.extract_strided_slice %291 {offsets = [0, 128], sizes = [8, 64], strides = [1, 1]} : vector<8x256xf32> to vector<8x64xf32>
    %cst_156 = arith.constant dense<0.000000e+00> : vector<16x64xf32>
    %303 = tpu.matmul %301, %302, %cst_156 {dimension_numbers = #tpu.dot_dimension_numbers<[1], [0], [0], [1], [0, 0, 1, 1], [], []>} : vector<16x8xf32>, vector<8x64xf32>, vector<16x64xf32> -> vector<16x64xf32>
    %304 = vector.extract_strided_slice %279 {offsets = [3, 0, 0], sizes = [1, 16, 8], strides = [1, 1, 1]} : vector<4x16x8xf32> to vector<1x16x8xf32>
    %305 = vector.shape_cast %304 : vector<1x16x8xf32> to vector<16x8xf32>
    %306 = vector.extract_strided_slice %291 {offsets = [0, 192], sizes = [8, 64], strides = [1, 1]} : vector<8x256xf32> to vector<8x64xf32>
    %cst_157 = arith.constant dense<0.000000e+00> : vector<16x64xf32>
    %307 = tpu.matmul %305, %306, %cst_157 {dimension_numbers = #tpu.dot_dimension_numbers<[1], [0], [0], [1], [0, 0, 1, 1], [], []>} : vector<16x8xf32>, vector<8x64xf32>, vector<16x64xf32> -> vector<16x64xf32>
    %308 = arith.addf %295, %299 : vector<16x64xf32>
    %309 = arith.addf %303, %307 : vector<16x64xf32>
    %310 = arith.addf %308, %309 : vector<16x64xf32>
    %cst_158 = arith.constant dense<0.000000e+00> : vector<64xf32>
    %311 = vector.multi_reduction <add>, %310, %cst_158 [0] : vector<16x64xf32> to vector<64xf32>
    %312 = vector.shape_cast %311 : vector<64xf32> to vector<1x64xf32>
    %cst_159 = arith.constant dense<0.000000e+00> : vector<1x8xf32>
    %313 = tpu.matmul %312, %283, %cst_159 {dimension_numbers = #tpu.dot_dimension_numbers<[1], [0], [0], [1], [0, 0, 1, 1], [], []>} : vector<1x64xf32>, vector<64x8xf32>, vector<1x8xf32> -> vector<1x8xf32>
    %314 = arith.mulf %310, %310 : vector<16x64xf32>
    %cst_160 = arith.constant dense<0.000000e+00> : vector<64xf32>
    %315 = vector.multi_reduction <add>, %314, %cst_160 [0] : vector<16x64xf32> to vector<64xf32>
    %316 = vector.shape_cast %315 : vector<64xf32> to vector<1x64xf32>
    %cst_161 = arith.constant dense<0.000000e+00> : vector<1x8xf32>
    %317 = tpu.matmul %316, %283, %cst_161 {dimension_numbers = #tpu.dot_dimension_numbers<[1], [0], [0], [1], [0, 0, 1, 1], [], []>} : vector<1x64xf32>, vector<64x8xf32>, vector<1x8xf32> -> vector<1x8xf32>
    %cst_162 = arith.constant 7.812500e-03 : f32
    %318 = vector.broadcast %cst_162 : f32 to vector<1x8xf32>
    %319 = arith.mulf %313, %318 : vector<1x8xf32>
    %cst_163 = arith.constant 7.812500e-03 : f32
    %320 = vector.broadcast %cst_163 : f32 to vector<1x8xf32>
    %321 = arith.mulf %317, %320 : vector<1x8xf32>
    %322 = arith.mulf %319, %319 : vector<1x8xf32>
    %323 = arith.subf %321, %322 : vector<1x8xf32>
    %cst_164 = arith.constant 0.000000e+00 : f32
    %324 = vector.broadcast %cst_164 : f32 to vector<1x8xf32>
    %325 = arith.maximumf %323, %324 : vector<1x8xf32>
    %cst_165 = arith.constant 9.99999974E-6 : f32
    %326 = vector.broadcast %cst_165 : f32 to vector<1x8xf32>
    %327 = arith.addf %325, %326 : vector<1x8xf32>
    %328 = math.rsqrt %327 : vector<1x8xf32>
    %329 = arith.mulf %281, %328 : vector<1x8xf32>
    %330 = arith.mulf %319, %329 : vector<1x8xf32>
    %331 = arith.subf %282, %330 : vector<1x8xf32>
    %cst_166 = arith.constant dense<0.000000e+00> : vector<1x64xf32>
    %332 = tpu.matmul %329, %284, %cst_166 {dimension_numbers = #tpu.dot_dimension_numbers<[1], [0], [0], [1], [0, 0, 1, 1], [], []>} : vector<1x8xf32>, vector<8x64xf32>, vector<1x64xf32> -> vector<1x64xf32>
    %cst_167 = arith.constant dense<0.000000e+00> : vector<1x64xf32>
    %333 = tpu.matmul %331, %284, %cst_167 {dimension_numbers = #tpu.dot_dimension_numbers<[1], [0], [0], [1], [0, 0, 1, 1], [], []>} : vector<1x8xf32>, vector<8x64xf32>, vector<1x64xf32> -> vector<1x64xf32>
    %334 = vector.broadcast %332 : vector<1x64xf32> to vector<16x64xf32>
    %335 = arith.mulf %310, %334 : vector<16x64xf32>
    %336 = vector.broadcast %333 : vector<1x64xf32> to vector<16x64xf32>
    %337 = arith.addf %335, %336 : vector<16x64xf32>
    %c0_168 = arith.constant 0 : index
    %c0_169 = arith.constant 0 : index
    %c0_170 = arith.constant 0 : index
    %338 = vector.load %arg35[%c0_168, %c0_169, %c0_170] : memref<4x32x16xf32, #tpu.memory_space<vmem>>, vector<4x32x16xf32>
    %c0_171 = arith.constant 0 : index
    %c0_172 = arith.constant 0 : index
    %339 = vector.load %arg36[%c0_171, %c0_172] : memref<128x512xbf16, #tpu.memory_space<vmem>>, vector<128x512xbf16>
    %c0_173 = arith.constant 0 : index
    %c0_174 = arith.constant 0 : index
    %340 = vector.load %arg37[%c0_173, %c0_174] : memref<1x128xf32, #tpu.memory_space<vmem>>, vector<1x128xf32>
    %cst_175 = arith.constant 0.000000e+00 : f32
    %341 = vector.broadcast %cst_175 : f32 to vector<16x64xf32>
    %342 = arith.maximumf %23, %341 : vector<16x64xf32>
    %cst_176 = arith.constant 0.000000e+00 : f32
    %343 = vector.broadcast %cst_176 : f32 to vector<16x64xf32>
    %344 = arith.maximumf %337, %343 : vector<16x64xf32>
    %345 = tpu.concatenate %342, %344 in 1 : vector<16x64xf32>, vector<16x64xf32> -> vector<16x128xf32>
    %346 = arith.truncf %345 : vector<16x128xf32> to vector<16x128xbf16>
    %cst_177 = arith.constant dense<0.000000e+00> : vector<16x512xf32>
    %347 = tpu.matmul %346, %339, %cst_177 {dimension_numbers = #tpu.dot_dimension_numbers<[1], [0], [0], [1], [0, 0, 1, 1], [], []>} : vector<16x128xbf16>, vector<128x512xbf16>, vector<16x512xf32> -> vector<16x512xf32>
    %348 = vector.extract_strided_slice %338 {offsets = [0, 0, 0], sizes = [1, 32, 16], strides = [1, 1, 1]} : vector<4x32x16xf32> to vector<1x32x16xf32>
    %349 = vector.shape_cast %348 : vector<1x32x16xf32> to vector<32x16xf32>
    %350 = vector.extract_strided_slice %347 {offsets = [0, 0], sizes = [16, 128], strides = [1, 1]} : vector<16x512xf32> to vector<16x128xf32>
    %cst_178 = arith.constant dense<0.000000e+00> : vector<32x128xf32>
    %351 = tpu.matmul %349, %350, %cst_178 {dimension_numbers = #tpu.dot_dimension_numbers<[1], [0], [0], [1], [0, 0, 1, 1], [], []>} : vector<32x16xf32>, vector<16x128xf32>, vector<32x128xf32> -> vector<32x128xf32>
    %352 = vector.extract_strided_slice %338 {offsets = [1, 0, 0], sizes = [1, 32, 16], strides = [1, 1, 1]} : vector<4x32x16xf32> to vector<1x32x16xf32>
    %353 = vector.shape_cast %352 : vector<1x32x16xf32> to vector<32x16xf32>
    %354 = vector.extract_strided_slice %347 {offsets = [0, 128], sizes = [16, 128], strides = [1, 1]} : vector<16x512xf32> to vector<16x128xf32>
    %cst_179 = arith.constant dense<0.000000e+00> : vector<32x128xf32>
    %355 = tpu.matmul %353, %354, %cst_179 {dimension_numbers = #tpu.dot_dimension_numbers<[1], [0], [0], [1], [0, 0, 1, 1], [], []>} : vector<32x16xf32>, vector<16x128xf32>, vector<32x128xf32> -> vector<32x128xf32>
    %356 = vector.extract_strided_slice %338 {offsets = [2, 0, 0], sizes = [1, 32, 16], strides = [1, 1, 1]} : vector<4x32x16xf32> to vector<1x32x16xf32>
    %357 = vector.shape_cast %356 : vector<1x32x16xf32> to vector<32x16xf32>
    %358 = vector.extract_strided_slice %347 {offsets = [0, 256], sizes = [16, 128], strides = [1, 1]} : vector<16x512xf32> to vector<16x128xf32>
    %cst_180 = arith.constant dense<0.000000e+00> : vector<32x128xf32>
    %359 = tpu.matmul %357, %358, %cst_180 {dimension_numbers = #tpu.dot_dimension_numbers<[1], [0], [0], [1], [0, 0, 1, 1], [], []>} : vector<32x16xf32>, vector<16x128xf32>, vector<32x128xf32> -> vector<32x128xf32>
    %360 = vector.extract_strided_slice %338 {offsets = [3, 0, 0], sizes = [1, 32, 16], strides = [1, 1, 1]} : vector<4x32x16xf32> to vector<1x32x16xf32>
    %361 = vector.shape_cast %360 : vector<1x32x16xf32> to vector<32x16xf32>
    %362 = vector.extract_strided_slice %347 {offsets = [0, 384], sizes = [16, 128], strides = [1, 1]} : vector<16x512xf32> to vector<16x128xf32>
    %cst_181 = arith.constant dense<0.000000e+00> : vector<32x128xf32>
    %363 = tpu.matmul %361, %362, %cst_181 {dimension_numbers = #tpu.dot_dimension_numbers<[1], [0], [0], [1], [0, 0, 1, 1], [], []>} : vector<32x16xf32>, vector<16x128xf32>, vector<32x128xf32> -> vector<32x128xf32>
    %364 = arith.addf %351, %355 : vector<32x128xf32>
    %365 = arith.addf %359, %363 : vector<32x128xf32>
    %366 = arith.addf %364, %365 : vector<32x128xf32>
    %367 = vector.broadcast %340 : vector<1x128xf32> to vector<32x128xf32>
    %368 = arith.addf %366, %367 : vector<32x128xf32>
    %369 = math.tanh %368 : vector<32x128xf32>
    %c0_182 = arith.constant 0 : index
    %c0_183 = arith.constant 0 : index
    %370 = vector.load %arg38[%c0_182, %c0_183] : memref<32x128xf32, #tpu.memory_space<vmem>>, vector<32x128xf32>
    tpu.vector_store %arg38[%c0_182, %c0_183], %369 {strides = array<i32>} : memref<32x128xf32, #tpu.memory_space<vmem>>, vector<32x128xf32>,
    return
  }
}

</mosaic_0001>

<bundles_post_ra>
// kernel: forward.1
= control target key start
LH: loop header
LB: loop body
LE: loop exit
PB: predicated region body
PF: predicated region fallthrough
CT: control target
= control target key end

     0   :  { %s7279_s6 = smov 1   ;;  %s7280_s10 = smov 2   ;;  %s8121_s0 = inlined_call_operand.smem [shape: u32[39], index: -1, kind: input, shape index: {}] }
   0x1   :  { %s7357_s5 = sld [smem:[%s8121_s0]]   ;;  %s7281_s14 = smov 3  }
   0x2   :  { %s7362_s9 = sld [smem:[%s8121_s0 + %s7279_s6]]   ;;  %s7282_s18 = smov 4  }
   0x3   :  { %s7367_s13 = sld [smem:[%s8121_s0 + %s7280_s10]]   ;;  %s7283_s22 = smov 5  }
   0x4   :  { %s7372_s17 = sld [smem:[%s8121_s0 + %s7281_s14]]   ;;  %s7284_s26 = smov 6  }
   0x5   :  { %s7377_s21 = sld [smem:[%s8121_s0 + %s7282_s18]]   ;;  %s7285_s30 = smov 7  }
   0x6   :  { %s7382_s25 = sld [smem:[%s8121_s0 + %s7283_s22]]   ;;  %s7286_s4 = smov 8  }
   0x7   :  { %8127 = sst [smem:[#allocation44_spill]] %s7357_s5  ;;  %s7287_s10 = smov 9  }
   0x8   :  { %s7387_s29 = sld [smem:[%s8121_s0 + %s7284_s26]]   ;;  %s7288_s15 = smov 10  }
   0x9   :  { %s7392_s3 = sld [smem:[%s8121_s0 + %s7285_s30]]   ;;  %s7289_s20 = smov 11  }
   0xa   :  { %s7397_s8 = sld [smem:[%s8121_s0 + %s7286_s4]]   ;;  %s7290_s26 = smov 12  }
   0xb   :  { %s7402_s14 = sld [smem:[%s8121_s0 + %s7287_s10]]   ;;  %s7291_s1 = smov 13  }
   0xc   :  { %8128 = sst [smem:[#allocation45_spill]] %s7382_s25  ;;  %s7292_s7 = smov 14  }
   0xd   :  { %s7407_s19 = sld [smem:[%s8121_s0 + %s7288_s15]]   ;;  %s7293_s15 = smov 15  }
   0xe   :  { %8129 = sst [smem:[#allocation46_spill]] %s7387_s29  ;;  %s7294_s22 = smov 16  }
   0xf   :  { %8130 = sst [smem:[#allocation47_spill]] %s7392_s3  ;;  %s7295_s28 = smov 17  }
  0x10   :  { %s7412_s24 = sld [smem:[%s8121_s0 + %s7289_s20]]  }
  0x11   :  { %s7417_s30 = sld [smem:[%s8121_s0 + %s7290_s26]]  }
  0x12   :  { %s7422_s6 = sld [smem:[%s8121_s0 + %s7291_s1]]  }
  0x13   :  { %s7427_s12 = sld [smem:[%s8121_s0 + %s7292_s7]]   ;;  %s7296_s7 = smov 18  }
  0x14   :  { %s7432_s20 = sld [smem:[%s8121_s0 + %s7293_s15]]   ;;  %s7297_s15 = smov 19  }
  0x15   :  { %s7437_s27 = sld [smem:[%s8121_s0 + %s7294_s22]]   ;;  %s7298_s22 = smov 20  }
  0x16   :  { %8131 = sst [smem:[#allocation48_spill]] %s7412_s24 }
  0x17   :  { %8132 = sst [smem:[#allocation49_spill]] %s7417_s30 }
  0x18   :  { %s7442_s4 = sld [smem:[%s8121_s0 + %s7295_s28]]   ;;  %s7299_s28 = smov 21  }
  0x19   :  { %8133 = sst [smem:[#allocation50_spill]] %s7427_s12 }
  0x1a   :  { %s7447_s30 = sld [smem:[%s8121_s0 + %s7296_s7]]   ;;  %s7300_s7 = smov 22  }
  0x1b   :  { %s7452_s24 = sld [smem:[%s8121_s0 + %s7297_s15]]   ;;  %s7301_s15 = smov 23  }
  0x1c   :  { %s7457_s12 = sld [smem:[%s8121_s0 + %s7298_s22]]   ;;  %s7302_s22 = smov 24  }
  0x1d   :  { %s7462_s29 = sld [smem:[%s8121_s0 + %s7299_s28]]   ;;  %s7303_s28 = smov 25  }
  0x1e   :  { %8134 = sst [smem:[#allocation51_spill]] %s7442_s4 }
  0x1f   :  { %s7467_s25 = sld [smem:[%s8121_s0 + %s7300_s7]]   ;;  %s7304_s7 = smov 26  }
  0x20   :  { %s7482_s3 = sld [smem:[%s8121_s0 + %s7303_s28]]   ;;  %s7307_s28 = smov 29  }
  0x21   :  { %8135 = sst [smem:[#allocation52_spill]] %s7452_s24 }
  0x22   :  { %8136 = sst [smem:[#allocation53_spill]] %s7457_s12 }
  0x23   :  { %8137 = sst [smem:[#allocation54_spill]] %s7462_s29 }
  0x24   :  { %s7472_s24 = sld [smem:[%s8121_s0 + %s7301_s15]]   ;;  %s7305_s15 = smov 27  }
  0x25   :  { %8138 = sst [smem:[#allocation55_spill]] %s7467_s25 }
  0x26   :  { %s7477_s12 = sld [smem:[%s8121_s0 + %s7302_s22]]   ;;  %s7306_s22 = smov 28  }
  0x27   :  { %8140 = sst [smem:[#allocation57_spill]] %s7482_s3 }
  0x28   :  { %s7487_s25 = sld [smem:[%s8121_s0 + %s7304_s7]]   ;;  %s7308_s7 = smov 30  }
  0x29   :  { %s7492_s5 = sld [smem:[%s8121_s0 + %s7305_s15]]   ;;  %s7309_s15 = smov 31  }
  0x2a   :  { %s7502_s3 = sld [smem:[%s8121_s0 + %s7307_s28]]   ;;  %s7311_s28 = smov 33  }
  0x2c   :  { %8139 = sst [smem:[#allocation56_spill]] %s7477_s12 }
  0x2d   :  { %s7497_s12 = sld [smem:[%s8121_s0 + %s7306_s22]]   ;;  %s7310_s22 = smov 32  }
  0x2e   :  { %8141 = sst [smem:[#allocation58_spill]] %s7487_s25 }
  0x2f   :  { %8142 = sst [smem:[#allocation59_spill]] %s7492_s5 }
  0x30   :  { %8143 = sst [smem:[#allocation60_spill]] %s7502_s3 }
  0x31   :  { %s7507_s25 = sld [smem:[%s8121_s0 + %s7308_s7]]   ;;  %s7312_s7 = smov 34  }
  0x32   :  { %s7512_s5 = sld [smem:[%s8121_s0 + %s7309_s15]]   ;;  %s7313_s15 = smov 35  }
  0x33   :  { %s7517_s29 = sld [smem:[%s8121_s0 + %s7310_s22]]   ;;  %s7314_s22 = smov 36  }
  0x34   :  { %s7522_s3 = sld [smem:[%s8121_s0 + %s7311_s28]]   ;;  %s7315_s28 = smov 37  }
  0x35   :  { %s7527_s4 = sld [smem:[%s8121_s0 + %s7312_s7]]   ;;  %s7316_s7 = smov 38  }
  0x38   :  { %8144 = sst [smem:[#allocation61_spill]] %s7512_s5 }
  0x39   :  { %8145 = sst [smem:[#allocation62_spill]] %s7517_s29 }
  0x3a   :  { %8146 = sst [smem:[#allocation63_spill]] %s7522_s3 }
  0x3b   :  { %8147 = sst [smem:[#allocation64_spill]] %s7527_s4 }
  0x3c   :  { %s7532_s5 = sld [smem:[%s8121_s0 + %s7313_s15]]  }
  0x3d   :  { %s7537_s29 = sld [smem:[%s8121_s0 + %s7314_s22]]  }
  0x3e   :  { %s7542_s3 = sld [smem:[%s8121_s0 + %s7315_s28]]  }
  0x3f   :  { %s7547_s4 = sld [smem:[%s8121_s0 + %s7316_s7]]  }
  0x40   :  { %82 = vsyncpa [#allocation3], 0 }
  0x41   :  { %83 = vsyncpa [#allocation5], 0 }
  0x42   :  { %84 = vsyncpa [#allocation8], 0 }
  0x43   :  { %85 = vsyncpa [#allocation11], 0 }
  0x44   :  { %86 = vsyncpa [#allocation14], 0 }
  0x45   :  { %87 = vsyncpa [#allocation17], 0 }
  0x46   :  { %88 = vsyncpa [#allocation20], 0 }
  0x47   :  { %89 = vsyncpa [#allocation23], 0 }
  0x48   :  { %90 = vsyncpa [#allocation26], 0 }
  0x49   :  { %91 = vsyncpa [#allocation29], 0 }
  0x4a   :  { %92 = vsyncpa [#allocation32], 0  ;;  %s7317_s15 = smov [#allocation4]   ;;  %s7318_s18 = smov [#allocation7]  }
  0x4b   :  { %s112_s16 = sshll.u32 %s7317_s15, 4  ;;  %s136_s22 = sshll.u32 %s7318_s18, 4  ;;  %s113_s16 = int_to_ptr.vmem [resolvable:$true] %s112_s16  ;;  %s137_s22 = int_to_ptr.vmem [resolvable:$true] %s136_s22 }
  0x4c   :  { %s6865_s23 = scalar_lea.vmem %s113_s16, 768  ;;  %p6870_p1 = scmp.lt.s32.totalorder %s113_s16, %s113_s16 }
  0x4d   :  { %p6866_p0 = scmp.ne.s32.totalorder %s113_s16, %s6865_s23  ;;  %p6871_p2 = scmp.lt.s32.totalorder %s6865_s23, %s6865_s23 }
  0x4f   :  { %p6872_p3 = por %p6871_p2, %p6870_p1 }
  0x51   :  { %p6873_p4 = pnand %p6872_p3, %p6866_p0 }
  0x53   :  { %6876 = shalt.err (!%p6873_p4)
}
  0x54   :  { %s7319_s0 = smov 128   ;;  %s7320_s26 = smov 8  }
  0x55   :  { %118 = dma.hbm_to_vmem [thread:$0]  %s7367_s13, 768, %s113_s16, [#allocation5], %s7319_s0, %s7319_s0, %s7320_s26  }
  0x56   :  { %s6885_s28 = scalar_lea.vmem %s137_s22, 1024  ;;  %p6890_p6 = scmp.lt.s32.totalorder %s137_s22, %s137_s22 }
  0x57   :  { %p6886_p5 = scmp.ne.s32.totalorder %s137_s22, %s6885_s28  ;;  %p6891_p7 = scmp.lt.s32.totalorder %s6885_s28, %s6885_s28 }
  0x59   :  { %p6892_p8 = por %p6891_p7, %p6890_p6 }
  0x5b   :  { %p6893_p9 = pnand %p6892_p8, %p6886_p5 }
  0x5d   :  { %6896 = shalt.err (!%p6893_p9)
}
  0x5e   :  { %142 = dma.hbm_to_vmem [thread:$0]  %s7377_s21, 1024, %s137_s22, [#allocation8], %s7319_s0, %s7319_s0, %s7320_s26  }
  0x5f   :  { %s7321_s1 = smov [#allocation10]  }
  0x60   :  { %s166_s2 = sshll.u32 %s7321_s1, 4  ;;  %s167_s2 = int_to_ptr.vmem [resolvable:$true] %s166_s2 }
  0x61   :  { %s6905_s7 = scalar_lea.vmem %s167_s2, 256  ;;  %p6910_p11 = scmp.lt.s32.totalorder %s167_s2, %s167_s2 }
  0x62   :  { %p6906_p10 = scmp.ne.s32.totalorder %s167_s2, %s6905_s7  ;;  %p6911_p12 = scmp.lt.s32.totalorder %s6905_s7, %s6905_s7 }
  0x64   :  { %p6912_p13 = por %p6911_p12, %p6910_p11 }
  0x66   :  { %p6913_p0 = pnand %p6912_p13, %p6906_p10 }
  0x68   :  { %6916 = shalt.err (!%p6913_p0)
}
  0x69   :  { %s7322_s13 = smov 64   ;;  %s7323_s10 = smov 4  }
  0x6a   :  { %172 = dma.hbm_to_vmem [thread:$0]  %s7402_s14, 256, %s167_s2, [#allocation11], %s7322_s13, %s7322_s13, %s7323_s10  }
  0x6b   :  { %s7324_s11 = smov [#allocation13]   ;;  %s7325_s21 = smov [#allocation16]  }
  0x6c   :  { %s194_s15 = sshll.u32 %s7324_s11, 4  ;;  %s220_s16 = sshll.u32 %s7325_s21, 4  ;;  %s195_s15 = int_to_ptr.vmem [resolvable:$true] %s194_s15  ;;  %s221_s16 = int_to_ptr.vmem [resolvable:$true] %s220_s16 }
  0x6d   :  { %s6925_s18 = scalar_lea.vmem %s195_s15, 512  ;;  %p6930_p2 = scmp.lt.s32.totalorder %s195_s15, %s195_s15 }
  0x6e   :  { %p6926_p1 = scmp.ne.s32.totalorder %s195_s15, %s6925_s18  ;;  %p6931_p3 = scmp.lt.s32.totalorder %s6925_s18, %s6925_s18 }
  0x70   :  { %p6932_p4 = por %p6931_p3, %p6930_p2 }
  0x72   :  { %p6933_p5 = pnand %p6932_p4, %p6926_p1 }
  0x74   :  { %6936 = shalt.err (!%p6933_p5)
}
  0x75   :  { %200 = dma.hbm_to_vmem [thread:$0]  %s7422_s6, 512, %s195_s15, [#allocation14], %s7319_s0, %s7319_s0, %s7320_s26  }
  0x76   :  { %s6945_s22 = scalar_lea.vmem %s221_s16, 256  ;;  %p6950_p7 = scmp.lt.s32.totalorder %s221_s16, %s221_s16 }
  0x77   :  { %p6946_p6 = scmp.ne.s32.totalorder %s221_s16, %s6945_s22  ;;  %p6951_p8 = scmp.lt.s32.totalorder %s6945_s22, %s6945_s22 }
  0x79   :  { %p6952_p9 = por %p6951_p8, %p6950_p7 }
  0x7b   :  { %p6953_p10 = pnand %p6952_p9, %p6946_p6 }
  0x7d   :  { %6956 = shalt.err (!%p6953_p10)
}
  0x7e   :  { %226 = dma.hbm_to_vmem [thread:$0]  %s7437_s27, 256, %s221_s16, [#allocation17], %s7322_s13, %s7322_s13, %s7323_s10  }
  0x7f   :  { %s7326_s14 = smov [#allocation19]   ;;  %s7327_s28 = smov [#allocation22]  }
  0x80   :  { %s244_s23 = sshll.u32 %s7326_s14, 4  ;;  %s274_s1 = sshll.u32 %s7327_s28, 4  ;;  %s245_s23 = int_to_ptr.vmem [resolvable:$true] %s244_s23  ;;  %s275_s1 = int_to_ptr.vmem [resolvable:$true] %s274_s1 }
  0x81   :  { %s6965_s2 = scalar_lea.vmem %s245_s23, 128  ;;  %p6970_p12 = scmp.lt.s32.totalorder %s245_s23, %s245_s23 }
  0x82   :  { %p6966_p11 = scmp.ne.s32.totalorder %s245_s23, %s6965_s2  ;;  %p6971_p13 = scmp.lt.s32.totalorder %s6965_s2, %s6965_s2 }
  0x84   :  { %p6972_p0 = por %p6971_p13, %p6970_p12 }
  0x86   :  { %p6973_p1 = pnand %p6972_p0, %p6966_p11 }
  0x88   :  { %6976 = shalt.err (!%p6973_p1)
}
  0x89   :  { %250 = dma.hbm_to_vmem [thread:$0]  %s7447_s30, 128, %s245_s23, [#allocation20], %s7322_s13, %s7322_s13, %s7323_s10  }
  0x8a   :  { %s6985_s6 = scalar_lea.vmem %s275_s1, 512  ;;  %p6990_p3 = scmp.lt.s32.totalorder %s275_s1, %s275_s1 }
  0x8b   :  { %p6986_p2 = scmp.ne.s32.totalorder %s275_s1, %s6985_s6  ;;  %p6991_p4 = scmp.lt.s32.totalorder %s6985_s6, %s6985_s6 }
  0x8d   :  { %p6992_p5 = por %p6991_p4, %p6990_p3 }
  0x8f   :  { %p6993_p6 = pnand %p6992_p5, %p6986_p2 }
  0x91   :  { %6996 = shalt.err (!%p6993_p6)
}
  0x92   :  { %280 = dma.hbm_to_vmem [thread:$0]  %s7472_s24, 512, %s275_s1, [#allocation23], %s7319_s0, %s7319_s0, %s7320_s26  }
  0x93   :  { %s7328_s27 = smov [#allocation25]   ;;  %s7329_s11 = smov [#allocation28]  }
  0x94   :  { %s304_s7 = sshll.u32 %s7328_s27, 4  ;;  %s328_s15 = sshll.u32 %s7329_s11, 4  ;;  %s305_s7 = int_to_ptr.vmem [resolvable:$true] %s304_s7  ;;  %s329_s15 = int_to_ptr.vmem [resolvable:$true] %s328_s15 }
  0x95   :  { %s7005_s21 = scalar_lea.vmem %s305_s7, 256  ;;  %p7010_p8 = scmp.lt.s32.totalorder %s305_s7, %s305_s7 }
  0x96   :  { %p7006_p7 = scmp.ne.s32.totalorder %s305_s7, %s7005_s21  ;;  %p7011_p9 = scmp.lt.s32.totalorder %s7005_s21, %s7005_s21 }
  0x98   :  { %p7012_p10 = por %p7011_p9, %p7010_p8 }
  0x9a   :  { %p7013_p11 = pnand %p7012_p10, %p7006_p7 }
  0x9c   :  { %7016 = shalt.err (!%p7013_p11)
}
  0x9d   :  { %310 = dma.hbm_to_vmem [thread:$0]  %s7497_s12, 256, %s305_s7, [#allocation26], %s7319_s0, %s7319_s0, %s7320_s26  }
  0x9e   :  { %s7025_s30 = scalar_lea.vmem %s329_s15, 2048  ;;  %p7030_p13 = scmp.lt.s32.totalorder %s329_s15, %s329_s15 }
  0x9f   :  { %p7026_p12 = scmp.ne.s32.totalorder %s329_s15, %s7025_s30  ;;  %p7031_p0 = scmp.lt.s32.totalorder %s7025_s30, %s7025_s30 }
  0xa1   :  { %p7032_p1 = por %p7031_p0, %p7030_p13 }
  0xa3   :  { %p7033_p2 = pnand %p7032_p1, %p7026_p12 }
  0xa5   :  { %7036 = shalt.err (!%p7033_p2)
}
  0xa6   :  { %334 = dma.hbm_to_vmem [thread:$0]  %s7507_s25, 2048, %s329_s15, [#allocation29], %s7319_s0, %s7319_s0, %s7320_s26  }
  0xa7   :  { %s7330_s24 = smov [#allocation2]   ;;  %s7331_s18 = smov [#allocation6]  }
  0xa8   :  { %s100_s16 = sshll.u32 %s7330_s24, 4  ;;  %s124_s22 = sshll.u32 %s7331_s18, 4  ;;  %s101_s16 = int_to_ptr.vmem [resolvable:$true] %s100_s16  ;;  %s125_s22 = int_to_ptr.vmem [resolvable:$true] %s124_s22 }
  0xa9   :  { %s7045_s14 = scalar_lea.vmem %s101_s16, 1024  ;;  %p7050_p4 = scmp.lt.s32.totalorder %s101_s16, %s101_s16 }
  0xaa   :  { %p7046_p3 = scmp.ne.s32.totalorder %s101_s16, %s7045_s14  ;;  %p7051_p5 = scmp.lt.s32.totalorder %s7045_s14, %s7045_s14 }
  0xac   :  { %p7052_p6 = por %p7051_p5, %p7050_p4 }
  0xae   :  { %p7053_p7 = pnand %p7052_p6, %p7046_p3 }
  0xb0   :  { %7056 = shalt.err (!%p7053_p7)
}
  0xb1   :  { %106 = dma.hbm_to_vmem [thread:$0]  %s7362_s9, 1024, %s101_s16, [#allocation3], %s7319_s0, %s7319_s0, %s7320_s26  }
  0xb2   :  { %s7065_s12 = scalar_lea.vmem %s125_s22, 512  ;;  %p7070_p9 = scmp.lt.s32.totalorder %s125_s22, %s125_s22 }
  0xb3   :  { %p7066_p8 = scmp.ne.s32.totalorder %s125_s22, %s7065_s12  ;;  %p7071_p10 = scmp.lt.s32.totalorder %s7065_s12, %s7065_s12 }
  0xb5   :  { %p7072_p11 = por %p7071_p10, %p7070_p9 }
  0xb7   :  { %p7073_p12 = pnand %p7072_p11, %p7066_p8 }
  0xb9   :  { %7076 = shalt.err (!%p7073_p12)
}
  0xba   :  { %130 = dma.hbm_to_vmem [thread:$0]  %s7372_s17, 512, %s125_s22, [#allocation5], %s7319_s0, %s7319_s0, %s7320_s26  }
  0xbb   :  { %s7332_s25 = smov [#allocation9]   ;;  %s7333_s28 = smov [#allocation12]  }
  0xbc   :  { %s154_s23 = sshll.u32 %s7332_s25, 4  ;;  %s178_s1 = sshll.u32 %s7333_s28, 4  ;;  %s155_s23 = int_to_ptr.vmem [resolvable:$true] %s154_s23  ;;  %s179_s1 = int_to_ptr.vmem [resolvable:$true] %s178_s1 }
  0xbd   :  { %s7085_s2 = scalar_lea.vmem %s155_s23, 256  ;;  %p7090_p0 = scmp.lt.s32.totalorder %s155_s23, %s155_s23 }
  0xbe   :  { %p7086_p13 = scmp.ne.s32.totalorder %s155_s23, %s7085_s2  ;;  %p7091_p1 = scmp.lt.s32.totalorder %s7085_s2, %s7085_s2 }
  0xc0   :  { %p7092_p2 = por %p7091_p1, %p7090_p0 }
  0xc2   :  { %p7093_p3 = pnand %p7092_p2, %p7086_p13 }
  0xc4   :  { %7096 = shalt.err (!%p7093_p3)
}
  0xc5   :  { %160 = dma.hbm_to_vmem [thread:$0]  %s7397_s8, 256, %s155_s23, [#allocation8], %s7319_s0, %s7319_s0, %s7320_s26  }
  0xc6   :  { %s7105_s9 = scalar_lea.vmem %s179_s1, 512  ;;  %p7110_p5 = scmp.lt.s32.totalorder %s179_s1, %s179_s1 }
  0xc7   :  { %p7106_p4 = scmp.ne.s32.totalorder %s179_s1, %s7105_s9  ;;  %p7111_p6 = scmp.lt.s32.totalorder %s7105_s9, %s7105_s9 }
  0xc9   :  { %p7112_p7 = por %p7111_p6, %p7110_p5 }
  0xcb   :  { %p7113_p8 = pnand %p7112_p7, %p7106_p4 }
  0xcd   :  { %7116 = shalt.err (!%p7113_p8)
}
  0xce   :  { %184 = dma.hbm_to_vmem [thread:$0]  %s7407_s19, 512, %s179_s1, [#allocation11], %s7322_s13, %s7322_s13, %s7323_s10  }
  0xcf   :  { %s7334_s17 = smov [#allocation15]  }
  0xd0   :  { %s208_s6 = sshll.u32 %s7334_s17, 4  ;;  %s209_s6 = int_to_ptr.vmem [resolvable:$true] %s208_s6 }
  0xd1   :  { %s7125_s27 = scalar_lea.vmem %s209_s6, 128  ;;  %p7130_p10 = scmp.lt.s32.totalorder %s209_s6, %s209_s6 }
  0xd2   :  { %p7126_p9 = scmp.ne.s32.totalorder %s209_s6, %s7125_s27  ;;  %p7131_p11 = scmp.lt.s32.totalorder %s7125_s27, %s7125_s27 }
  0xd4   :  { %p7132_p12 = por %p7131_p11, %p7130_p10 }
  0xd6   :  { %p7133_p13 = pnand %p7132_p12, %p7126_p9 }
  0xd8   :  { %7136 = shalt.err (!%p7133_p13)
}
  0xd9   :  { %s7335_s8 = smov 32   ;;  %s7336_s7 = smov 2  }
  0xda   :  { %214 = dma.hbm_to_vmem [thread:$0]  %s7432_s20, 128, %s209_s6, [#allocation14], %s7335_s8, %s7335_s8, %s7336_s7  }
  0xdb   :  { %s7337_s11 = smov [#allocation18]   ;;  %s7338_s21 = smov [#allocation21]  }
  0xdc   :  { %s232_s15 = sshll.u32 %s7337_s11, 4  ;;  %s260_s19 = sshll.u32 %s7338_s21, 4  ;;  %s233_s15 = int_to_ptr.vmem [resolvable:$true] %s232_s15  ;;  %s261_s19 = int_to_ptr.vmem [resolvable:$true] %s260_s19 }
  0xdd   :  { %s7145_s30 = scalar_lea.vmem %s233_s15, 256  ;;  %p7150_p1 = scmp.lt.s32.totalorder %s233_s15, %s233_s15 }
  0xde   :  { %p7146_p0 = scmp.ne.s32.totalorder %s233_s15, %s7145_s30  ;;  %p7151_p2 = scmp.lt.s32.totalorder %s7145_s30, %s7145_s30 }
  0xe0   :  { %p7152_p3 = por %p7151_p2, %p7150_p1 }
  0xe2   :  { %p7153_p4 = pnand %p7152_p3, %p7146_p0 }
  0xe4   :  { %7156 = shalt.err (!%p7153_p4)
}
  0xe5   :  { %s8148_s24 = sld [smem:[#allocation51_spill]]  ;;  %s7165_s16 = scalar_lea.vmem %s261_s19, 512 }
  0xe6   :  { %p7166_p5 = scmp.ne.s32.totalorder %s261_s19, %s7165_s16  ;;  %p7170_p6 = scmp.lt.s32.totalorder %s261_s19, %s261_s19 }
  0xe7   :  { %p7171_p7 = scmp.lt.s32.totalorder %s7165_s16, %s7165_s16 }
  0xe9   :  { %p7172_p8 = por %p7171_p7, %p7170_p6 }
  0xeb   :  { %238 = dma.hbm_to_vmem [thread:$0]  %s8148_s24, 256, %s233_s15, [#allocation17], %s7322_s13, %s7322_s13, %s7323_s10  }
  0xec   :  { %p7173_p9 = pnand %p7172_p8, %p7166_p5 }
  0xee   :  { %7176 = shalt.err (!%p7173_p9)
}
  0xef   :  { %s8149_s20 = sld [smem:[#allocation54_spill]]  ;;  %s7339_s18 = smov [#allocation24]  }
  0xf0   :  { %s286_s22 = sshll.u32 %s7339_s18, 4  ;;  %s7340_s14 = smov [#allocation27]   ;;  %s287_s22 = int_to_ptr.vmem [resolvable:$true] %s286_s22 }
  0xf1   :  { %s316_s12 = sshll.u32 %s7340_s14, 4  ;;  %s7185_s25 = scalar_lea.vmem %s287_s22, 1024  ;;  %s317_s12 = int_to_ptr.vmem [resolvable:$true] %s316_s12 }
  0xf2   :  { %p7186_p10 = scmp.ne.s32.totalorder %s287_s22, %s7185_s25  ;;  %p7190_p11 = scmp.lt.s32.totalorder %s287_s22, %s287_s22 }
  0xf3   :  { %p7191_p12 = scmp.lt.s32.totalorder %s7185_s25, %s7185_s25 }
  0xf5   :  { %266 = dma.hbm_to_vmem [thread:$0]  %s8149_s20, 512, %s261_s19, [#allocation20], %s7319_s0, %s7319_s0, %s7320_s26  }
  0xf6   :  { %p7192_p13 = por %p7191_p12, %p7190_p11 }
  0xf8   :  { %p7193_p0 = pnand %p7192_p13, %p7186_p10 }
  0xfa   :  { %7196 = shalt.err (!%p7193_p0)
}
  0xfb   :  { %s8150_s10 = sld [smem:[#allocation56_spill]]  ;;  %s7205_s23 = scalar_lea.vmem %s317_s12, 1024 }
  0xfc   :  { %p7206_p1 = scmp.ne.s32.totalorder %s317_s12, %s7205_s23  ;;  %p7210_p2 = scmp.lt.s32.totalorder %s317_s12, %s317_s12 }
  0xfd   :  { %p7211_p3 = scmp.lt.s32.totalorder %s7205_s23, %s7205_s23 }
  0xff   :  { %p7212_p4 = por %p7211_p3, %p7210_p2 }
 0x101   :  { %292 = dma.hbm_to_vmem [thread:$0]  %s8150_s10, 1024, %s287_s22, [#allocation23], %s7319_s0, %s7319_s0, %s7320_s26  }
 0x102   :  { %p7213_p5 = pnand %p7212_p4, %p7206_p1 }
 0x104   :  { %7216 = shalt.err (!%p7213_p5)
}
 0x105   :  { %s8151_s28 = sld [smem:[#allocation60_spill]]  ;;  %s7341_s1 = smov [#allocation30]  }
 0x106   :  { %s344_s2 = sshll.u32 %s7341_s1, 4  ;;  %s7342_s9 = smov [#allocation31]   ;;  %s345_s2 = int_to_ptr.vmem [resolvable:$true] %s344_s2 }
 0x107   :  { %s357_s17 = sshll.u32 %s7342_s9, 4  ;;  %s7225_s6 = scalar_lea.vmem %s345_s2, 1024  ;;  %s358_s17 = int_to_ptr.vmem [resolvable:$true] %s357_s17 }
 0x108   :  { %p7226_p6 = scmp.ne.s32.totalorder %s345_s2, %s7225_s6  ;;  %p7230_p7 = scmp.lt.s32.totalorder %s345_s2, %s345_s2 }
 0x109   :  { %p7231_p8 = scmp.lt.s32.totalorder %s7225_s6, %s7225_s6 }
 0x10b   :  { %322 = dma.hbm_to_vmem [thread:$0]  %s8151_s28, 1024, %s317_s12, [#allocation26], %s7319_s0, %s7319_s0, %s7320_s26  }
 0x10c   :  { %p7232_p9 = por %p7231_p8, %p7230_p7 }
 0x10e   :  { %p7233_p10 = pnand %p7232_p9, %p7226_p6 }
 0x110   :  { %7236 = shalt.err (!%p7233_p10)
}
 0x111   :  { %s8152_s27 = sld [smem:[#allocation63_spill]]  ;;  %s7245_s7 = scalar_lea.vmem %s358_s17, 128 }
 0x112   :  { %p7246_p11 = scmp.ne.s32.totalorder %s358_s17, %s7245_s7  ;;  %p7250_p12 = scmp.lt.s32.totalorder %s358_s17, %s358_s17 }
 0x113   :  { %p7251_p13 = scmp.lt.s32.totalorder %s7245_s7, %s7245_s7 }
 0x115   :  { %p7252_p0 = por %p7251_p13, %p7250_p12 }
 0x117   :  { %350 = dma.hbm_to_vmem [thread:$0]  %s8152_s27, 1024, %s345_s2, [#allocation29], %s7319_s0, %s7319_s0, %s7320_s26  }
 0x118   :  { %p7253_p1 = pnand %p7252_p0, %p7246_p11 }
 0x11a   :  { %7256 = shalt.err (!%p7253_p1)
}
 0x11b   :  { %s8153_s11 = sld [smem:[#allocation64_spill]] }
 0x121   :  { %360 = dma.hbm_to_vmem [thread:$0]  %s8153_s11, 128, %s358_s17, [#allocation32]  }
 0x122   :  { %7257 = dma.done.wait [#allocation3], 1024  }
 0x123   :  { %7258 = vsyncadd [#allocation3], 4294966272 }
 0x124   :  { %7259 = dma.done.wait [#allocation5], 1280  }
 0x125   :  { %7260 = vsyncadd [#allocation5], 4294966016 }
 0x126   :  { %7261 = dma.done.wait [#allocation8], 1280  }
 0x127   :  { %7262 = vsyncadd [#allocation8], 4294966016 }
 0x128   :  { %7263 = dma.done.wait [#allocation11], 768  }
 0x129   :  { %7264 = vsyncadd [#allocation11], 4294966528 }
 0x12a   :  { %7265 = dma.done.wait [#allocation14], 640  }
 0x12b   :  { %7266 = vsyncadd [#allocation14], 4294966656 }
 0x12c   :  { %7267 = dma.done.wait [#allocation17], 512  }
 0x12d   :  { %7268 = vsyncadd [#allocation17], 4294966784 }
 0x12e   :  { %7269 = dma.done.wait [#allocation20], 640  }
 0x12f   :  { %7270 = vsyncadd [#allocation20], 4294966656 }
 0x130   :  { %7271 = dma.done.wait [#allocation23], 1536  }
 0x131   :  { %7272 = vsyncadd [#allocation23], 4294965760 }
 0x132   :  { %7273 = dma.done.wait [#allocation26], 1280  }
 0x133   :  { %7274 = vsyncadd [#allocation26], 4294966016 }
 0x134   :  { %7275 = dma.done.wait [#allocation29], 3072  }
 0x135   :  { %7276 = vsyncadd [#allocation29], 4294964224 }
 0x136   :  { %7277 = dma.done.wait [#allocation32], 128  }
 0x137   :  { %7278 = vsyncadd [#allocation32], 4294967168  ;;  %s8154_s0 = sld [smem:[#allocation44_spill]]  ;;  %v7343_v0 = vmov 0   ;;  %v6727_v1 = vld [vmem:[#allocation4 + $0x24] ss:$8 sps:$4 sm:$0xff]  }
 0x138   :  { %517 = vmatprep.mubr.bf16.mxu0 %v7343_v0  ;;  %v6729_v2 = vld [vmem:[#allocation4 + $0x20] ss:$8 sps:$4 sm:$0xff]   ;;  %495 = vmatprep.subr.bf16.mxu0 %v6727_v1  ;;  %v6730_v3 = vld [vmem:[#allocation4 + $0x14] ss:$8 sps:$4 sm:$0xff]   ;;  %v6732_v4 = vld [vmem:[#allocation4 + $0x10] ss:$8 sps:$4 sm:$0xff]  }
 0x139   :  { %496 = vmatpush1.bf16.msra.mxu0 %v6729_v2  ;;  %v6733_v5 = vld [vmem:[#allocation4 + $0x4] ss:$8 sps:$4 sm:$0xff]   ;;  %v6735_v6 = vld [vmem:[#allocation4] ss:$8 sps:$4 sm:$0xff]   ;;  %vm478_vm0 = vcmask 392192   ;;  %v434_v18 = vld [vmem:[#allocation2 + $0x10] sm:$0xff] }
 0x13a   :  { %497 = vmatprep.subr.bf16.mxu0 %v6730_v3  ;;  %vm554_vm1 = vcmask 261120   ;;  %v436_v22 = vld [vmem:[#allocation2 + $0x20] sm:$0xff]  ;;  %v437_v23 = vld [vmem:[#allocation2 + $0x28] sm:$0xff]  ;;  %v435_v29 = vld [vmem:[#allocation2 + $0x18] sm:$0xff]  ;;  %vm966_vm2 = vcmask 523264   ;;  %v7344_v1 = vmov 0.0  }
 0x13b   :  { %6198 = vmatprep.mubr.msk.f32.mxu1 %vm554_vm1, %v434_v18  ;;  %v438_v30 = vld [vmem:[#allocation2 + $0x30] sm:$0xff]  ;;  %v439_v34 = vld [vmem:[#allocation2 + $0x38] sm:$0xff]  ;;  %v432_v35 = vld [vmem:[#allocation2] sm:$0xff]  ;;  %vm7345_vm3 = vmmov 0   ;;  %vm1021_vm4 = vcmask 130048   ;;  %s8155_s26 = sld [smem:[#allocation47_spill]] }
 0x13c   :  { %v433_v36 = vld [vmem:[#allocation2 + $0x8] sm:$0xff]  ;;  %v6741_v39 = vld [vmem:[#allocation7 + $0x24] ss:$8 sps:$4 sm:$0xff]   ;;  %v6739_v40 = vld [vmem:[#allocation7 + $0x20] ss:$8 sps:$4 sm:$0xff]   ;;  %s8156_s15 = sld [smem:[#allocation45_spill]] }
 0x13d   :  { %v428_v7 = vld [vmem:[%s8154_s0] sm:$0xff]  ;;  %v429_v8 = vld [vmem:[%s8154_s0 + $0x8] sm:$0xff]  ;;  %498 = vmatpush1.bf16.msra.mxu0 %v6732_v4  ;;  %v430_v10 = vld [vmem:[%s8154_s0 + $0x10] sm:$0xff]  ;;  %s8157_s21 = sld [smem:[#allocation46_spill]]  ;;  %s7346_s19 = smov 96   ;;  %vm1744_vm5 = vcmask 64512  }
 0x13e   :  { %499 = vmatprep.subr.bf16.mxu0 %v6733_v5  ;;  %v446_v9 = vpack.c.bf16 %v429_v8, %v428_v7  ;;  %v431_v11 = vld [vmem:[%s8154_s0 + $0x18] sm:$0xff]  ;;  %v6736_v37 = vld [vmem:[#allocation7 + $0x30] ss:$8 sps:$4 sm:$0xff]   ;;  %v6738_v38 = vld [vmem:[#allocation7 + $0x34] ss:$8 sps:$4 sm:$0xff]   ;;  %vm2044_vm6 = vcmask 257024  }
 0x13f   :  { %v447_v12 = vpack.c.bf16 %v431_v11, %v430_v10  ;;  %v6744_v41 = vld [vmem:[#allocation7 + $0x14] ss:$8 sps:$4 sm:$0xff]   ;;  %v6742_v42 = vld [vmem:[#allocation7 + $0x10] ss:$8 sps:$4 sm:$0xff]   ;;  %v6747_v43 = vld [vmem:[#allocation7 + $0x4] ss:$8 sps:$4 sm:$0xff]  }
 0x140   :  { %v6745_v44 = vld [vmem:[#allocation7] ss:$8 sps:$4 sm:$0xff]   ;;  %v900_v10 = vld [vmem:[#allocation6 + $0x18] sm:$0xff]  ;;  %s8158_s30 = sld [smem:[#allocation50_spill]]  ;;  %s7347_s20 = smov 80   ;;  %vm2445_vm7 = vcmask 1043456  }
 0x141   :  { %500 = vmatpush1.bf16.msra.mxu0 %v6735_v6  ;;  %v898_v8 = vld [vmem:[#allocation6 + $0x8] sm:$0xff]  ;;  %s8159_s24 = sld [smem:[#allocation48_spill]]  ;;  %s7348_s18 = smov 112   ;;  %vm2441_vm8 = vcmask 31744   ;;  %vm2820_vm9 = vcmask 1041408   ;;  %vm2816_vm10 = vcmask 15360  }
 0x142   :  { %v914_v18 = vld [vmem:[%s8155_s26 + $0x18] sm:$0xff]  ;;  %s8160_s16 = sld [smem:[#allocation49_spill]] }
 0x143   :  { %s8161_s22 = sld [smem:[#allocation55_spill]] }
 0x144   :  { %5811 = vmatmul.mubr.msk.bf16.vlgmr.msra.gmra.mxu0 %vm478_vm0, %v446_v9  ;;  %s8162_s14 = sld [smem:[#allocation52_spill]] }
 0x145   :  { %527 = vmatprep.mubr.bf16.mxu0 %v7343_v0  ;;  %s8163_s12 = sld [smem:[#allocation53_spill]] }
 0x146   :  { %s8165_s25 = sld [smem:[#allocation57_spill]] }
 0x147   :  { %s8166_s10 = sld [smem:[#allocation58_spill]] }
 0x148   :  { %s8167_s23 = sld [smem:[#allocation61_spill]] }
 0x149   :  { %s8168_s28 = sld [smem:[#allocation62_spill]] }
 0x14c   :  { %5812 = vmatmul.mubr.msk.bf16.gmra.mxu0 %vm478_vm0, %v447_v12  ;;  %v897_v12 = vld [vmem:[#allocation6] sm:$0xff] }
 0x14d   :  { %6231 = vmatprep.mubr.msk.f32.mxu0 %vm554_vm1, %v436_v22 }
 0x204   :  { %v7631_v13 = vpop.f32.mrf.mxu0 }
 0x206   :  { %v521_v14 = vpop.f32.mrf.mxu0 }
 0x208   :  { %v7633_v15 = vpop.f32.mrf.mxu0 }
 0x209   :  { %544 = vrot.lane.b32.xlu1 %v7633_v15, %s7322_s13 }
 0x20a   :  { %v525_v16 = vpop.f32.mrf.mxu0 }
 0x20c   :  { %v529_v17 = vpop.f32.mrf.mxu0 }
 0x20d   :  { %542 = vrot.lane.b32.xlu1 %v7631_v13, %s7322_s13 }
 0x20e   :  { %v531_v19 = vpop.f32.mrf.mxu0 }
 0x210   :  { %v533_v20 = vpop.f32.mrf.mxu0 }
 0x211   :  { %644 = vrot.lane.b32.xlu1 %v531_v19, %s7322_s13  ;;  %548 = vrot.lane.b32.xlu0 %v533_v20, %s7322_s13 }
 0x212   :  { %v535_v21 = vpop.f32.mrf.mxu0 }
 0x213   :  { %6223 = vmatprep.subr.mxu0 %v535_v21 }
 0x214   :  { %6224 = vmatpush3.msra.mxu0 %v535_v21 }
 0x215   :  { %640 = vrot.lane.b32.xlu1 %v521_v14, %s7322_s13  ;;  %546 = vrot.lane.b32.xlu0 %v529_v17, %s7322_s13 }
 0x216   :  { %6225 = vmatprep.subr.mxu0 %v531_v19 }
 0x217   :  { %6226 = vmatpush3.msra.mxu0 %v531_v19  ;;  %v913_v19 = vld [vmem:[%s8155_s26 + $0x10] sm:$0xff] }
 0x218   :  { %6227 = vmatprep.subr.mxu0 %v525_v16 }
 0x219   :  { %6228 = vmatpush3.msra.mxu0 %v525_v16  ;;  %646 = vrot.lane.b32.xlu0 %v535_v21, %s7322_s13  ;;  %v911_v21 = vld [vmem:[%s8155_s26] sm:$0xff] }
 0x21a   :  { %6229 = vmatprep.subr.mxu0 %v521_v14 }
 0x21b   :  { %6230 = vmatpush3.msra.mxu0 %v521_v14  ;;  %v918_v14 = vld [vmem:[%s8155_s26 + $0x38] sm:$0xff] }
 0x21c   :  { %6232 = vmatmul.mubr.msk.f32.vlgmr.msra.gmra.mxu0 %vm554_vm1, %v437_v23  ;;  %6234 = vmatprep.subr.mxu0 %v7344_v1 }
 0x21d   :  { %642 = vrot.lane.b32.xlu0 %v525_v16, %s7322_s13  ;;  %6238 = vmatprep.mubr.msk.f32.mxu0 %vm7345_vm3, %v7344_v1  ;;  %v916_v16 = vld [vmem:[%s8155_s26 + $0x28] sm:$0xff] }
 0x27b   :  { %v545_v24 = vpop.permute.xlu1 %544 }
 0x27f   :  { %v543_v26 = vpop.permute.xlu1 %542 }
 0x283   :  { %v549_v25 = vpop.permute.xlu0 %548  ;;  %v645_v31 = vpop.permute.xlu1 %644 }
 0x284   :  { %6190 = vmatprep.subr.mxu1 %v549_v25 }
 0x285   :  { %6191 = vmatpush3.msra.mxu1 %v549_v25 }
 0x287   :  { %v547_v27 = vpop.permute.xlu0 %546  ;;  %v641_v33 = vpop.permute.xlu1 %640 }
 0x288   :  { %6192 = vmatprep.subr.mxu1 %v547_v27 }
 0x289   :  { %6193 = vmatpush3.msra.mxu1 %v547_v27 }
 0x28a   :  { %6194 = vmatprep.subr.mxu1 %v545_v24 }
 0x28b   :  { %6195 = vmatpush3.msra.mxu1 %v545_v24  ;;  %v647_v28 = vpop.permute.xlu0 %646 }
 0x28c   :  { %6196 = vmatprep.subr.mxu1 %v543_v26 }
 0x28d   :  { %6197 = vmatpush3.msra.mxu1 %v543_v26 }
 0x28e   :  { %6199 = vmatmul.mubr.msk.f32.vlgmr.msra.gmra.mxu1 %vm554_vm1, %v435_v29  ;;  %6201 = vmatprep.subr.mxu1 %v647_v28 }
 0x28f   :  { %6202 = vmatpush3.msra.mxu1 %v647_v28  ;;  %6209 = vmatprep.mubr.msk.f32.mxu1 %vm554_vm1, %v438_v30  ;;  %v643_v32 = vpop.permute.xlu0 %642 }
 0x290   :  { %6203 = vmatprep.subr.mxu1 %v645_v31 }
 0x291   :  { %6204 = vmatpush3.msra.mxu1 %v645_v31 }
 0x292   :  { %6205 = vmatprep.subr.mxu1 %v643_v32 }
 0x293   :  { %6206 = vmatpush3.msra.mxu1 %v643_v32 }
 0x294   :  { %6207 = vmatprep.subr.mxu1 %v641_v33 }
 0x295   :  { %6208 = vmatpush3.msra.mxu1 %v641_v33 }
 0x296   :  { %6210 = vmatmul.mubr.msk.f32.vlgmr.msra.gmra.mxu1 %vm554_vm1, %v439_v34  ;;  %6212 = vmatprep.subr.mxu1 %v533_v20 }
 0x297   :  { %6213 = vmatpush3.msra.mxu1 %v533_v20  ;;  %6220 = vmatprep.mubr.msk.f32.mxu1 %vm554_vm1, %v432_v35  ;;  %v912_v20 = vld [vmem:[%s8155_s26 + $0x8] sm:$0xff] }
 0x298   :  { %6214 = vmatprep.subr.mxu1 %v529_v17 }
 0x299   :  { %6215 = vmatpush3.msra.mxu1 %v529_v17  ;;  %v915_v17 = vld [vmem:[%s8155_s26 + $0x20] sm:$0xff] }
 0x29a   :  { %6216 = vmatprep.subr.mxu1 %v7633_v15 }
 0x29b   :  { %6217 = vmatpush3.msra.mxu1 %v7633_v15  ;;  %v917_v15 = vld [vmem:[%s8155_s26 + $0x30] sm:$0xff] }
 0x29c   :  { %6218 = vmatprep.subr.mxu1 %v7631_v13 }
 0x29d   :  { %6219 = vmatpush3.msra.mxu1 %v7631_v13  ;;  %v899_v13 = vld [vmem:[#allocation6 + $0x10] sm:$0xff] }
 0x29e   :  { %6221 = vmatmul.mubr.msk.f32.vlgmr.msra.gmra.mxu1 %vm554_vm1, %v433_v36  ;;  %978 = vmatprep.subr.bf16.mxu1 %v6738_v38 }
 0x29f   :  { %1002 = vmatprep.mubr.bf16.mxu1 %v7343_v0  ;;  %979 = vmatpush1.bf16.msra.mxu1 %v6736_v37 }
 0x2a0   :  { %980 = vmatprep.subr.bf16.mxu1 %v6741_v39 }
 0x2a3   :  { %981 = vmatpush1.bf16.msra.mxu1 %v6739_v40 }
 0x2a4   :  { %982 = vmatprep.subr.bf16.mxu1 %v6744_v41 }
 0x2a7   :  { %983 = vmatpush1.bf16.msra.mxu1 %v6742_v42 }
 0x2a8   :  { %984 = vmatprep.subr.bf16.mxu1 %v6747_v43 }
 0x2ab   :  { %985 = vmatpush1.bf16.msra.mxu1 %v6745_v44 }
 0x2ac   :  { %6262 = vmatprep.subr.mxu1 %v7344_v1 }
 0x2dc   :  { %v6233_v48 = vpop.f32.mrf.mxu0 }
 0x2de   :  { %v886_v50 = vpop.f32.mrf.mxu0 }
 0x34e   :  { %v6200_v45 = vpop.f32.mrf.mxu1 }
 0x350   :  { %v627_v46 = vpop.f32.mrf.mxu1 }
 0x356   :  { %v6211_v47 = vpop.f32.mrf.mxu1 }
 0x357   :  { %v892_v52 = vadd.f32 %v6233_v48, %v6211_v47  ;;  %v920_v48 = vld [vmem:[#allocation9 + $0x8] sm:$0xff] }
 0x358   :  { %v724_v49 = vpop.f32.mrf.mxu1 }
 0x359   :  { %v887_v55 = vadd.f32 %v886_v50, %v724_v49  ;;  %v919_v49 = vld [vmem:[#allocation9] sm:$0xff] }
 0x35e   :  { %v6222_v51 = vpop.f32.mrf.mxu1 }
 0x35f   :  { %v811_v53 = vadd.f32 %v6222_v51, %v6200_v45 }
 0x360   :  { %v805_v54 = vpop.f32.mrf.mxu1 }
 0x361   :  { %v7658_v56 = vadd.f32 %v892_v52, %v811_v53  ;;  %v806_v57 = vadd.f32 %v805_v54, %v627_v46 }
 0x363   :  { %v922_v58 = vmul.f32 0.2, %v7658_v56  ;;  %v7661_v59 = vadd.f32 %v887_v55, %v806_v57 }
 0x365   :  { %v921_v60 = vmul.f32 0.2, %v7661_v59  ;;  %v924_v61 = vmax.f32 %v7658_v56, %v922_v58 }
 0x367   :  { %v923_v62 = vmax.f32 %v7661_v59, %v921_v60 }
 0x369   :  { %v925_v63 = vpack.c.bf16 %v924_v61, %v923_v62  ;;  %v909_v62 = vld [vmem:[%s8156_s15] sm:$0x1] }
 0x36b   :  { %5829 = vmatmul.mubr.msk.bf16.vlgmr.msra.gmra.mxu1 %vm966_vm2, %v925_v63 }
 0x36c   :  { %6278 = vmatprep.mubr.msk.f32.mxu1 %vm7345_vm3, %v7344_v1  ;;  %6263 = vmatpush3.msra.mxu1 %v918_v14 }
 0x36d   :  { %6264 = vmatprep.subr.mxu1 %v7344_v1 }
 0x36e   :  { %6265 = vmatpush3.msra.mxu1 %v917_v15 }
 0x36f   :  { %6266 = vmatprep.subr.mxu1 %v7344_v1 }
 0x370   :  { %6267 = vmatpush3.msra.mxu1 %v916_v16 }
 0x371   :  { %6268 = vmatprep.subr.mxu1 %v7344_v1 }
 0x372   :  { %6269 = vmatpush3.msra.mxu1 %v915_v17 }
 0x373   :  { %6270 = vmatprep.subr.mxu1 %v7344_v1 }
 0x374   :  { %6271 = vmatpush3.msra.mxu1 %v914_v18 }
 0x375   :  { %6272 = vmatprep.subr.mxu1 %v7344_v1 }
 0x376   :  { %6273 = vmatpush3.msra.mxu1 %v913_v19 }
 0x377   :  { %6274 = vmatprep.subr.mxu1 %v7344_v1 }
 0x378   :  { %6275 = vmatpush3.msra.mxu1 %v912_v20 }
 0x379   :  { %6276 = vmatprep.subr.mxu1 %v7344_v1 }
 0x37a   :  { %6277 = vmatpush3.msra.mxu1 %v911_v21 }
 0x37b   :  { %6300 = vmatprep.subr.mxu1 %v7344_v1 }
 0x42b   :  { %v1004_v2 = vpop.f32.mrf.mxu1 }
 0x42c   :  { %1015 = vrot.lane.b32.xlu1 %v1004_v2, %s7322_s13 }
 0x42d   :  { %v1006_v3 = vpop.f32.mrf.mxu1 }
 0x42f   :  { %v1008_v4 = vpop.f32.mrf.mxu1 }
 0x430   :  { %1097 = vrot.lane.b32.xlu1 %v1006_v3, %s7322_s13  ;;  %1017 = vrot.lane.b32.xlu0 %v1008_v4, %s7322_s13 }
 0x431   :  { %v1010_v5 = vpop.f32.mrf.mxu1 }
 0x434   :  { %1099 = vrot.lane.b32.xlu0 %v1010_v5, %s7322_s13 }
 0x49e   :  { %v1016_v6 = vpop.permute.xlu1 %1015 }
 0x4a2   :  { %v1018_v7 = vpop.permute.xlu0 %1017  ;;  %v1098_v11 = vpop.permute.xlu1 %1097 }
 0x4a3   :  { %6235 = vmatpush3.msra.mxu0 %v1018_v7  ;;  %v6749_v7 = vld [vmem:[#allocation12 + $0x10] sm:$0xff]  }
 0x4a4   :  { %6236 = vmatprep.subr.mxu0 %v7344_v1 }
 0x4a5   :  { %6237 = vmatpush3.msra.mxu0 %v1016_v6  ;;  %v6748_v6 = vld [vmem:[#allocation12 + $0x18] sm:$0xff]  }
 0x4a6   :  { %6239 = vmatmul.mubr.msk.f32.vlgmr.msra.gmra.mxu0 %vm1021_vm4, %v898_v8  ;;  %6241 = vmatprep.subr.mxu0 %v7344_v1  ;;  %v1100_v9 = vpop.permute.xlu0 %1099  ;;  %v6750_v8 = vld [vmem:[#allocation12 + $0x8] sm:$0xff]  }
 0x4a7   :  { %6242 = vmatpush3.msra.mxu0 %v1100_v9  ;;  %6245 = vmatprep.mubr.msk.f32.mxu0 %vm7345_vm3, %v7344_v1  ;;  %v6751_v9 = vld [vmem:[#allocation12] sm:$0xff]  }
 0x4a8   :  { %6243 = vmatprep.subr.mxu0 %v7344_v1 }
 0x4a9   :  { %6244 = vmatpush3.msra.mxu0 %v1098_v11 }
 0x4aa   :  { %6246 = vmatmul.mubr.msk.f32.vlgmr.msra.gmra.mxu0 %vm1021_vm4, %v900_v10  ;;  %6248 = vmatprep.subr.mxu0 %v7344_v1  ;;  %v1640_v10 = vlaneseq }
 0x4ab   :  { %6249 = vmatpush3.msra.mxu0 %v1008_v4  ;;  %6252 = vmatprep.mubr.msk.f32.mxu0 %vm7345_vm3, %v7344_v1 }
 0x4ac   :  { %6250 = vmatprep.subr.mxu0 %v7344_v1  ;;  %v1641_v11 = vshrl.u32 %v1640_v10, 7 }
 0x4ad   :  { %6251 = vmatpush3.msra.mxu0 %v1004_v2 }
 0x4ae   :  { %6253 = vmatmul.mubr.msk.f32.vlgmr.msra.gmra.mxu0 %vm1021_vm4, %v897_v12  ;;  %6255 = vmatprep.subr.mxu0 %v7344_v1  ;;  %v7750_v12 = vsub.s32 0, %v1641_v11 }
 0x4af   :  { %6256 = vmatpush3.msra.mxu0 %v1010_v5  ;;  %6259 = vmatprep.mubr.msk.f32.mxu0 %vm7345_vm3, %v7344_v1 }
 0x4b0   :  { %6257 = vmatprep.subr.mxu0 %v7344_v1 }
 0x4b1   :  { %6258 = vmatpush3.msra.mxu0 %v1006_v3  ;;  %v910_v3 = vld [vmem:[%s8157_s21] sm:$0x1] }
 0x4b2   :  { %6260 = vmatmul.mubr.msk.f32.vlgmr.msra.gmra.mxu0 %vm1021_vm4, %v899_v13  ;;  %6281 = vmatprep.subr.mxu0 %v7344_v1 }
 0x4b3   :  { %6297 = vmatprep.mubr.msk.f32.mxu0 %vm7345_vm3, %v7344_v1  ;;  %6282 = vmatpush3.msra.mxu0 %v918_v14 }
 0x4b4   :  { %6283 = vmatprep.subr.mxu0 %v7344_v1 }
 0x4b5   :  { %6284 = vmatpush3.msra.mxu0 %v917_v15 }
 0x4b6   :  { %6285 = vmatprep.subr.mxu0 %v7344_v1 }
 0x4b7   :  { %6286 = vmatpush3.msra.mxu0 %v916_v16 }
 0x4b8   :  { %6287 = vmatprep.subr.mxu0 %v7344_v1 }
 0x4b9   :  { %6288 = vmatpush3.msra.mxu0 %v915_v17 }
 0x4ba   :  { %6289 = vmatprep.subr.mxu0 %v7344_v1 }
 0x4bb   :  { %6290 = vmatpush3.msra.mxu0 %v914_v18 }
 0x4bc   :  { %6291 = vmatprep.subr.mxu0 %v7344_v1 }
 0x4bd   :  { %6292 = vmatpush3.msra.mxu0 %v913_v19 }
 0x4be   :  { %6293 = vmatprep.subr.mxu0 %v7344_v1 }
 0x4bf   :  { %6294 = vmatpush3.msra.mxu0 %v912_v20 }
 0x4c0   :  { %6295 = vmatprep.subr.mxu0 %v7344_v1 }
 0x4c1   :  { %6296 = vmatpush3.msra.mxu0 %v911_v21 }
 0x4c2   :  { %6326 = vmatprep.subr.mxu0 %v7344_v1 }
 0x566   :  { %v1091_v22 = vpop.f32.mrf.mxu0 }
 0x568   :  { %v6240_v23 = vpop.f32.mrf.mxu0 }
 0x56a   :  { %v1172_v24 = vpop.f32.mrf.mxu0 }
 0x56c   :  { %v6247_v25 = vpop.f32.mrf.mxu0 }
 0x56e   :  { %v1245_v26 = vpop.f32.mrf.mxu0 }
 0x56f   :  { %v1246_v29 = vadd.f32 %v1245_v26, %v1091_v22 }
 0x570   :  { %v6254_v27 = vpop.f32.mrf.mxu0 }
 0x572   :  { %v1318_v28 = vpop.f32.mrf.mxu0 }
 0x573   :  { %v1319_v30 = vadd.f32 %v1318_v28, %v1172_v24  ;;  %v1651_v28 = vld [vmem:[#allocation10 + $0x4] sm:$0xf] }
 0x574   :  { %v6261_v31 = vpop.f32.mrf.mxu0 }
 0x575   :  { %v7721_v32 = vadd.f32 %v1319_v30, %v1246_v29  ;;  %v1653_v31 = vld [vmem:[#allocation10 + $0xc] sm:$0xf] }
 0x577   :  { %v1323_v33 = vsel %vm966_vm2, %v7721_v32, 0.0  ;;  %v1403_v34 = vmul.f32 %v7721_v32, %v7721_v32 }
 0x578   :  { %v1324_v35 = vrot.slane %v1323_v33, 4 }
 0x579   :  { %v1404_v36 = vsel %vm966_vm2, %v1403_v34, 0.0  ;;  %v1652_v34 = vld [vmem:[#allocation10 + $0x8] sm:$0xf] }
 0x57a   :  { %v1325_v37 = vadd.f32 %v1324_v35, %v1323_v33  ;;  %v1405_v38 = vrot.slane %v1404_v36, 4  ;;  %v1667_v35 = vld [vmem:[#allocation13 + $0x18] sm:$0xff] }
 0x57c   :  { %v1326_v39 = vrot.slane %v1325_v37, 2  ;;  %v1406_v40 = vadd.f32 %v1405_v38, %v1404_v36  ;;  %v1666_v36 = vld [vmem:[#allocation13 + $0x10] sm:$0xff]  ;;  %v1664_v38 = vld [vmem:[#allocation13] sm:$0xff] }
 0x57e   :  { %v1327_v41 = vadd.f32 %v1326_v39, %v1325_v37  ;;  %v1407_v42 = vrot.slane %v1406_v40, 2  ;;  %v1665_v37 = vld [vmem:[#allocation13 + $0x8] sm:$0xff] }
 0x580   :  { %v1328_v43 = vrot.slane %v1327_v41, 1  ;;  %v1408_v44 = vadd.f32 %v1407_v42, %v1406_v40 }
 0x582   :  { %v1329_v45 = vadd.f32 %v1328_v43, %v1327_v41  ;;  %v1409_v46 = vrot.slane %v1408_v44, 1 }
 0x584   :  { %6279 = vmatmul.mubr.msk.f32.vlgmr.msra.gmra.mxu1 %vm966_vm2, %v1329_v45  ;;  %v1410_v47 = vadd.f32 %v1409_v46, %v1408_v44 }
 0x585   :  { %6304 = vmatprep.mubr.msk.f32.mxu1 %vm7345_vm3, %v7344_v1  ;;  %6301 = vmatpush3.msra.mxu1 %v920_v48 }
 0x586   :  { %6298 = vmatmul.mubr.msk.f32.vlgmr.msra.gmra.mxu0 %vm966_vm2, %v1410_v47  ;;  %6302 = vmatprep.subr.mxu1 %v7344_v1 }
 0x587   :  { %6328 = vmatprep.mubr.msk.f32.mxu0 %vm7345_vm3, %v7344_v1  ;;  %6303 = vmatpush3.msra.mxu1 %v919_v49 }
 0x588   :  { %6307 = vmatprep.subr.mxu1 %v7344_v1 }
 0x644   :  { %v1399_v50 = vpop.f32.mrf.mxu1 }
 0x645   :  { %v1484_v51 = vmul.f32 0.03125, %v1399_v50 }
 0x646   :  { %v6280_v52 = vpop.f32.mrf.mxu1  ;;  %v1480_v53 = vpop.f32.mrf.mxu0 }
 0x647   :  { %v1486_v54 = vmul.f32 %v1484_v51, %v1484_v51  ;;  %v1485_v55 = vmul.f32 0.03125, %v1480_v53 }
 0x648   :  { %v6299_v57 = vpop.f32.mrf.mxu0 }
 0x649   :  { %v1487_v58 = vsub.f32 %v1485_v55, %v1486_v54 }
 0x64b   :  { %v1488_v60 = vmax.f32 %v1487_v58, 0.0 }
 0x64d   :  { %v1489_v61 = vadd.f32 1e-05, %v1488_v60 }
 0x64f   :  { %6839 = vrsqrt.f32 %v1489_v61 }
 0x65c   :  { %v6840_v63 = vpop.eup %6839 }
 0x65d   :  { %v1491_v2 = vmul.f32 %v6840_v63, %v909_v62 }
 0x65f   :  { %6305 = vmatmul.mubr.msk.f32.vlgmr.msra.gmra.mxu1 %vm1021_vm4, %v1491_v2  ;;  %v1492_v4 = vmul.f32 %v1491_v2, %v1484_v51 }
 0x660   :  { %6308 = vmatpush3.msra.mxu1 %v920_v48  ;;  %6311 = vmatprep.mubr.msk.f32.mxu1 %vm7345_vm3, %v7344_v1 }
 0x661   :  { %6309 = vmatprep.subr.mxu1 %v7344_v1  ;;  %v1493_v5 = vsub.f32 %v910_v3, %v1492_v4 }
 0x662   :  { %6310 = vmatpush3.msra.mxu1 %v919_v49 }
 0x663   :  { %6312 = vmatmul.mubr.msk.f32.vlgmr.msra.gmra.mxu1 %vm1021_vm4, %v1493_v5  ;;  %6314 = vmatprep.subr.bf16.mxu1 %v7344_v1  ;;  %v1669_v5 = vld [vmem:[%s8158_s30 + $0x8] sm:$0xff] }
 0x664   :  { %6322 = vmatprep.mubr.msk.bf16.mxu1 %vm7345_vm3, %v7344_v1  ;;  %6315 = vmatpush3.bf16.msra.mxu1 %v6748_v6  ;;  %v1668_v6 = vld [vmem:[%s8158_s30] sm:$0xff] }
 0x665   :  { %6316 = vmatprep.subr.bf16.mxu1 %v7344_v1 }
 0x668   :  { %6317 = vmatpush3.bf16.msra.mxu1 %v6749_v7 }
 0x669   :  { %6318 = vmatprep.subr.bf16.mxu1 %v7344_v1 }
 0x66c   :  { %6319 = vmatpush3.bf16.msra.mxu1 %v6750_v8 }
 0x66d   :  { %6320 = vmatprep.subr.bf16.mxu1 %v7344_v1 }
 0x670   :  { %6321 = vmatpush3.bf16.msra.mxu1 %v6751_v9 }
 0x671   :  { %6346 = vmatprep.subr.mxu1 %v7344_v1 }
 0x71f   :  { %v1563_v13 = vpop.f32.mrf.mxu1 }
 0x720   :  { %v1643_v14 = vrot.slane %v1563_v13, %v7750_v12 }
 0x721   :  { %v6306_v15 = vpop.f32.mrf.mxu1 }
 0x722   :  { %v1644_v17 = vmul.f32 %v1643_v14, %v7721_v32  ;;  %v1650_v32 = vld [vmem:[#allocation10] sm:$0xf] }
 0x723   :  { %v1636_v16 = vpop.f32.mrf.mxu1 }
 0x724   :  { %v1648_v18 = vrot.slane %v1636_v16, %v7750_v12 }
 0x725   :  { %v6313_v19 = vpop.f32.mrf.mxu1 }
 0x726   :  { %v7755_v20 = vadd.f32 %v1648_v18, %v1644_v17  ;;  %v1662_v18 = vld [vmem:[%s8159_s24] sm:$0x1] }
 0x728   :  { %v1670_v21 = vmul.f32 0.2, %v7755_v20 }
 0x72a   :  { %v1671_v22 = vmax.f32 %v7755_v20, %v1670_v21 }
 0x72c   :  { %v1672_v23 = vpack.c.bf16 %v1671_v22, %v1671_v22  ;;  %v1663_v22 = vld [vmem:[%s8160_s16] sm:$0x1] }
 0x72e   :  { %6323 = vmatmul.mubr.msk.bf16.vlgmr.msra.gmra.mxu1 %vm966_vm2, %v1672_v23 }
 0x72f   :  { %6354 = vmatprep.mubr.msk.f32.mxu1 %vm7345_vm3, %v7344_v1  ;;  %6347 = vmatpush3.msra.mxu1 %v1667_v35 }
 0x730   :  { %6348 = vmatprep.subr.mxu1 %v7344_v1 }
 0x731   :  { %6349 = vmatpush3.msra.mxu1 %v1666_v36 }
 0x732   :  { %6350 = vmatprep.subr.mxu1 %v7344_v1 }
 0x733   :  { %6351 = vmatpush3.msra.mxu1 %v1665_v37 }
 0x734   :  { %6352 = vmatprep.subr.mxu1 %v7344_v1 }
 0x735   :  { %6353 = vmatpush3.msra.mxu1 %v1664_v38 }
 0x736   :  { %6368 = vmatprep.subr.mxu1 %v7344_v1 }
 0x7ee   :  { %v1734_v24 = vpop.f32.mrf.mxu1 }
 0x7ef   :  { %1818 = vrot.lane.b32.xlu1 %v1734_v24, %s7335_s8  ;;  %1741 = vrot.lane.b32.xlu0 %v1734_v24, %s7346_s19 }
 0x7f0   :  { %v6324_v25 = vpop.f32.mrf.mxu1 }
 0x7f1   :  { %v6752_v25 = vld [vmem:[#allocation16 + $0x8] sm:$0xff]  }
 0x7f2   :  { %v1737_v26 = vpop.f32.mrf.mxu1 }
 0x7f3   :  { %1967 = vrot.lane.b32.xlu0 %v1734_v24, %s7322_s13  ;;  %v6753_v26 = vld [vmem:[#allocation16] sm:$0xff]  }
 0x7f4   :  { %v6325_v27 = vpop.f32.mrf.mxu1 }
 0x861   :  { %v1742_v29 = vpop.permute.xlu0 %1741  ;;  %v1819_v30 = vpop.permute.xlu1 %1818 }
 0x862   :  { %6327 = vmatpush3.msra.mxu0 %v1742_v29 }
 0x863   :  { %6329 = vmatmul.mubr.msk.f32.vlgmr.msra.gmra.mxu0 %vm1744_vm5, %v1651_v28  ;;  %6331 = vmatprep.subr.mxu0 %v7344_v1 }
 0x864   :  { %6332 = vmatpush3.msra.mxu0 %v1819_v30  ;;  %6333 = vmatprep.mubr.msk.f32.mxu0 %vm7345_vm3, %v7344_v1 }
 0x865   :  { %6336 = vmatprep.subr.mxu0 %v7344_v1  ;;  %v1968_v33 = vpop.permute.xlu0 %1967 }
 0x867   :  { %6334 = vmatmul.mubr.msk.f32.vlgmr.msra.gmra.mxu0 %vm1744_vm5, %v1653_v31 }
 0x868   :  { %6337 = vmatpush3.msra.mxu0 %v1734_v24  ;;  %6338 = vmatprep.mubr.msk.f32.mxu0 %vm7345_vm3, %v7344_v1 }
 0x869   :  { %6341 = vmatprep.subr.mxu0 %v7344_v1 }
 0x86b   :  { %6339 = vmatmul.mubr.msk.f32.vlgmr.msra.gmra.mxu0 %vm1744_vm5, %v1650_v32 }
 0x86c   :  { %6342 = vmatpush3.msra.mxu0 %v1968_v33  ;;  %6343 = vmatprep.mubr.msk.f32.mxu0 %vm7345_vm3, %v7344_v1 }
 0x86d   :  { %6357 = vmatprep.subr.mxu0 %v7344_v1 }
 0x86f   :  { %6344 = vmatmul.mubr.msk.f32.vlgmr.msra.gmra.mxu0 %vm1744_vm5, %v1652_v34 }
 0x870   :  { %6365 = vmatprep.mubr.msk.f32.mxu0 %vm7345_vm3, %v7344_v1  ;;  %6358 = vmatpush3.msra.mxu0 %v1667_v35 }
 0x871   :  { %6359 = vmatprep.subr.mxu0 %v7344_v1 }
 0x872   :  { %6360 = vmatpush3.msra.mxu0 %v1666_v36 }
 0x873   :  { %6361 = vmatprep.subr.mxu0 %v7344_v1 }
 0x874   :  { %6362 = vmatpush3.msra.mxu0 %v1665_v37 }
 0x875   :  { %6363 = vmatprep.subr.mxu0 %v7344_v1 }
 0x876   :  { %6364 = vmatpush3.msra.mxu0 %v1664_v38 }
 0x877   :  { %6375 = vmatprep.subr.mxu0 %v7344_v1 }
 0x923   :  { %v1814_v39 = vpop.f32.mrf.mxu0 }
 0x925   :  { %v6330_v40 = vpop.f32.mrf.mxu0 }
 0x927   :  { %v1890_v41 = vpop.f32.mrf.mxu0 }
 0x929   :  { %v6335_v42 = vpop.f32.mrf.mxu0 }
 0x92a   :  { %v2373_v42 = vld [vmem:[#allocation15 + $0x2] sm:$0x3] }
 0x92b   :  { %v1963_v43 = vpop.f32.mrf.mxu0 }
 0x92c   :  { %v1964_v46 = vadd.f32 %v1963_v43, %v1814_v39 }
 0x92d   :  { %v6340_v44 = vpop.f32.mrf.mxu0 }
 0x92f   :  { %v2039_v45 = vpop.f32.mrf.mxu0 }
 0x930   :  { %v2040_v47 = vadd.f32 %v2039_v45, %v1890_v41  ;;  %v2375_v45 = vld [vmem:[#allocation15 + $0x6] sm:$0x3] }
 0x931   :  { %v6345_v48 = vpop.f32.mrf.mxu0 }
 0x932   :  { %v2043_v49 = vadd.f32 %v2040_v47, %v1964_v46  ;;  %v2374_v46 = vld [vmem:[#allocation15 + $0x4] sm:$0x3]  ;;  %v2372_v48 = vld [vmem:[#allocation15] sm:$0x3] }
 0x934   :  { %v2045_v50 = vsel %vm2044_vm6, %v2043_v49, 0.0  ;;  %v2125_v51 = vmul.f32 %v2043_v49, %v2043_v49 }
 0x935   :  { %v2046_v52 = vrot.slane %v2045_v50, 4 }
 0x936   :  { %v2126_v53 = vsel %vm2044_vm6, %v2125_v51, 0.0 }
 0x937   :  { %v2047_v54 = vadd.f32 %v2046_v52, %v2045_v50  ;;  %v2127_v55 = vrot.slane %v2126_v53, 4 }
 0x939   :  { %v2048_v57 = vrot.slane %v2047_v54, 2  ;;  %v2128_v58 = vadd.f32 %v2127_v55, %v2126_v53 }
 0x93b   :  { %v2049_v60 = vadd.f32 %v2048_v57, %v2047_v54  ;;  %v2129_v61 = vrot.slane %v2128_v58, 2 }
 0x93d   :  { %v2050_v62 = vrot.slane %v2049_v60, 1  ;;  %v2130_v63 = vadd.f32 %v2129_v61, %v2128_v58 }
 0x93f   :  { %v2051_v2 = vadd.f32 %v2050_v62, %v2049_v60  ;;  %v2131_v3 = vrot.slane %v2130_v63, 1 }
 0x941   :  { %6355 = vmatmul.mubr.msk.f32.vlgmr.msra.gmra.mxu1 %vm554_vm1, %v2051_v2  ;;  %v2132_v4 = vadd.f32 %v2131_v3, %v2130_v63 }
 0x942   :  { %6372 = vmatprep.mubr.msk.f32.mxu1 %vm7345_vm3, %v7344_v1  ;;  %6369 = vmatpush3.msra.mxu1 %v1669_v5 }
 0x943   :  { %6366 = vmatmul.mubr.msk.f32.vlgmr.msra.gmra.mxu0 %vm554_vm1, %v2132_v4  ;;  %6370 = vmatprep.subr.mxu1 %v7344_v1  ;;  %v2748_v4 = vld [vmem:[#allocation18] sm:$0xf] }
 0x944   :  { %6379 = vmatprep.mubr.msk.f32.mxu0 %vm7345_vm3, %v7344_v1  ;;  %6376 = vmatpush3.msra.mxu0 %v1669_v5 }
 0x945   :  { %6377 = vmatprep.subr.mxu0 %v7344_v1  ;;  %6371 = vmatpush3.msra.mxu1 %v1668_v6 }
 0x946   :  { %6378 = vmatpush3.msra.mxu0 %v1668_v6  ;;  %6382 = vmatprep.subr.bf16.mxu1 %v7344_v1 }
 0x947   :  { %6390 = vmatprep.subr.mxu0 %v7344_v1 }
 0xa01   :  { %v2121_v7 = vpop.f32.mrf.mxu1 }
 0xa02   :  { %v2206_v8 = vmul.f32 0.125, %v2121_v7 }
 0xa03   :  { %v6356_v9 = vpop.f32.mrf.mxu1  ;;  %v2202_v10 = vpop.f32.mrf.mxu0 }
 0xa04   :  { %v2208_v11 = vmul.f32 %v2206_v8, %v2206_v8  ;;  %v2207_v13 = vmul.f32 0.125, %v2202_v10 }
 0xa05   :  { %v6367_v14 = vpop.f32.mrf.mxu0 }
 0xa06   :  { %v2209_v15 = vsub.f32 %v2207_v13, %v2208_v11  ;;  %v2751_v11 = vld [vmem:[#allocation18 + $0xc] sm:$0xf]  ;;  %v2750_v14 = vld [vmem:[#allocation18 + $0x8] sm:$0xf] }
 0xa08   :  { %v2210_v16 = vmax.f32 %v2209_v15, 0.0 }
 0xa0a   :  { %v2211_v17 = vadd.f32 1e-05, %v2210_v16 }
 0xa0c   :  { %6841 = vrsqrt.f32 %v2211_v17  ;;  %v2759_v17 = vld [vmem:[#allocation21 + $0x18] sm:$0xff] }
 0xa19   :  { %v6842_v19 = vpop.eup %6841 }
 0xa1a   :  { %v2213_v21 = vmul.f32 %v6842_v19, %v1662_v18  ;;  %v2758_v18 = vld [vmem:[#allocation21 + $0x10] sm:$0xff]  ;;  %v2757_v19 = vld [vmem:[#allocation21 + $0x8] sm:$0xff] }
 0xa1c   :  { %6373 = vmatmul.mubr.msk.f32.vlgmr.msra.gmra.mxu1 %vm1021_vm4, %v2213_v21  ;;  %v2214_v23 = vmul.f32 %v2213_v21, %v2206_v8  ;;  %v2749_v8 = vld [vmem:[#allocation18 + $0x4] sm:$0xf]  ;;  %v2756_v21 = vld [vmem:[#allocation21] sm:$0xff] }
 0xa1d   :  { %6386 = vmatprep.mubr.msk.bf16.mxu1 %vm7345_vm3, %v7344_v1  ;;  %6383 = vmatpush3.bf16.msra.mxu1 %v6752_v25 }
 0xa1e   :  { %v2215_v24 = vsub.f32 %v1663_v22, %v2214_v23  ;;  %6384 = vmatprep.subr.bf16.mxu1 %v7344_v1 }
 0xa20   :  { %6380 = vmatmul.mubr.msk.f32.vlgmr.msra.gmra.mxu0 %vm1021_vm4, %v2215_v24 }
 0xa21   :  { %6392 = vmatprep.mubr.msk.f32.mxu0 %vm7345_vm3, %v7344_v1  ;;  %6385 = vmatpush3.bf16.msra.mxu1 %v6753_v26 }
 0xa22   :  { %6405 = vmatprep.subr.mxu1 %v7344_v1 }
 0xadc   :  { %v2285_v27 = vpop.f32.mrf.mxu1 }
 0xadd   :  { %v2365_v28 = vrot.slane %v2285_v27, %v7750_v12 }
 0xade   :  { %v6374_v29 = vpop.f32.mrf.mxu1 }
 0xadf   :  { %v2366_v31 = vmul.f32 %v2365_v28, %v2043_v49  ;;  %v6754_v49 = vld [vmem:[#allocation19] sm:$0xff]  }
 0xae0   :  { %v2358_v30 = vpop.f32.mrf.mxu0 }
 0xae1   :  { %v2370_v32 = vrot.slane %v2358_v30, %v7750_v12 }
 0xae2   :  { %v6381_v33 = vpop.f32.mrf.mxu0 }
 0xae3   :  { %v7815_v34 = vadd.f32 %v2370_v32, %v2366_v31 }
 0xae5   :  { %v2380_v35 = vmul.f32 0.2, %v7815_v34 }
 0xae7   :  { %v2381_v36 = vmax.f32 %v7815_v34, %v2380_v35 }
 0xae9   :  { %v2382_v37 = vpack.c.bf16 %v2381_v36, %v2381_v36 }
 0xaeb   :  { %6387 = vmatmul.mubr.msk.bf16.vlgmr.msra.gmra.mxu1 %vm554_vm1, %v2382_v37 }
 0xaec   :  { %6407 = vmatprep.mubr.msk.f32.mxu1 %vm7345_vm3, %v7344_v1 }
 0xbab   :  { %v2432_v38 = vpop.f32.mrf.mxu1 }
 0xbac   :  { %2518 = vrot.lane.b32.xlu0 %v2432_v38, %s7347_s20  ;;  %2439 = vrot.lane.b32.xlu1 %v2432_v38, %s7348_s18 }
 0xbad   :  { %v6388_v39 = vpop.f32.mrf.mxu1 }
 0xbaf   :  { %v2435_v40 = vpop.f32.mrf.mxu1 }
 0xbb0   :  { %2670 = vrot.lane.b32.xlu1 %v2432_v38, %s7346_s19 }
 0xbb1   :  { %v6389_v41 = vpop.f32.mrf.mxu1 }
 0xc1e   :  { %v2440_v43 = vpop.permute.xlu1 %2439  ;;  %v2519_v44 = vpop.permute.xlu0 %2518 }
 0xc1f   :  { %6391 = vmatpush3.msk.msra.mxu0 %vm2445_vm7, %v2440_v43 }
 0xc20   :  { %6393 = vmatmul.mubr.msk.f32.vlgmr.msra.gmra.mxu0 %vm2441_vm8, %v2373_v42  ;;  %6395 = vmatprep.subr.mxu0 %v7344_v1 }
 0xc21   :  { %6396 = vmatpush3.msk.msra.mxu0 %vm2445_vm7, %v2519_v44  ;;  %6397 = vmatprep.mubr.msk.f32.mxu0 %vm7345_vm3, %v7344_v1 }
 0xc22   :  { %v2671_v47 = vpop.permute.xlu1 %2670  ;;  %6400 = vmatprep.subr.mxu0 %v7344_v1 }
 0xc23   :  { %6406 = vmatpush3.msk.msra.mxu1 %vm2445_vm7, %v2671_v47  ;;  %v2761_v47 = vld [vmem:[%s8161_s22 + $0x8] sm:$0xff] }
 0xc24   :  { %6398 = vmatmul.mubr.msk.f32.vlgmr.msra.gmra.mxu0 %vm2441_vm8, %v2375_v45  ;;  %6408 = vmatmul.mubr.msk.f32.vlgmr.msra.gmra.mxu1 %vm2441_vm8, %v2374_v46 }
 0xc25   :  { %6401 = vmatpush3.msk.msra.mxu0 %vm2445_vm7, %v2432_v38  ;;  %6402 = vmatprep.mubr.msk.f32.mxu0 %vm7345_vm3, %v7344_v1 }
 0xc26   :  { %6410 = vmatprep.subr.bf16.mxu0 %v7344_v1  ;;  %6416 = vmatprep.subr.mxu1 %v7344_v1 }
 0xc27   :  { %6418 = vmatprep.mubr.msk.f32.mxu1 %vm7345_vm3, %v7344_v1 }
 0xc28   :  { %6403 = vmatmul.mubr.msk.f32.vlgmr.msra.gmra.mxu0 %vm2441_vm8, %v2372_v48  ;;  %v2760_v48 = vld [vmem:[%s8161_s22] sm:$0xff] }
 0xc29   :  { %6412 = vmatprep.mubr.msk.bf16.mxu0 %vm7345_vm3, %v7344_v1  ;;  %6411 = vmatpush3.bf16.msra.mxu0 %v6754_v49 }
 0xc2a   :  { %6426 = vmatprep.subr.mxu0 %v7344_v1 }
 0xce0   :  { %v2514_v50 = vpop.f32.mrf.mxu0 }
 0xce2   :  { %v6394_v51 = vpop.f32.mrf.mxu0 }
 0xce4   :  { %v2591_v52 = vpop.f32.mrf.mxu0  ;;  %v2743_v53 = vpop.f32.mrf.mxu1 }
 0xce5   :  { %v2744_v58 = vadd.f32 %v2743_v53, %v2591_v52 }
 0xce6   :  { %v6399_v54 = vpop.f32.mrf.mxu0  ;;  %v6409_v55 = vpop.f32.mrf.mxu1 }
 0xce8   :  { %v2666_v57 = vpop.f32.mrf.mxu0 }
 0xce9   :  { %v2667_v60 = vadd.f32 %v2666_v57, %v2514_v50 }
 0xcea   :  { %v6404_v61 = vpop.f32.mrf.mxu0 }
 0xceb   :  { %v2747_v62 = vadd.f32 %v2744_v58, %v2667_v60  ;;  %v2754_v61 = vld [vmem:[%s8162_s14] sm:$0x1] }
 0xced   :  { %v2762_v63 = vmax.f32 %v2747_v62, 0.0 }
 0xcef   :  { %v2763_v2 = vpack.c.bf16 %v2762_v63, %v2762_v63 }
 0xcf1   :  { %6413 = vmatmul.mubr.msk.bf16.vlgmr.msra.gmra.mxu0 %vm1021_vm4, %v2763_v2  ;;  %v2755_v2 = vld [vmem:[%s8163_s12] sm:$0x1] }
 0xcf2   :  { %6428 = vmatprep.mubr.msk.f32.mxu0 %vm7345_vm3, %v7344_v1 }
 0xdb1   :  { %v2807_v3 = vpop.f32.mrf.mxu0 }
 0xdb2   :  { %2893 = vrot.lane.b32.xlu1 %v2807_v3, %s7335_s8  ;;  %2814 = vrot.lane.b32.xlu0 %v2807_v3, %s7346_s19 }
 0xdb3   :  { %6427 = vmatpush3.msk.msra.mxu0 %vm2820_vm9, %v2807_v3  ;;  %v6414_v5 = vpop.f32.mrf.mxu0 }
 0xdb4   :  { %6429 = vmatmul.mubr.msk.f32.vlgmr.msra.gmra.mxu0 %vm2816_vm10, %v2748_v4  ;;  %6436 = vmatprep.subr.mxu0 %v7344_v1  ;;  %v6755_v5 = vld [vmem:[#allocation24 + $0x30] ss:$8 sps:$4 sm:$0xff]  }
 0xdb5   :  { %v2810_v6 = vpop.f32.mrf.mxu0  ;;  %6444 = vmatprep.mubr.msk.f32.mxu0 %vm7345_vm3, %v7344_v1  ;;  %6437 = vmatpush3.msra.mxu0 %v2759_v17 }
 0xdb6   :  { %3045 = vrot.lane.b32.xlu0 %v2807_v3, %s7322_s13  ;;  %6438 = vmatprep.subr.mxu0 %v7344_v1  ;;  %v6757_v6 = vld [vmem:[#allocation24 + $0x34] ss:$8 sps:$4 sm:$0xff]  }
 0xdb7   :  { %v6415_v7 = vpop.f32.mrf.mxu0  ;;  %6439 = vmatpush3.msra.mxu0 %v2758_v18 }
 0xdb8   :  { %6440 = vmatprep.subr.mxu0 %v7344_v1  ;;  %v6760_v7 = vld [vmem:[#allocation24 + $0x24] ss:$8 sps:$4 sm:$0xff]  }
 0xdb9   :  { %6441 = vmatpush3.msra.mxu0 %v2757_v19 }
 0xdba   :  { %6442 = vmatprep.subr.mxu0 %v7344_v1 }
 0xdbb   :  { %6443 = vmatpush3.msra.mxu0 %v2756_v21 }
 0xdbc   :  { %6458 = vmatprep.subr.mxu0 %v7344_v1 }
 0xe24   :  { %v2815_v9 = vpop.permute.xlu0 %2814  ;;  %v2894_v10 = vpop.permute.xlu1 %2893 }
 0xe25   :  { %6417 = vmatpush3.msk.msra.mxu1 %vm2820_vm9, %v2815_v9  ;;  %v6763_v9 = vld [vmem:[#allocation24 + $0x14] ss:$8 sps:$4 sm:$0xff]  }
 0xe26   :  { %6419 = vmatmul.mubr.msk.f32.vlgmr.msra.gmra.mxu1 %vm2816_vm10, %v2749_v8  ;;  %6421 = vmatprep.subr.mxu1 %v7344_v1  ;;  %v6758_v8 = vld [vmem:[#allocation24 + $0x20] ss:$8 sps:$4 sm:$0xff]  }
 0xe27   :  { %6422 = vmatpush3.msk.msra.mxu1 %vm2820_vm9, %v2894_v10  ;;  %6423 = vmatprep.mubr.msk.f32.mxu1 %vm7345_vm3, %v7344_v1  ;;  %v6761_v10 = vld [vmem:[#allocation24 + $0x10] ss:$8 sps:$4 sm:$0xff]  }
 0xe28   :  { %v3046_v13 = vpop.permute.xlu0 %3045  ;;  %6431 = vmatprep.subr.mxu1 %v7344_v1 }
 0xe2a   :  { %6424 = vmatmul.mubr.msk.f32.vlgmr.msra.gmra.mxu1 %vm2816_vm10, %v2751_v11  ;;  %v6766_v11 = vld [vmem:[#allocation24 + $0x4] ss:$8 sps:$4 sm:$0xff]  }
 0xe2b   :  { %6432 = vmatpush3.msk.msra.mxu1 %vm2820_vm9, %v3046_v13  ;;  %6433 = vmatprep.mubr.msk.f32.mxu1 %vm7345_vm3, %v7344_v1  ;;  %v6764_v13 = vld [vmem:[#allocation24] ss:$8 sps:$4 sm:$0xff]  }
 0xe2c   :  { %6447 = vmatprep.subr.mxu1 %v7344_v1 }
 0xe2e   :  { %6434 = vmatmul.mubr.msk.f32.vlgmr.msra.gmra.mxu1 %vm2816_vm10, %v2750_v14 }
 0xe2f   :  { %6455 = vmatprep.mubr.msk.f32.mxu1 %vm7345_vm3, %v7344_v1  ;;  %6448 = vmatpush3.msra.mxu1 %v2759_v17 }
 0xe30   :  { %6449 = vmatprep.subr.mxu1 %v7344_v1 }
 0xe31   :  { %6450 = vmatpush3.msra.mxu1 %v2758_v18 }
 0xe32   :  { %6451 = vmatprep.subr.mxu1 %v7344_v1 }
 0xe33   :  { %6452 = vmatpush3.msra.mxu1 %v2757_v19 }
 0xe34   :  { %6453 = vmatprep.subr.mxu1 %v7344_v1 }
 0xe35   :  { %6454 = vmatpush3.msra.mxu1 %v2756_v21 }
 0xe36   :  { %6465 = vmatprep.subr.mxu1 %v7344_v1 }
 0xe74   :  { %v3041_v15 = vpop.f32.mrf.mxu0 }
 0xe76   :  { %v6430_v16 = vpop.f32.mrf.mxu0 }
 0xee6   :  { %v2889_v22 = vpop.f32.mrf.mxu1 }
 0xee7   :  { %v3042_v27 = vadd.f32 %v3041_v15, %v2889_v22 }
 0xee8   :  { %v6420_v23 = vpop.f32.mrf.mxu1 }
 0xeea   :  { %v2966_v24 = vpop.f32.mrf.mxu1 }
 0xeec   :  { %v6425_v25 = vpop.f32.mrf.mxu1 }
 0xeee   :  { %v3118_v26 = vpop.f32.mrf.mxu1 }
 0xeef   :  { %v3119_v28 = vadd.f32 %v3118_v26, %v2966_v24  ;;  %v3474_v24 = vmax.f32 %v7815_v34, 0.0 }
 0xef0   :  { %v6435_v29 = vpop.f32.mrf.mxu1 }
 0xef1   :  { %v7878_v30 = vadd.f32 %v3119_v28, %v3042_v27 }
 0xef3   :  { %v3123_v31 = vsel %vm2044_vm6, %v7878_v30, 0.0  ;;  %v3203_v32 = vmul.f32 %v7878_v30, %v7878_v30 }
 0xef4   :  { %v3124_v33 = vrot.slane %v3123_v31, 4 }
 0xef5   :  { %v3204_v35 = vsel %vm2044_vm6, %v3203_v32, 0.0  ;;  %v3451_v32 = vld [vmem:[#allocation22 + $0x8] sm:$0xff] }
 0xef6   :  { %v3125_v36 = vadd.f32 %v3124_v33, %v3123_v31  ;;  %v3205_v37 = vrot.slane %v3204_v35, 4 }
 0xef8   :  { %v3126_v38 = vrot.slane %v3125_v36, 2  ;;  %v3206_v39 = vadd.f32 %v3205_v37, %v3204_v35  ;;  %v3453_v35 = vld [vmem:[#allocation22 + $0x18] sm:$0xff]  ;;  %v3452_v37 = vld [vmem:[#allocation22 + $0x10] sm:$0xff] }
 0xefa   :  { %v3127_v40 = vadd.f32 %v3126_v38, %v3125_v36  ;;  %v3207_v41 = vrot.slane %v3206_v39, 2  ;;  %v3450_v36 = vld [vmem:[#allocation22] sm:$0xff] }
 0xefc   :  { %v3128_v42 = vrot.slane %v3127_v40, 1  ;;  %v3208_v43 = vadd.f32 %v3207_v41, %v3206_v39 }
 0xefe   :  { %v3129_v44 = vadd.f32 %v3128_v42, %v3127_v40  ;;  %v3209_v45 = vrot.slane %v3208_v43, 1 }
 0xf00   :  { %6445 = vmatmul.mubr.msk.f32.vlgmr.msra.gmra.mxu0 %vm554_vm1, %v3129_v44  ;;  %v3210_v46 = vadd.f32 %v3209_v45, %v3208_v43 }
 0xf01   :  { %6462 = vmatprep.mubr.msk.f32.mxu0 %vm7345_vm3, %v7344_v1  ;;  %6459 = vmatpush3.msra.mxu0 %v2761_v47 }
 0xf02   :  { %6456 = vmatmul.mubr.msk.f32.vlgmr.msra.gmra.mxu1 %vm554_vm1, %v3210_v46  ;;  %6460 = vmatprep.subr.mxu0 %v7344_v1 }
 0xf03   :  { %6469 = vmatprep.mubr.msk.f32.mxu1 %vm7345_vm3, %v7344_v1  ;;  %6466 = vmatpush3.msra.mxu1 %v2761_v47 }
 0xf04   :  { %6467 = vmatprep.subr.mxu1 %v7344_v1  ;;  %6461 = vmatpush3.msra.mxu0 %v2760_v48 }
 0xf05   :  { %6468 = vmatpush3.msra.mxu1 %v2760_v48  ;;  %3533 = vmatprep.subr.bf16.mxu0 %v6757_v6 }
 0xf06   :  { %6472 = vmatprep.subr.mxu1 %v7344_v1 }
 0xfc0   :  { %v3199_v49 = vpop.f32.mrf.mxu0 }
 0xfc1   :  { %v3284_v50 = vmul.f32 0.125, %v3199_v49 }
 0xfc2   :  { %v6446_v51 = vpop.f32.mrf.mxu0  ;;  %v3280_v52 = vpop.f32.mrf.mxu1 }
 0xfc3   :  { %v3286_v53 = vmul.f32 %v3284_v50, %v3284_v50  ;;  %v3285_v54 = vmul.f32 0.125, %v3280_v52 }
 0xfc4   :  { %v6457_v55 = vpop.f32.mrf.mxu1 }
 0xfc5   :  { %v3287_v57 = vsub.f32 %v3285_v54, %v3286_v53 }
 0xfc7   :  { %v3288_v58 = vmax.f32 %v3287_v57, 0.0 }
 0xfc9   :  { %v3289_v60 = vadd.f32 1e-05, %v3288_v58 }
 0xfcb   :  { %6843 = vrsqrt.f32 %v3289_v60 }
 0xfd8   :  { %v6844_v62 = vpop.eup %6843 }
 0xfd9   :  { %v3291_v63 = vmul.f32 %v6844_v62, %v2754_v61 }
 0xfdb   :  { %6463 = vmatmul.mubr.msk.f32.vlgmr.msra.gmra.mxu0 %vm1021_vm4, %v3291_v63  ;;  %v3292_v3 = vmul.f32 %v3291_v63, %v3284_v50 }
 0xfdc   :  { %3557 = vmatprep.mubr.bf16.mxu0 %v7343_v0  ;;  %3534 = vmatpush1.bf16.msra.mxu0 %v6755_v5 }
 0xfdd   :  { %v3293_v4 = vsub.f32 %v2755_v2, %v3292_v3  ;;  %3535 = vmatprep.subr.bf16.mxu0 %v6760_v7 }
 0xfdf   :  { %6470 = vmatmul.mubr.msk.f32.vlgmr.msra.gmra.mxu1 %vm1021_vm4, %v3293_v4 }
 0xfe0   :  { %6474 = vmatprep.mubr.msk.f32.mxu1 %vm7345_vm3, %v7344_v1  ;;  %3536 = vmatpush1.bf16.msra.mxu0 %v6758_v8 }
 0xfe1   :  { %3537 = vmatprep.subr.bf16.mxu0 %v6763_v9 }
 0xfe4   :  { %3538 = vmatpush1.bf16.msra.mxu0 %v6761_v10 }
 0xfe5   :  { %3539 = vmatprep.subr.bf16.mxu0 %v6766_v11 }
 0xfe8   :  { %3540 = vmatpush1.bf16.msra.mxu0 %v6764_v13  ;;  %v3473_v13 = vld [vmem:[#allocation25 + $0x8] sm:$0xff] }
 0xfe9   :  { %6492 = vmatprep.subr.mxu0 %v7344_v1 }
0x109b   :  { %v3363_v14 = vpop.f32.mrf.mxu0 }
0x109c   :  { %v3443_v15 = vrot.slane %v3363_v14, %v7750_v12  ;;  %v3472_v14 = vld [vmem:[#allocation25] sm:$0xff] }
0x109d   :  { %v6464_v16 = vpop.f32.mrf.mxu0 }
0x109e   :  { %v3444_v18 = vmul.f32 %v3443_v15, %v7878_v30 }
0x109f   :  { %v3436_v17 = vpop.f32.mrf.mxu1 }
0x10a0   :  { %v3448_v19 = vrot.slane %v3436_v17, %v7750_v12 }
0x10a1   :  { %v6471_v21 = vpop.f32.mrf.mxu1 }
0x10a2   :  { %v3449_v22 = vadd.f32 %v3448_v19, %v3444_v18 }
0x10a4   :  { %v3475_v23 = vmax.f32 %v3449_v22, 0.0 }
0x10a6   :  { %3477 = vrot.lane.b32.xlu1 %v3475_v23, %s7335_s8  ;;  %s8164_s8 = sld [smem:[#allocation59_spill]] }
0x10ac   :  { %v3471_v38 = vld [vmem:[%s8164_s8 + $0x38] sm:$0xff]  ;;  %v3470_v39 = vld [vmem:[%s8164_s8 + $0x30] sm:$0xff]  ;;  %v3469_v40 = vld [vmem:[%s8164_s8 + $0x28] sm:$0xff] }
0x10ad   :  { %v3468_v41 = vld [vmem:[%s8164_s8 + $0x20] sm:$0xff]  ;;  %v3467_v42 = vld [vmem:[%s8164_s8 + $0x18] sm:$0xff]  ;;  %v3466_v43 = vld [vmem:[%s8164_s8 + $0x10] sm:$0xff] }
0x10ae   :  { %v3465_v44 = vld [vmem:[%s8164_s8 + $0x8] sm:$0xff]  ;;  %v3464_v45 = vld [vmem:[%s8164_s8] sm:$0xff] }
0x1118   :  { %v3478_v25 = vpop.permute.xlu1 %3477 }
0x1119   :  { %v3480_v26 = vsel %vm554_vm1, %v3474_v24, %v3478_v25 }
0x111a   :  { %v3481_v27 = vpack.c.bf16 %v3480_v26, %v3480_v26  ;;  %v3462_v26 = vld [vmem:[%s8165_s25] sm:$0x1] }
0x111c   :  { %5884 = vmatmul.mubr.msk.bf16.vlgmr.msra.gmra.mxu0 %vm966_vm2, %v3481_v27 }
0x111d   :  { %6508 = vmatprep.mubr.msk.f32.mxu0 %vm7345_vm3, %v7344_v1  ;;  %6493 = vmatpush3.msra.mxu0 %v3471_v38 }
0x111e   :  { %6494 = vmatprep.subr.mxu0 %v7344_v1 }
0x111f   :  { %6495 = vmatpush3.msra.mxu0 %v3470_v39 }
0x1120   :  { %6496 = vmatprep.subr.mxu0 %v7344_v1 }
0x1121   :  { %6497 = vmatpush3.msra.mxu0 %v3469_v40 }
0x1122   :  { %6498 = vmatprep.subr.mxu0 %v7344_v1 }
0x1123   :  { %6499 = vmatpush3.msra.mxu0 %v3468_v41 }
0x1124   :  { %6500 = vmatprep.subr.mxu0 %v7344_v1 }
0x1125   :  { %6501 = vmatpush3.msra.mxu0 %v3467_v42 }
0x1126   :  { %6502 = vmatprep.subr.mxu0 %v7344_v1 }
0x1127   :  { %6503 = vmatpush3.msra.mxu0 %v3466_v43 }
0x1128   :  { %6504 = vmatprep.subr.mxu0 %v7344_v1 }
0x1129   :  { %6505 = vmatpush3.msra.mxu0 %v3465_v44 }
0x112a   :  { %6506 = vmatprep.subr.mxu0 %v7344_v1 }
0x112b   :  { %6507 = vmatpush3.msra.mxu0 %v3464_v45 }
0x112c   :  { %6530 = vmatprep.subr.mxu0 %v7344_v1 }
0x11dc   :  { %v3559_v28 = vpop.f32.mrf.mxu0 }
0x11dd   :  { %3567 = vrot.lane.b32.xlu0 %v3559_v28, %s7322_s13 }
0x11de   :  { %v3561_v29 = vpop.f32.mrf.mxu0 }
0x11df   :  { %3645 = vrot.lane.b32.xlu1 %v3561_v29, %s7322_s13 }
0x11e0   :  { %v3563_v30 = vpop.f32.mrf.mxu0 }
0x11e2   :  { %v3564_v31 = vpop.f32.mrf.mxu0 }
0x124f   :  { %v3568_v33 = vpop.permute.xlu0 %3567 }
0x1250   :  { %6473 = vmatpush3.msk.msra.mxu1 %vm2445_vm7, %v3568_v33  ;;  %v6769_v33 = vld [vmem:[#allocation28 + $0x74] ss:$8 sps:$4 sm:$0xff]  }
0x1251   :  { %6475 = vmatmul.mubr.msk.f32.vlgmr.msra.gmra.mxu1 %vm2441_vm8, %v3451_v32  ;;  %6477 = vmatprep.subr.mxu1 %v7344_v1  ;;  %v3646_v34 = vpop.permute.xlu1 %3645  ;;  %v6767_v32 = vld [vmem:[#allocation28 + $0x70] ss:$8 sps:$4 sm:$0xff]  }
0x1252   :  { %6478 = vmatpush3.msk.msra.mxu1 %vm2445_vm7, %v3646_v34  ;;  %6479 = vmatprep.mubr.msk.f32.mxu1 %vm7345_vm3, %v7344_v1  ;;  %v6772_v34 = vld [vmem:[#allocation28 + $0x64] ss:$8 sps:$4 sm:$0xff]  }
0x1253   :  { %6482 = vmatprep.subr.mxu1 %v7344_v1 }
0x1255   :  { %6480 = vmatmul.mubr.msk.f32.vlgmr.msra.gmra.mxu1 %vm2441_vm8, %v3453_v35  ;;  %v6770_v35 = vld [vmem:[#allocation28 + $0x60] ss:$8 sps:$4 sm:$0xff]  }
0x1256   :  { %6483 = vmatpush3.msk.msra.mxu1 %vm2445_vm7, %v3559_v28  ;;  %6484 = vmatprep.mubr.msk.f32.mxu1 %vm7345_vm3, %v7344_v1 }
0x1257   :  { %6487 = vmatprep.subr.mxu1 %v7344_v1 }
0x1259   :  { %6485 = vmatmul.mubr.msk.f32.vlgmr.msra.gmra.mxu1 %vm2441_vm8, %v3450_v36  ;;  %v6775_v36 = vld [vmem:[#allocation28 + $0x54] ss:$8 sps:$4 sm:$0xff]  }
0x125a   :  { %6488 = vmatpush3.msk.msra.mxu1 %vm2445_vm7, %v3561_v29  ;;  %6489 = vmatprep.mubr.msk.f32.mxu1 %vm7345_vm3, %v7344_v1  ;;  %v3463_v29 = vld [vmem:[%s8166_s10] sm:$0x1] }
0x125b   :  { %6511 = vmatprep.subr.mxu1 %v7344_v1 }
0x125d   :  { %6490 = vmatmul.mubr.msk.f32.vlgmr.msra.gmra.mxu1 %vm2441_vm8, %v3452_v37  ;;  %v6773_v37 = vld [vmem:[#allocation28 + $0x50] ss:$8 sps:$4 sm:$0xff]  }
0x125e   :  { %6527 = vmatprep.mubr.msk.f32.mxu1 %vm7345_vm3, %v7344_v1  ;;  %6512 = vmatpush3.msra.mxu1 %v3471_v38  ;;  %v6778_v38 = vld [vmem:[#allocation28 + $0x44] ss:$8 sps:$4 sm:$0xff]  }
0x125f   :  { %6513 = vmatprep.subr.mxu1 %v7344_v1 }
0x1260   :  { %6514 = vmatpush3.msra.mxu1 %v3470_v39  ;;  %v6776_v39 = vld [vmem:[#allocation28 + $0x40] ss:$8 sps:$4 sm:$0xff]  }
0x1261   :  { %6515 = vmatprep.subr.mxu1 %v7344_v1 }
0x1262   :  { %6516 = vmatpush3.msra.mxu1 %v3469_v40  ;;  %v6781_v40 = vld [vmem:[#allocation28 + $0x34] ss:$8 sps:$4 sm:$0xff]  }
0x1263   :  { %6517 = vmatprep.subr.mxu1 %v7344_v1 }
0x1264   :  { %6518 = vmatpush3.msra.mxu1 %v3468_v41  ;;  %v6779_v41 = vld [vmem:[#allocation28 + $0x30] ss:$8 sps:$4 sm:$0xff]  }
0x1265   :  { %6519 = vmatprep.subr.mxu1 %v7344_v1 }
0x1266   :  { %6520 = vmatpush3.msra.mxu1 %v3467_v42  ;;  %v6784_v42 = vld [vmem:[#allocation28 + $0x24] ss:$8 sps:$4 sm:$0xff]  }
0x1267   :  { %6521 = vmatprep.subr.mxu1 %v7344_v1 }
0x1268   :  { %6522 = vmatpush3.msra.mxu1 %v3466_v43  ;;  %v6782_v43 = vld [vmem:[#allocation28 + $0x20] ss:$8 sps:$4 sm:$0xff]  }
0x1269   :  { %6523 = vmatprep.subr.mxu1 %v7344_v1 }
0x126a   :  { %6524 = vmatpush3.msra.mxu1 %v3465_v44  ;;  %v6787_v44 = vld [vmem:[#allocation28 + $0x14] ss:$8 sps:$4 sm:$0xff]  }
0x126b   :  { %6525 = vmatprep.subr.mxu1 %v7344_v1 }
0x126c   :  { %6526 = vmatpush3.msra.mxu1 %v3464_v45  ;;  %v6785_v45 = vld [vmem:[#allocation28 + $0x10] ss:$8 sps:$4 sm:$0xff]  }
0x126d   :  { %6537 = vmatprep.subr.mxu1 %v7344_v1 }
0x1311   :  { %v3640_v46 = vpop.f32.mrf.mxu1 }
0x1313   :  { %v6476_v47 = vpop.f32.mrf.mxu1 }
0x1314   :  { %v6788_v47 = vld [vmem:[#allocation28] ss:$8 sps:$4 sm:$0xff]  }
0x1315   :  { %v3718_v48 = vpop.f32.mrf.mxu1 }
0x1317   :  { %v6481_v49 = vpop.f32.mrf.mxu1 }
0x1319   :  { %v3793_v50 = vpop.f32.mrf.mxu1 }
0x131a   :  { %v3794_v53 = vadd.f32 %v3793_v50, %v3640_v46  ;;  %v6790_v46 = vld [vmem:[#allocation28 + $0x4] ss:$8 sps:$4 sm:$0xff]  }
0x131b   :  { %v6486_v51 = vpop.f32.mrf.mxu1 }
0x131d   :  { %v3868_v52 = vpop.f32.mrf.mxu1 }
0x131e   :  { %v3869_v54 = vadd.f32 %v3868_v52, %v3718_v48 }
0x131f   :  { %v6491_v55 = vpop.f32.mrf.mxu1 }
0x1320   :  { %v7959_v57 = vadd.f32 %v3869_v54, %v3794_v53 }
0x1322   :  { %v3873_v58 = vsel %vm966_vm2, %v7959_v57, 0.0  ;;  %v3953_v60 = vmul.f32 %v7959_v57, %v7959_v57 }
0x1323   :  { %v3874_v61 = vrot.slane %v3873_v58, 4 }
0x1324   :  { %v3954_v62 = vsel %vm966_vm2, %v3953_v60, 0.0  ;;  %v4235_v60 = vmax.f32 %v7755_v20, 0.0 }
0x1325   :  { %v3875_v63 = vadd.f32 %v3874_v61, %v3873_v58  ;;  %v3955_v2 = vrot.slane %v3954_v62, 4 }
0x1327   :  { %v3876_v3 = vrot.slane %v3875_v63, 2  ;;  %v3956_v4 = vadd.f32 %v3955_v2, %v3954_v62  ;;  %v4202_v2 = vld [vmem:[#allocation27 + $0x10] sm:$0xff] }
0x1329   :  { %v3877_v5 = vadd.f32 %v3876_v3, %v3875_v63  ;;  %v3957_v6 = vrot.slane %v3956_v4, 2 }
0x132b   :  { %v3878_v7 = vrot.slane %v3877_v5, 1  ;;  %v3958_v8 = vadd.f32 %v3957_v6, %v3956_v4  ;;  %v4203_v6 = vld [vmem:[#allocation27 + $0x18] sm:$0xff] }
0x132d   :  { %v3879_v9 = vadd.f32 %v3878_v7, %v3877_v5  ;;  %v3959_v10 = vrot.slane %v3958_v8, 1  ;;  %v4206_v7 = vld [vmem:[#allocation27 + $0x30] sm:$0xff] }
0x132f   :  { %6509 = vmatmul.mubr.msk.f32.vlgmr.msra.gmra.mxu0 %vm966_vm2, %v3879_v9  ;;  %v3960_v11 = vadd.f32 %v3959_v10, %v3958_v8  ;;  %v4207_v9 = vld [vmem:[#allocation27 + $0x38] sm:$0xff]  ;;  %v4200_v10 = vld [vmem:[#allocation27] sm:$0xff] }
0x1330   :  { %6534 = vmatprep.mubr.msk.f32.mxu0 %vm7345_vm3, %v7344_v1  ;;  %6531 = vmatpush3.msra.mxu0 %v3473_v13 }
0x1331   :  { %6528 = vmatmul.mubr.msk.f32.vlgmr.msra.gmra.mxu1 %vm966_vm2, %v3960_v11  ;;  %6532 = vmatprep.subr.mxu0 %v7344_v1  ;;  %v4201_v11 = vld [vmem:[#allocation27 + $0x8] sm:$0xff] }
0x1332   :  { %6541 = vmatprep.mubr.msk.f32.mxu1 %vm7345_vm3, %v7344_v1  ;;  %6538 = vmatpush3.msra.mxu1 %v3473_v13  ;;  %v4204_v13 = vld [vmem:[#allocation27 + $0x20] sm:$0xff] }
0x1333   :  { %6539 = vmatprep.subr.mxu1 %v7344_v1  ;;  %6533 = vmatpush3.msra.mxu0 %v3472_v14 }
0x1334   :  { %6540 = vmatpush3.msra.mxu1 %v3472_v14  ;;  %4323 = vmatprep.subr.bf16.mxu0 %v6769_v33  ;;  %v4205_v14 = vld [vmem:[#allocation27 + $0x28] sm:$0xff] }
0x13ef   :  { %v3949_v15 = vpop.f32.mrf.mxu0 }
0x13f0   :  { %v4034_v16 = vmul.f32 0.03125, %v3949_v15  ;;  %v4233_v15 = vld [vmem:[#allocation30 + $0x38] sm:$0xff] }
0x13f1   :  { %v6510_v17 = vpop.f32.mrf.mxu0  ;;  %v4030_v18 = vpop.f32.mrf.mxu1 }
0x13f2   :  { %v4036_v19 = vmul.f32 %v4034_v16, %v4034_v16  ;;  %v4035_v21 = vmul.f32 0.03125, %v4030_v18  ;;  %v4231_v17 = vld [vmem:[#allocation30 + $0x28] sm:$0xff]  ;;  %v4230_v18 = vld [vmem:[#allocation30 + $0x20] sm:$0xff] }
0x13f3   :  { %v6529_v22 = vpop.f32.mrf.mxu1 }
0x13f4   :  { %v4037_v23 = vsub.f32 %v4035_v21, %v4036_v19  ;;  %v4229_v19 = vld [vmem:[#allocation30 + $0x18] sm:$0xff]  ;;  %v4228_v21 = vld [vmem:[#allocation30 + $0x10] sm:$0xff]  ;;  %v4227_v22 = vld [vmem:[#allocation30 + $0x8] sm:$0xff] }
0x13f6   :  { %v4038_v24 = vmax.f32 %v4037_v23, 0.0  ;;  %v4226_v23 = vld [vmem:[#allocation30] sm:$0xff] }
0x13f8   :  { %v4039_v25 = vadd.f32 1e-05, %v4038_v24 }
0x13fa   :  { %6845 = vrsqrt.f32 %v4039_v25 }
0x1407   :  { %v6846_v27 = vpop.eup %6845 }
0x1408   :  { %v4041_v28 = vmul.f32 %v6846_v27, %v3462_v26 }
0x140a   :  { %6535 = vmatmul.mubr.msk.f32.vlgmr.msra.gmra.mxu0 %vm1021_vm4, %v4041_v28  ;;  %v4042_v30 = vmul.f32 %v4041_v28, %v4034_v16  ;;  %v4232_v16 = vld [vmem:[#allocation30 + $0x30] sm:$0xff] }
0x140b   :  { %4355 = vmatprep.mubr.bf16.mxu0 %v7343_v0  ;;  %4324 = vmatpush1.bf16.msra.mxu0 %v6767_v32 }
0x140c   :  { %v4043_v31 = vsub.f32 %v3463_v29, %v4042_v30  ;;  %4325 = vmatprep.subr.bf16.mxu0 %v6772_v34 }
0x140e   :  { %6542 = vmatmul.mubr.msk.f32.vlgmr.msra.gmra.mxu1 %vm1021_vm4, %v4043_v31 }
0x140f   :  { %4326 = vmatpush1.bf16.msra.mxu0 %v6770_v35  ;;  %6546 = vmatprep.mubr.msk.f32.mxu1 %vm1744_vm5, %v4202_v2 }
0x1410   :  { %4327 = vmatprep.subr.bf16.mxu0 %v6775_v36 }
0x1413   :  { %4328 = vmatpush1.bf16.msra.mxu0 %v6773_v37 }
0x1414   :  { %4329 = vmatprep.subr.bf16.mxu0 %v6778_v38 }
0x1417   :  { %4330 = vmatpush1.bf16.msra.mxu0 %v6776_v39 }
0x1418   :  { %4331 = vmatprep.subr.bf16.mxu0 %v6781_v40 }
0x141b   :  { %4332 = vmatpush1.bf16.msra.mxu0 %v6779_v41 }
0x141c   :  { %4333 = vmatprep.subr.bf16.mxu0 %v6784_v42 }
0x141f   :  { %4334 = vmatpush1.bf16.msra.mxu0 %v6782_v43 }
0x1420   :  { %4335 = vmatprep.subr.bf16.mxu0 %v6787_v44 }
0x1423   :  { %4336 = vmatpush1.bf16.msra.mxu0 %v6785_v45 }
0x1424   :  { %4337 = vmatprep.subr.bf16.mxu0 %v6790_v46 }
0x1427   :  { %4338 = vmatpush1.bf16.msra.mxu0 %v6788_v47 }
0x1428   :  { %6583 = vmatprep.subr.mxu0 %v7344_v1 }
0x14ca   :  { %v4113_v48 = vpop.f32.mrf.mxu0 }
0x14cb   :  { %v4193_v49 = vrot.slane %v4113_v48, %v7750_v12 }
0x14cc   :  { %v6536_v50 = vpop.f32.mrf.mxu0 }
0x14cd   :  { %v4194_v52 = vmul.f32 %v4193_v49, %v7959_v57 }
0x14ce   :  { %v4186_v51 = vpop.f32.mrf.mxu1 }
0x14cf   :  { %v4198_v53 = vrot.slane %v4186_v51, %v7750_v12 }
0x14d0   :  { %v6543_v54 = vpop.f32.mrf.mxu1 }
0x14d1   :  { %v4199_v55 = vadd.f32 %v4198_v53, %v4194_v52 }
0x14d3   :  { %v4236_v58 = vmax.f32 %v4199_v55, 0.0 }
0x14d5   :  { %4238 = vrot.lane.b32.xlu0 %v4236_v58, %s7322_s13 }
0x1547   :  { %v4239_v61 = vpop.permute.xlu0 %4238 }
0x1548   :  { %v4241_v62 = vsel %vm966_vm2, %v4235_v60, %v4239_v61  ;;  %v4234_v61 = vld [vmem:[#allocation31] sm:$0xff] }
0x1549   :  { %v4242_v63 = vpack.c.bf16 %v4241_v62, %v4241_v62 }
0x154b   :  { %4356 = vmatmul.mubr.bf16.vlgmr.msra.gmra.mxu0 %v4242_v63 }
0x154c   :  { %6599 = vmatprep.mubr.msk.f32.mxu0 %vm7345_vm3, %v7344_v1  ;;  %6584 = vmatpush3.msra.mxu0 %v4233_v15 }
0x154d   :  { %6585 = vmatprep.subr.mxu0 %v7344_v1 }
0x154e   :  { %6586 = vmatpush3.msra.mxu0 %v4232_v16 }
0x154f   :  { %6587 = vmatprep.subr.mxu0 %v7344_v1 }
0x1550   :  { %6588 = vmatpush3.msra.mxu0 %v4231_v17 }
0x1551   :  { %6589 = vmatprep.subr.mxu0 %v7344_v1 }
0x1552   :  { %6590 = vmatpush3.msra.mxu0 %v4230_v18 }
0x1553   :  { %6591 = vmatprep.subr.mxu0 %v7344_v1 }
0x1554   :  { %6592 = vmatpush3.msra.mxu0 %v4229_v19 }
0x1555   :  { %6593 = vmatprep.subr.mxu0 %v7344_v1 }
0x1556   :  { %6594 = vmatpush3.msra.mxu0 %v4228_v21 }
0x1557   :  { %6595 = vmatprep.subr.mxu0 %v7344_v1 }
0x1558   :  { %6596 = vmatpush3.msra.mxu0 %v4227_v22 }
0x1559   :  { %6597 = vmatprep.subr.mxu0 %v7344_v1 }
0x155a   :  { %6598 = vmatpush3.msra.mxu0 %v4226_v23 }
0x160b   :  { %v4357_v57 = vpop.f32.mrf.mxu0 }
0x160c   :  { %4365 = vrot.lane.b32.xlu1 %v4357_v57, %s7322_s13 }
0x160d   :  { %v4359_v3 = vpop.f32.mrf.mxu0 }
0x160e   :  { %4450 = vrot.lane.b32.xlu0 %v4359_v3, %s7322_s13 }
0x160f   :  { %v4361_v4 = vpop.f32.mrf.mxu0 }
0x1611   :  { %v4362_v5 = vpop.f32.mrf.mxu0 }
0x167e   :  { %v4366_v20 = vpop.permute.xlu1 %4365 }
0x167f   :  { %6544 = vmatprep.subr.mxu1 %v4366_v20 }
0x1680   :  { %6545 = vmatpush3.msra.mxu1 %v4366_v20  ;;  %v4451_v8 = vpop.permute.xlu0 %4450 }
0x1681   :  { %6547 = vmatmul.mubr.msk.f32.vlgmr.msra.gmra.mxu1 %vm1744_vm5, %v4203_v6  ;;  %6549 = vmatprep.subr.mxu1 %v4451_v8 }
0x1682   :  { %6550 = vmatpush3.msra.mxu1 %v4451_v8  ;;  %6551 = vmatprep.mubr.msk.f32.mxu1 %vm1744_vm5, %v4206_v7  ;;  %v4224_v8 = vld [vmem:[%s8167_s23] sm:$0x1] }
0x1683   :  { %6554 = vmatprep.subr.mxu1 %v4357_v57 }
0x1685   :  { %6552 = vmatmul.mubr.msk.f32.vlgmr.msra.gmra.mxu1 %vm1744_vm5, %v4207_v9 }
0x1686   :  { %6555 = vmatpush3.msra.mxu1 %v4357_v57  ;;  %6556 = vmatprep.mubr.msk.f32.mxu1 %vm1744_vm5, %v4200_v10 }
0x1687   :  { %6559 = vmatprep.subr.mxu1 %v4359_v3 }
0x1689   :  { %6557 = vmatmul.mubr.msk.f32.vlgmr.msra.gmra.mxu1 %vm1744_vm5, %v4201_v11  ;;  %v4225_v11 = vld [vmem:[%s8168_s28] sm:$0x1] }
0x168a   :  { %6560 = vmatpush3.msra.mxu1 %v4359_v3  ;;  %6561 = vmatprep.mubr.msk.f32.mxu1 %vm1744_vm5, %v4204_v13 }
0x168b   :  { %6564 = vmatprep.subr.mxu1 %v7344_v1 }
0x168d   :  { %6562 = vmatmul.mubr.msk.f32.vlgmr.msra.gmra.mxu1 %vm1744_vm5, %v4205_v14 }
0x168e   :  { %6580 = vmatprep.mubr.msk.f32.mxu1 %vm7345_vm3, %v7344_v1  ;;  %6565 = vmatpush3.msra.mxu1 %v4233_v15  ;;  %v6791_v15 = vld [vmem:[%s7537_s29 + $0xe0] ss:$16 sps:$4 sm:$0xff]  }
0x168f   :  { %6566 = vmatprep.subr.mxu1 %v7344_v1 }
0x1690   :  { %6567 = vmatpush3.msra.mxu1 %v4232_v16  ;;  %v6793_v16 = vld [vmem:[%s7537_s29 + $0xe4] ss:$16 sps:$4 sm:$0xff]  }
0x1691   :  { %6568 = vmatprep.subr.mxu1 %v7344_v1 }
0x1692   :  { %6569 = vmatpush3.msra.mxu1 %v4231_v17  ;;  %v6794_v17 = vld [vmem:[%s7537_s29 + $0xe8] ss:$16 sps:$4 sm:$0xff]  }
0x1693   :  { %6570 = vmatprep.subr.mxu1 %v7344_v1 }
0x1694   :  { %6571 = vmatpush3.msra.mxu1 %v4230_v18  ;;  %v6796_v18 = vld [vmem:[%s7537_s29 + $0xec] ss:$16 sps:$4 sm:$0xff]  }
0x1695   :  { %6572 = vmatprep.subr.mxu1 %v7344_v1  ;;  %5299 = vmatprep.subr.bf16.mxu0 %v6796_v18  ;;  %v5039_v18 = vld [vmem:[%s7532_s5 + $0x38] sm:$0xff] }
0x1696   :  { %6573 = vmatpush3.msra.mxu1 %v4229_v19  ;;  %v6799_v19 = vld [vmem:[%s7537_s29 + $0xc4] ss:$16 sps:$4 sm:$0xff]  }
0x1697   :  { %6574 = vmatprep.subr.mxu1 %v7344_v1 }
0x1698   :  { %6575 = vmatpush3.msra.mxu1 %v4228_v21  ;;  %v6802_v21 = vld [vmem:[%s7537_s29 + $0xcc] ss:$16 sps:$4 sm:$0xff]  }
0x1699   :  { %6576 = vmatprep.subr.mxu1 %v7344_v1 }
0x169a   :  { %6577 = vmatpush3.msra.mxu1 %v4227_v22  ;;  %v6800_v22 = vld [vmem:[%s7537_s29 + $0xc8] ss:$16 sps:$4 sm:$0xff]  }
0x169b   :  { %6578 = vmatprep.subr.mxu1 %v7344_v1 }
0x169c   :  { %6579 = vmatpush3.msra.mxu1 %v4226_v23  ;;  %v6808_v23 = vld [vmem:[%s7537_s29 + $0xac] ss:$16 sps:$4 sm:$0xff]  }
0x169d   :  { %6602 = vmatprep.subr.mxu1 %v7344_v1 }
0x1741   :  { %v6548_v24 = vpop.f32.mrf.mxu1 }
0x1743   :  { %v4440_v25 = vpop.f32.mrf.mxu1 }
0x1745   :  { %v6553_v26 = vpop.f32.mrf.mxu1 }
0x1747   :  { %v4525_v27 = vpop.f32.mrf.mxu1 }
0x1749   :  { %v6558_v28 = vpop.f32.mrf.mxu1 }
0x174a   :  { %v4612_v31 = vadd.f32 %v6558_v28, %v6548_v24  ;;  %v6803_v24 = vld [vmem:[%s7537_s29 + $0xa0] ss:$16 sps:$4 sm:$0xff]  }
0x174b   :  { %v4606_v29 = vpop.f32.mrf.mxu1  ;;  %v6809_v28 = vld [vmem:[%s7537_s29 + $0x80] ss:$16 sps:$4 sm:$0xff]  }
0x174c   :  { %v4607_v34 = vadd.f32 %v4606_v29, %v4440_v25  ;;  %v6806_v25 = vld [vmem:[%s7537_s29 + $0xa8] ss:$16 sps:$4 sm:$0xff]  }
0x174d   :  { %v6563_v30 = vpop.f32.mrf.mxu1  ;;  %v6812_v29 = vld [vmem:[%s7537_s29 + $0x88] ss:$16 sps:$4 sm:$0xff]  }
0x174e   :  { %v4693_v32 = vadd.f32 %v6563_v30, %v6553_v26  ;;  %v6811_v26 = vld [vmem:[%s7537_s29 + $0x84] ss:$16 sps:$4 sm:$0xff]  }
0x174f   :  { %v4687_v33 = vpop.f32.mrf.mxu1  ;;  %v6817_v30 = vld [vmem:[%s7537_s29 + $0x64] ss:$16 sps:$4 sm:$0xff]  }
0x1750   :  { %v8016_v35 = vadd.f32 %v4693_v32, %v4612_v31  ;;  %v4688_v36 = vadd.f32 %v4687_v33, %v4525_v27  ;;  %v6814_v27 = vld [vmem:[%s7537_s29 + $0x8c] ss:$16 sps:$4 sm:$0xff]   ;;  %v6815_v32 = vld [vmem:[%s7537_s29 + $0x60] ss:$16 sps:$4 sm:$0xff]   ;;  %v6818_v33 = vld [vmem:[%s7537_s29 + $0x68] ss:$16 sps:$4 sm:$0xff]  }
0x1751   :  { %v6820_v31 = vld [vmem:[%s7537_s29 + $0x6c] ss:$16 sps:$4 sm:$0xff]  }
0x1752   :  { %v4781_v37 = vmul.f32 %v8016_v35, %v8016_v35  ;;  %v8020_v38 = vadd.f32 %v4688_v36, %v4607_v34  ;;  %v4699_v39 = vsel %vm966_vm2, %v8016_v35, 0.0  ;;  %v6823_v34 = vld [vmem:[%s7537_s29 + $0x44] ss:$16 sps:$4 sm:$0xff]   ;;  %v6826_v36 = vld [vmem:[%s7537_s29 + $0x4c] ss:$16 sps:$4 sm:$0xff]  }
0x1754   :  { %v4698_v40 = vsel %vm966_vm2, %v8020_v38, 0.0  ;;  %v4780_v41 = vmul.f32 %v8020_v38, %v8020_v38  ;;  %v4783_v43 = vsel %vm966_vm2, %v4781_v37, 0.0  ;;  %v6821_v37 = vld [vmem:[%s7537_s29 + $0x40] ss:$16 sps:$4 sm:$0xff]  }
0x1755   :  { %v4700_v42 = vadd.f32 %v4699_v39, %v4698_v40  ;;  %v6824_v39 = vld [vmem:[%s7537_s29 + $0x48] ss:$16 sps:$4 sm:$0xff]   ;;  %v6829_v40 = vld [vmem:[%s7537_s29 + $0x24] ss:$16 sps:$4 sm:$0xff]  }
0x1756   :  { %v4782_v44 = vsel %vm966_vm2, %v4780_v41, 0.0  ;;  %v6832_v41 = vld [vmem:[%s7537_s29 + $0x2c] ss:$16 sps:$4 sm:$0xff]  }
0x1757   :  { %v4701_v45 = vrot.slane %v4700_v42, 4  ;;  %v4784_v46 = vadd.f32 %v4783_v43, %v4782_v44  ;;  %v6830_v43 = vld [vmem:[%s7537_s29 + $0x28] ss:$16 sps:$4 sm:$0xff]  }
0x1759   :  { %v4702_v47 = vadd.f32 %v4701_v45, %v4700_v42  ;;  %v4785_v48 = vrot.slane %v4784_v46, 4  ;;  %v6827_v42 = vld [vmem:[%s7537_s29 + $0x20] ss:$16 sps:$4 sm:$0xff]   ;;  %v6835_v45 = vld [vmem:[%s7537_s29 + $0x4] ss:$16 sps:$4 sm:$0xff]  }
0x175b   :  { %v4703_v49 = vrot.slane %v4702_v47, 2  ;;  %v4786_v50 = vadd.f32 %v4785_v48, %v4784_v46  ;;  %v6838_v46 = vld [vmem:[%s7537_s29 + $0xc] ss:$16 sps:$4 sm:$0xff]   ;;  %v6833_v48 = vld [vmem:[%s7537_s29] ss:$16 sps:$4 sm:$0xff]  }
0x175d   :  { %v4704_v51 = vadd.f32 %v4703_v49, %v4702_v47  ;;  %v4787_v52 = vrot.slane %v4786_v50, 2  ;;  %v6836_v49 = vld [vmem:[%s7537_s29 + $0x8] ss:$16 sps:$4 sm:$0xff]  }
0x175f   :  { %v4705_v53 = vrot.slane %v4704_v51, 1  ;;  %v4788_v54 = vadd.f32 %v4787_v52, %v4786_v50 }
0x1761   :  { %v4706_v55 = vadd.f32 %v4705_v53, %v4704_v51  ;;  %v4789_v58 = vrot.slane %v4788_v54, 1 }
0x1763   :  { %6581 = vmatmul.mubr.msk.f32.vlgmr.msra.gmra.mxu1 %vm966_vm2, %v4706_v55  ;;  %v4790_v60 = vadd.f32 %v4789_v58, %v4788_v54 }
0x1764   :  { %6604 = vmatprep.mubr.msk.f32.mxu1 %vm7345_vm3, %v7344_v1  ;;  %6603 = vmatpush3.msra.mxu1 %v4234_v61 }
0x1765   :  { %6600 = vmatmul.mubr.msk.f32.vlgmr.msra.gmra.mxu0 %vm966_vm2, %v4790_v60  ;;  %6607 = vmatprep.subr.mxu1 %v7344_v1 }
0x1766   :  { %5331 = vmatprep.mubr.bf16.mxu0 %v7343_v0  ;;  %5300 = vmatpush1.bf16.msra.mxu0 %v6794_v17  ;;  %v5046_v17 = vld [vmem:[%s7532_s5 + $0x70] sm:$0xff] }
0x1767   :  { %5301 = vmatprep.subr.bf16.mxu0 %v6802_v21  ;;  %v5032_v21 = vld [vmem:[%s7532_s5] sm:$0xff] }
0x176a   :  { %5302 = vmatpush1.bf16.msra.mxu0 %v6800_v22  ;;  %v5033_v22 = vld [vmem:[%s7532_s5 + $0x8] sm:$0xff] }
0x176b   :  { %5303 = vmatprep.subr.bf16.mxu0 %v6808_v23  ;;  %v5034_v23 = vld [vmem:[%s7532_s5 + $0x10] sm:$0xff] }
0x176e   :  { %5304 = vmatpush1.bf16.msra.mxu0 %v6806_v25  ;;  %v5035_v25 = vld [vmem:[%s7532_s5 + $0x18] sm:$0xff] }
0x176f   :  { %5305 = vmatprep.subr.bf16.mxu0 %v6814_v27 }
0x1772   :  { %5306 = vmatpush1.bf16.msra.mxu0 %v6812_v29 }
0x1773   :  { %5307 = vmatprep.subr.bf16.mxu0 %v6820_v31 }
0x1776   :  { %5308 = vmatpush1.bf16.msra.mxu0 %v6818_v33 }
0x1777   :  { %5309 = vmatprep.subr.bf16.mxu0 %v6826_v36 }
0x177a   :  { %5310 = vmatpush1.bf16.msra.mxu0 %v6824_v39 }
0x177b   :  { %5311 = vmatprep.subr.bf16.mxu0 %v6832_v41  ;;  %v5973_v41 = vld [vmem:[%s7542_s3] ss:$0 sm:$0xff] }
0x177e   :  { %5312 = vmatpush1.bf16.msra.mxu0 %v6830_v43 }
0x177f   :  { %5313 = vmatprep.subr.bf16.mxu0 %v6838_v46 }
0x1782   :  { %5314 = vmatpush1.bf16.msra.mxu0 %v6836_v49 }
0x1823   :  { %v4776_v62 = vpop.f32.mrf.mxu1 }
0x1824   :  { %v4864_v63 = vmul.f32 0.0078125, %v4776_v62 }
0x1825   :  { %v6582_v2 = vpop.f32.mrf.mxu1  ;;  %v4860_v57 = vpop.f32.mrf.mxu0 }
0x1826   :  { %v4866_v3 = vmul.f32 %v4864_v63, %v4864_v63  ;;  %v4865_v4 = vmul.f32 0.0078125, %v4860_v57  ;;  %v5082_v57 = vmax.f32 %v7658_v56, 0.0 }
0x1827   :  { %v6601_v5 = vpop.f32.mrf.mxu0 }
0x1828   :  { %v4867_v20 = vsub.f32 %v4865_v4, %v4866_v3  ;;  %v5081_v3 = vmax.f32 %v7661_v59, 0.0 }
0x182a   :  { %v4868_v6 = vmax.f32 %v4867_v20, 0.0  ;;  %v5036_v20 = vld [vmem:[%s7532_s5 + $0x20] sm:$0xff] }
0x182c   :  { %v4869_v7 = vadd.f32 1e-05, %v4868_v6  ;;  %v5044_v6 = vld [vmem:[%s7532_s5 + $0x60] sm:$0xff] }
0x182e   :  { %6847 = vrsqrt.f32 %v4869_v7 }
0x183b   :  { %v6848_v9 = vpop.eup %6847 }
0x183c   :  { %v4871_v10 = vmul.f32 %v6848_v9, %v4224_v8 }
0x183e   :  { %6605 = vmatmul.mubr.msk.f32.vlgmr.msra.gmra.mxu1 %vm1744_vm5, %v4871_v10  ;;  %v4872_v13 = vmul.f32 %v4871_v10, %v4864_v63 }
0x183f   :  { %6608 = vmatpush3.msra.mxu1 %v4234_v61  ;;  %6609 = vmatprep.mubr.msk.f32.mxu1 %vm7345_vm3, %v7344_v1  ;;  %v6797_v1 = vld [vmem:[%s7537_s29 + $0xc0] ss:$16 sps:$4 sm:$0xff]  }
0x1840   :  { %v4873_v14 = vsub.f32 %v4225_v11, %v4872_v13  ;;  %5256 = vmatprep.subr.bf16.mxu1 %v6793_v16  ;;  %v5038_v16 = vld [vmem:[%s7532_s5 + $0x30] sm:$0xff] }
0x1842   :  { %6610 = vmatmul.mubr.msk.f32.vlgmr.msra.gmra.mxu1 %vm1744_vm5, %v4873_v14  ;;  %v5037_v14 = vld [vmem:[%s7532_s5 + $0x28] sm:$0xff] }
0x1843   :  { %5288 = vmatprep.mubr.bf16.mxu1 %v7343_v0  ;;  %5257 = vmatpush1.bf16.msra.mxu1 %v6791_v15  ;;  %v6805_v0 = vld [vmem:[%s7537_s29 + $0xa4] ss:$16 sps:$4 sm:$0xff]   ;;  %v5045_v15 = vld [vmem:[%s7532_s5 + $0x68] sm:$0xff] }
0x1844   :  { %5258 = vmatprep.subr.bf16.mxu1 %v6799_v19  ;;  %v5047_v19 = vld [vmem:[%s7532_s5 + $0x78] sm:$0xff] }
0x1847   :  { %5259 = vmatpush1.bf16.msra.mxu1 %v6797_v1  ;;  %v5040_v1 = vld [vmem:[%s7532_s5 + $0x40] sm:$0xff] }
0x1848   :  { %5260 = vmatprep.subr.bf16.mxu1 %v6805_v0  ;;  %v5041_v0 = vld [vmem:[%s7532_s5 + $0x48] sm:$0xff] }
0x184b   :  { %5261 = vmatpush1.bf16.msra.mxu1 %v6803_v24  ;;  %v5042_v24 = vld [vmem:[%s7532_s5 + $0x50] sm:$0xff] }
0x184c   :  { %5262 = vmatprep.subr.bf16.mxu1 %v6811_v26  ;;  %v5043_v26 = vld [vmem:[%s7532_s5 + $0x58] sm:$0xff] }
0x184f   :  { %5263 = vmatpush1.bf16.msra.mxu1 %v6809_v28 }
0x1850   :  { %5264 = vmatprep.subr.bf16.mxu1 %v6817_v30 }
0x1853   :  { %5265 = vmatpush1.bf16.msra.mxu1 %v6815_v32 }
0x1854   :  { %5266 = vmatprep.subr.bf16.mxu1 %v6823_v34 }
0x1857   :  { %5267 = vmatpush1.bf16.msra.mxu1 %v6821_v37 }
0x1858   :  { %5268 = vmatprep.subr.bf16.mxu1 %v6829_v40 }
0x185b   :  { %5269 = vmatpush1.bf16.msra.mxu1 %v6827_v42 }
0x185c   :  { %5270 = vmatprep.subr.bf16.mxu1 %v6835_v45 }
0x185f   :  { %5271 = vmatpush1.bf16.msra.mxu1 %v6833_v48 }
0x18fe   :  { %v4943_v44 = vpop.f32.mrf.mxu1 }
0x18ff   :  { %v5023_v47 = vrot.slane %v4943_v44, %v7750_v12 }
0x1900   :  { %v6606_v50 = vpop.f32.mrf.mxu1 }
0x1901   :  { %v5024_v52 = vmul.f32 %v5023_v47, %v8020_v38  ;;  %v5025_v53 = vmul.f32 %v5023_v47, %v8016_v35 }
0x1902   :  { %v5016_v51 = vpop.f32.mrf.mxu1 }
0x1903   :  { %v5029_v54 = vrot.slane %v5016_v51, %v7750_v12 }
0x1904   :  { %v6611_v55 = vpop.f32.mrf.mxu1 }
0x1905   :  { %v5030_v58 = vadd.f32 %v5029_v54, %v5024_v52  ;;  %v5031_v60 = vadd.f32 %v5029_v54, %v5025_v53 }
0x1907   :  { %v5083_v61 = vmax.f32 %v5030_v58, 0.0  ;;  %v5084_v62 = vmax.f32 %v5031_v60, 0.0 }
0x1909   :  { %v6722_v63 = vpack.i.bf16 %v5084_v62, %v5083_v61 }
0x190b   :  { %6723 = vrot.lane.b32.xlu1 %v6722_v63, %s7322_s13 }
0x197d   :  { %v6724_v2 = vpop.permute.xlu1 %6723 }
0x197e   :  { %v6726_v38 = vunpack.i.h.bf16 %v6724_v2  ;;  %v6725_v4 = vunpack.i.l.bf16 %v6724_v2 }
0x1980   :  { %v5094_v35 = vsel %vm966_vm2, %v5082_v57, %v6726_v38  ;;  %v5093_v12 = vsel %vm966_vm2, %v5081_v3, %v6725_v4 }
0x1981   :  { %v5095_v5 = vpack.c.bf16 %v5094_v35, %v5093_v12 }
0x1983   :  { %5289 = vmatmul.mubr.bf16.vlgmr.msra.gmra.mxu1 %v5095_v5  ;;  %5332 = vmatmul.mubr.bf16.vlgmr.msra.gmra.mxu0 %v5095_v5 }
0x1984   :  { %6616 = vmatprep.mubr.msk.f32.mxu1 %vm1021_vm4, %v5036_v20  ;;  %6626 = vmatprep.mubr.msk.f32.mxu0 %vm1021_vm4, %v5044_v6 }
0x1a43   :  { %v5290_v56 = vpop.f32.mrf.mxu1  ;;  %v5333_v7 = vpop.f32.mrf.mxu0 }
0x1a45   :  { %v5292_v59 = vpop.f32.mrf.mxu1  ;;  %v5335_v8 = vpop.f32.mrf.mxu0 }
0x1a47   :  { %v5294_v9 = vpop.f32.mrf.mxu1  ;;  %v5337_v10 = vpop.f32.mrf.mxu0 }
0x1a49   :  { %v5296_v11 = vpop.f32.mrf.mxu1  ;;  %v5339_v13 = vpop.f32.mrf.mxu0 }
0x1a4a   :  { %6612 = vmatprep.subr.mxu1 %v5296_v11  ;;  %6622 = vmatprep.subr.mxu0 %v5339_v13 }
0x1a4b   :  { %6613 = vmatpush3.msra.mxu1 %v5296_v11  ;;  %6623 = vmatpush3.msra.mxu0 %v5339_v13 }
0x1a4c   :  { %6614 = vmatprep.subr.mxu1 %v5292_v59  ;;  %6624 = vmatprep.subr.mxu0 %v5335_v8 }
0x1a4d   :  { %6615 = vmatpush3.msra.mxu1 %v5292_v59  ;;  %6625 = vmatpush3.msra.mxu0 %v5335_v8 }
0x1a4e   :  { %6617 = vmatmul.mubr.msk.f32.vlgmr.msra.gmra.mxu1 %vm1021_vm4, %v5037_v14  ;;  %6627 = vmatmul.mubr.msk.f32.vlgmr.msra.gmra.mxu0 %vm1021_vm4, %v5045_v15 }
0x1a4f   :  { %6632 = vmatprep.subr.mxu1 %v5294_v9  ;;  %6642 = vmatprep.subr.mxu0 %v5337_v10 }
0x1a50   :  { %6633 = vmatpush3.msra.mxu1 %v5294_v9  ;;  %6643 = vmatpush3.msra.mxu0 %v5337_v10 }
0x1a51   :  { %6634 = vmatprep.subr.mxu1 %v5290_v56  ;;  %6644 = vmatprep.subr.mxu0 %v5333_v7 }
0x1a52   :  { %6619 = vmatprep.mubr.msk.f32.mxu1 %vm1021_vm4, %v5038_v16  ;;  %6629 = vmatprep.mubr.msk.f32.mxu0 %vm1021_vm4, %v5046_v17 }
0x1a53   :  { %6635 = vmatpush3.msra.mxu1 %v5290_v56  ;;  %6645 = vmatpush3.msra.mxu0 %v5333_v7 }
0x1a54   :  { %6620 = vmatmul.mubr.msk.f32.gmra.mxu1 %vm1021_vm4, %v5039_v18  ;;  %6630 = vmatmul.mubr.msk.f32.gmra.mxu0 %vm1021_vm4, %v5047_v19 }
0x1a55   :  { %6636 = vmatprep.mubr.msk.f32.mxu1 %vm1021_vm4, %v5032_v21  ;;  %6646 = vmatprep.mubr.msk.f32.mxu0 %vm1021_vm4, %v5040_v1 }
0x1a58   :  { %6637 = vmatmul.mubr.msk.f32.vlgmr.msra.gmra.mxu1 %vm1021_vm4, %v5033_v22  ;;  %6647 = vmatmul.mubr.msk.f32.vlgmr.msra.gmra.mxu0 %vm1021_vm4, %v5041_v0 }
0x1a59   :  { %6639 = vmatprep.mubr.msk.f32.mxu1 %vm1021_vm4, %v5034_v23  ;;  %6649 = vmatprep.mubr.msk.f32.mxu0 %vm1021_vm4, %v5042_v24 }
0x1a5c   :  { %6640 = vmatmul.mubr.msk.f32.gmra.mxu1 %vm1021_vm4, %v5035_v25  ;;  %6650 = vmatmul.mubr.msk.f32.gmra.mxu0 %vm1021_vm4, %v5043_v26 }
0x1b0e   :  { %v6618_v27 = vpop.f32.mrf.mxu1  ;;  %v6628_v28 = vpop.f32.mrf.mxu0 }
0x1b10   :  { %v5420_v29 = vpop.f32.mrf.mxu1  ;;  %v5517_v30 = vpop.f32.mrf.mxu0 }
0x1b14   :  { %v6621_v31 = vpop.f32.mrf.mxu1  ;;  %v6631_v32 = vpop.f32.mrf.mxu0 }
0x1b16   :  { %v5430_v33 = vpop.f32.mrf.mxu1  ;;  %v5527_v34 = vpop.f32.mrf.mxu0 }
0x1b18   :  { %v6638_v36 = vpop.f32.mrf.mxu1  ;;  %v6648_v37 = vpop.f32.mrf.mxu0 }
0x1b19   :  { %v5620_v39 = vadd.f32 %v6638_v36, %v6618_v27  ;;  %v5717_v40 = vadd.f32 %v6648_v37, %v6628_v28 }
0x1b1a   :  { %v5614_v42 = vpop.f32.mrf.mxu1  ;;  %v5711_v43 = vpop.f32.mrf.mxu0 }
0x1b1b   :  { %v5731_v44 = vadd.f32 %v5717_v40, %v5620_v39  ;;  %v5615_v45 = vadd.f32 %v5614_v42, %v5420_v29  ;;  %v5712_v46 = vadd.f32 %v5711_v43, %v5517_v30 }
0x1b1c   :  { %v6641_v47 = vpop.f32.mrf.mxu1  ;;  %v6651_v48 = vpop.f32.mrf.mxu0 }
0x1b1d   :  { %v5741_v49 = vadd.f32 %v5973_v41, %v5731_v44  ;;  %v5730_v50 = vadd.f32 %v5712_v46, %v5615_v45  ;;  %v5630_v51 = vadd.f32 %v6641_v47, %v6621_v31  ;;  %v5727_v52 = vadd.f32 %v6651_v48, %v6631_v32 }
0x1b1e   :  { %v5624_v53 = vpop.f32.mrf.mxu1  ;;  %v5721_v54 = vpop.f32.mrf.mxu0 }
0x1b1f   :  { %6849 = vtanh.f32 %v5741_v49  ;;  %v5740_v55 = vadd.f32 %v5973_v41, %v5730_v50  ;;  %v5733_v58 = vadd.f32 %v5727_v52, %v5630_v51  ;;  %v5625_v60 = vadd.f32 %v5624_v53, %v5430_v33 }
0x1b20   :  { %v5722_v61 = vadd.f32 %v5721_v54, %v5527_v34 }
0x1b21   :  { %6851 = vtanh.f32 %v5740_v55  ;;  %v5743_v62 = vadd.f32 %v5973_v41, %v5733_v58 }
0x1b22   :  { %v5732_v63 = vadd.f32 %v5722_v61, %v5625_v60 }
0x1b23   :  { %6853 = vtanh.f32 %v5743_v62 }
0x1b24   :  { %v5742_v2 = vadd.f32 %v5973_v41, %v5732_v63 }
0x1b26   :  { %6855 = vtanh.f32 %v5742_v2 }
0x1b2c   :  { %v6850_v57 = vpop.eup %6849 }
0x1b2d   :  { %5749 = vst [vmem:[%s7547_s4 + $0x8] sm:$0xff] %v6850_v57 }
0x1b2e   :  { %v6852_v3 = vpop.eup %6851 }
0x1b2f   :  { %5748 = vst [vmem:[%s7547_s4] sm:$0xff] %v6852_v3 }
0x1b30   :  { %v6854_v38 = vpop.eup %6853 }
0x1b31   :  { %5751 = vst [vmem:[%s7547_s4 + $0x18] sm:$0xff] %v6854_v38 }
0x1b33   :  { %v6856_v4 = vpop.eup %6855 }
0x1b34   :  { %5750 = vst [vmem:[%s7547_s4 + $0x10] sm:$0xff] %v6856_v4 }
0x1b35   :  { %5756 = vsyncpa [#allocation3], 1 }
0x1b36   :  { %5757 = vsyncpa [#allocation5], 1 }
0x1b37   :  { %5758 = vsyncpa [#allocation8], 1 }
0x1b38   :  { %5759 = vsyncpa [#allocation11], 1 }
0x1b39   :  { %5760 = vsyncpa [#allocation14], 1 }
0x1b3a   :  { %5761 = vsyncpa [#allocation17], 1 }
0x1b3b   :  { %5762 = vsyncpa [#allocation20], 1 }
0x1b3c   :  { %5763 = vsyncpa [#allocation23], 1 }
0x1b3d   :  { %5764 = vsyncpa [#allocation26], 1 }
0x1b3e   :  { %5765 = vsyncpa [#allocation29], 1 }
0x1b3f   :  { %5766 = vsyncpa [#allocation32], 1 }

</bundles_post_ra>
